<compile_context>
chip_gen: v5e
topology: v5e:2x2
jax: 0.10.0
libtpu: 0.0.40
codegen_flags: <defaults>
</compile_context>

<pallas_src>
import numpy as np
import jax
import jax.numpy as jnp
from jax.experimental import pallas as pl
from jax.experimental.pallas import tpu as pltpu

# Small, module-consistent shapes (out_channels = number of keypoints).
N, C, H, W = 2, 8, 16, 16
HW = H * W
K3 = 9 * C          # im2col depth of the 3x3 conv
EPS = 1e-5


def prm_kernel(xcolT_ref, w3_ref, b3_ref,
               wl1_ref, bl1_ref, wl2_ref, bl2_ref,
               w1_ref, b1_ref, wdw_ref, bdw_ref, mdw_ref,
               wpw_ref, bpw_ref, out_ref):
    # ---- conv_bn_relu_prm_1: 3x3 conv (im2col matmul) + BN + ReLU ----------
    xcolT = xcolT_ref[0]                                           # (9C, HW)
    out1 = jnp.dot(w3_ref[...], xcolT,
                   preferred_element_type=jnp.float32) + b3_ref[...]
    out1 = jnp.maximum(out1, 0.0)                                  # (C, HW)

    # ---- middle path: GAP -> (Linear+BN+ReLU)x2 -> Sigmoid (VPU/XLU only) --
    gp = jnp.mean(out1, axis=1, keepdims=True)                     # (C, 1)
    h1 = jnp.maximum(
        jnp.sum(wl1_ref[...] * gp, axis=0, keepdims=True) + bl1_ref[...], 0.0)  # (1, C)
    h2 = jnp.maximum(
        jnp.sum(wl2_ref[...] * h1, axis=1, keepdims=True) + bl2_ref[...], 0.0)  # (C, 1)
    gate2 = jax.nn.sigmoid(h2)                                     # (C, 1)

    # ---- bottom path: 1x1 conv + BN + ReLU ---------------------------------
    y = jnp.maximum(jnp.dot(w1_ref[...], out1,
                            preferred_element_type=jnp.float32) + b1_ref[...], 0.0)  # (C, HW)

    # 9x9 depthwise conv (pad=4) + BN + ReLU via lane rolls + folded pad masks.
    acc = jnp.zeros((C, HW), jnp.float32)
    for dy in range(9):
        for dx in range(9):
            t = dy * 9 + dx
            k = (dy - 4) * W + (dx - 4)       # lane offset of the needed pixel
            sh = (-k) % HW
            shifted = pltpu.roll(y, sh, axis=1) if sh else y
            # per-channel tap weight (C,1) * per-pixel validity mask (1,HW)
            acc = acc + shifted * wdw_ref[:, t:t + 1] * mdw_ref[t:t + 1, :]
    z = jnp.maximum(acc + bdw_ref[...], 0.0)                       # (C, HW)

    # pointwise 1x1 conv C -> 1 + BN + ReLU, then Sigmoid
    o3 = jnp.sum(z * wpw_ref[...], axis=0, keepdims=True) + bpw_ref[...]   # (1, HW)
    out3 = jax.nn.sigmoid(jnp.maximum(o3, 0.0))                    # (1, HW)

    # ---- out = out_1 * (1 + out_2 * out_3), single lane-dense store --------
    out_ref[0] = out1 * (1.0 + gate2 * out3)


def prm_forward(x_nchw, p):
    # glue: zero-pad and im2col the 3x3 conv input in NCHW order (no transpose).
    xpad = jnp.pad(x_nchw, ((0, 0), (0, 0), (1, 1), (1, 1)))
    cols = [xpad[:, :, dy:dy + H, dx:dx + W] for dy in range(3) for dx in range(3)]
    xcolT = jnp.concatenate(cols, axis=1).reshape(N, K3, HW)       # (N, 9C, HW)

    # kernel-layout parameters (channels on sublanes).
    w3T = p["w3f"].T                                  # (C, 9C)
    b3c = p["b3"].T                                   # (C, 1)
    wl1 = p["wl1"]                                    # (Cin, Cout)
    bl1 = p["bl1"]                                    # (1, C)
    wl2T = p["wl2"].T                                 # (Cout, Cin)
    bl2c = p["bl2"].T                                 # (C, 1)
    w1T = p["w1"].T                                   # (Cout, Cin)
    b1c = p["b1"].T                                   # (C, 1)
    wdwc = jnp.transpose(p["wdw"], (2, 0, 1)).reshape(C, 81)   # (C, 81)
    bdwc = p["bdw"].T                                 # (C, 1)
    wpwc = p["wpw"].T                                 # (C, 1)
    bpw = p["bpw"]                                    # (1, 1)

    # Per-tap validity masks folding the 9x9 conv's zero padding (pad=4).
    hh = np.repeat(np.arange(H), W)
    ww = np.tile(np.arange(W), H)
    m = np.zeros((81, HW), np.float32)
    for dy in range(9):
        for dx in range(9):
            valid = ((hh + dy - 4 >= 0) & (hh + dy - 4 < H) &
                     (ww + dx - 4 >= 0) & (ww + dx - 4 < W))
            m[dy * 9 + dx] = valid.astype(np.float32)
    mdw = jnp.asarray(m)                              # (81, HW)

    def full(shape):
        return pl.BlockSpec(shape, lambda n: (0,) * len(shape))

    in_specs = [
        pl.BlockSpec((1, K3, HW), lambda n: (n, 0, 0)),   # xcolT (per sample)
        full((C, K3)), full((C, 1)),                      # 3x3 conv (folded BN)
        full((C, C)), full((1, C)),                       # Linear1 (folded BN)
        full((C, C)), full((C, 1)),                       # Linear2 (folded BN)
        full((C, C)), full((C, 1)),                       # 1x1 conv (folded BN)
        full((C, 81)), full((C, 1)), full((81, HW)),      # depthwise 9x9 + masks
        full((C, 1)), full((1, 1)),                       # pointwise C->1 (folded BN)
    ]
    out_flat = pl.pallas_call(
        prm_kernel,
        out_shape=jax.ShapeDtypeStruct((N, C, HW), jnp.float32),
        grid_spec=pltpu.PrefetchScalarGridSpec(
            num_scalar_prefetch=0,
            grid=(N,),
            in_specs=in_specs,
            out_specs=pl.BlockSpec((1, C, HW), lambda n: (n, 0, 0)),
        ),
        compiler_params=pltpu.CompilerParams(dimension_semantics=("parallel",)),
    )(xcolT, w3T, b3c, wl1, bl1, wl2T, bl2c, w1T, b1c, wdwc, bdwc, mdw, wpwc, bpw)
    return out_flat.reshape(N, C, H, W)                   # NCHW, no transpose


# ------------------------- deterministic parameters -------------------------
def bn_fold_params(key, ch, pre_bias=None):
    kg, kb, km, kv = jax.random.split(key, 4)
    gamma = 1.0 + 0.1 * jax.random.normal(kg, (ch,), jnp.float32)
    beta = 0.1 * jax.random.normal(kb, (ch,), jnp.float32)
    mean = 0.1 * jax.random.normal(km, (ch,), jnp.float32)
    var = 0.5 + jax.random.uniform(kv, (ch,), dtype=jnp.float32)
    scale = gamma / jnp.sqrt(var + EPS)
    if pre_bias is None:
        pre_bias = jnp.zeros((ch,), jnp.float32)
    bias = (pre_bias - mean) * scale + beta
    return scale, bias


def make_params(key):
    ks = jax.random.split(key, 16)
    p = {}
    # conv_bn_relu_prm_1: 3x3 conv (bias=False) + BN + ReLU
    w3 = 0.1 * jax.random.normal(ks[0], (3, 3, C, C), jnp.float32)   # HWIO
    s3, b3 = bn_fold_params(ks[1], C)
    p["w3f"] = (w3 * s3).reshape(K3, C)
    p["b3"] = b3.reshape(1, C)
    # middle path: Linear(+bias) + BN1d (x2)
    wl1 = 0.3 * jax.random.normal(ks[2], (C, C), jnp.float32)        # (in, out)
    lb1 = 0.1 * jax.random.normal(ks[3], (C,), jnp.float32)
    s, b = bn_fold_params(ks[4], C, lb1)
    p["wl1"], p["bl1"] = wl1 * s, b.reshape(1, C)
    wl2 = 0.3 * jax.random.normal(ks[5], (C, C), jnp.float32)
    lb2 = 0.1 * jax.random.normal(ks[6], (C,), jnp.float32)
    s, b = bn_fold_params(ks[7], C, lb2)
    p["wl2"], p["bl2"] = wl2 * s, b.reshape(1, C)
    # bottom path: 1x1 conv (bias=False) + BN
    w1 = 0.3 * jax.random.normal(ks[8], (C, C), jnp.float32)         # (in, out)
    s, b = bn_fold_params(ks[9], C)
    p["w1"], p["b1"] = w1 * s, b.reshape(1, C)
    # depthwise 9x9 conv (bias=False) + BN
    wdw = 0.05 * jax.random.normal(ks[10], (9, 9, C), jnp.float32)
    s, b = bn_fold_params(ks[11], C)
    p["wdw"], p["bdw"] = wdw * s, b.reshape(1, C)
    # pointwise 1x1 conv C->1 (bias=False) + BN(1)
    wpw = 0.3 * jax.random.normal(ks[12], (C,), jnp.float32)
    s, b = bn_fold_params(ks[13], 1)
    p["wpw"] = (wpw * s[0]).reshape(1, C)
    p["bpw"] = b.reshape(1, 1)
    return p


# ------------------------- pure-JAX reference -------------------------------
def prm_reference(x_nchw, p):
    x = jnp.transpose(x_nchw, (0, 2, 3, 1))
    w3e = p["w3f"].reshape(3, 3, C, C)
    out1 = jax.lax.conv_general_dilated(
        x, w3e, (1, 1), ((1, 1), (1, 1)),
        dimension_numbers=("NHWC", "HWIO", "NHWC"))
    out1 = jax.nn.relu(out1 + p["b3"].reshape(1, 1, 1, C))
    gp = jnp.mean(out1, axis=(1, 2))
    h1 = jax.nn.relu(gp @ p["wl1"] + p["bl1"])
    h2 = jax.nn.relu(h1 @ p["wl2"] + p["bl2"])
    gate2 = jax.nn.sigmoid(h2)
    y = jax.nn.relu(jnp.einsum("nhwc,cd->nhwd", out1, p["w1"])
                    + p["b1"].reshape(1, 1, 1, C))
    z = jax.lax.conv_general_dilated(
        y, p["wdw"].reshape(9, 9, 1, C), (1, 1), ((4, 4), (4, 4)),
        dimension_numbers=("NHWC", "HWIO", "NHWC"), feature_group_count=C)
    z = jax.nn.relu(z + p["bdw"].reshape(1, 1, 1, C))
    o3 = jnp.sum(z * p["wpw"].reshape(1, 1, 1, C), axis=-1, keepdims=True) \
        + p["bpw"].reshape(1, 1, 1, 1)
    out3 = jax.nn.sigmoid(jax.nn.relu(o3))
    out = out1 * (1.0 + gate2[:, None, None, :] * out3)
    return jnp.transpose(out, (0, 3, 1, 2))


if __name__ == "__main__":
    key = jax.random.PRNGKey(0)
    kx, kp = jax.random.split(key)
    x = jax.random.normal(kx, (N, C, H, W), jnp.float32)   # NCHW like PyTorch
    params = make_params(kp)

    out = jax.block_until_ready(prm_forward(x, params))
    assert out.shape == (N, C, H, W)

    ref = jax.block_until_ready(prm_reference(x, params))
    if not np.allclose(np.asarray(out), np.asarray(ref), rtol=5e-3, atol=5e-3):
        max_err = float(np.max(np.abs(np.asarray(out) - np.asarray(ref))))
        raise AssertionError(f"kernel mismatch vs reference, max abs err = {max_err}")
    print("KERNEL_OK")
</pallas_src>

<mosaic_0001>
module attributes {stable_mosaic.version = 11 : i64} {
  func.func @prm_kernel(%arg0: i32, %arg1: memref<1x72x256xf32, #tpu.memory_space<vmem>>, %arg2: memref<8x72xf32, #tpu.memory_space<vmem>>, %arg3: memref<8x1xf32, #tpu.memory_space<vmem>>, %arg4: memref<8x8xf32, #tpu.memory_space<vmem>>, %arg5: memref<1x8xf32, #tpu.memory_space<vmem>>, %arg6: memref<8x8xf32, #tpu.memory_space<vmem>>, %arg7: memref<8x1xf32, #tpu.memory_space<vmem>>, %arg8: memref<8x8xf32, #tpu.memory_space<vmem>>, %arg9: memref<8x1xf32, #tpu.memory_space<vmem>>, %arg10: memref<8x81xf32, #tpu.memory_space<vmem>>, %arg11: memref<8x1xf32, #tpu.memory_space<vmem>>, %arg12: memref<81x256xf32, #tpu.memory_space<vmem>>, %arg13: memref<8x1xf32, #tpu.memory_space<vmem>>, %arg14: memref<1x1xf32, #tpu.memory_space<vmem>>, %arg15: memref<1x8x256xf32, #tpu.memory_space<vmem>>) attributes {dimension_semantics = [#tpu.dimension_semantics<parallel>], iteration_bounds = array<i64: 2>, scalar_prefetch = 0 : i64, scratch_operands = 0 : i64, tpu.core_type = #tpu.core_type<tc>, window_params = [{transform_indices = @transform_0, window_bounds = array<i64: 1, 72, 256>}, {pipeline_mode = #tpu.pipeline_mode<synchronous>, transform_indices = @transform_1, window_bounds = array<i64: 8, 72>}, {pipeline_mode = #tpu.pipeline_mode<synchronous>, transform_indices = @transform_2, window_bounds = array<i64: 8, 1>}, {pipeline_mode = #tpu.pipeline_mode<synchronous>, transform_indices = @transform_3, window_bounds = array<i64: 8, 8>}, {pipeline_mode = #tpu.pipeline_mode<synchronous>, transform_indices = @transform_4, window_bounds = array<i64: 1, 8>}, {pipeline_mode = #tpu.pipeline_mode<synchronous>, transform_indices = @transform_5, window_bounds = array<i64: 8, 8>}, {pipeline_mode = #tpu.pipeline_mode<synchronous>, transform_indices = @transform_6, window_bounds = array<i64: 8, 1>}, {pipeline_mode = #tpu.pipeline_mode<synchronous>, transform_indices = @transform_7, window_bounds = array<i64: 8, 8>}, {pipeline_mode = #tpu.pipeline_mode<synchronous>, transform_indices = @transform_8, window_bounds = array<i64: 8, 1>}, {pipeline_mode = #tpu.pipeline_mode<synchronous>, transform_indices = @transform_9, window_bounds = array<i64: 8, 81>}, {pipeline_mode = #tpu.pipeline_mode<synchronous>, transform_indices = @transform_10, window_bounds = array<i64: 8, 1>}, {pipeline_mode = #tpu.pipeline_mode<synchronous>, transform_indices = @transform_11, window_bounds = array<i64: 81, 256>}, {pipeline_mode = #tpu.pipeline_mode<synchronous>, transform_indices = @transform_12, window_bounds = array<i64: 8, 1>}, {pipeline_mode = #tpu.pipeline_mode<synchronous>, transform_indices = @transform_13, window_bounds = array<i64: 1, 1>}, {transform_indices = @transform_14, window_bounds = array<i64: 1, 8, 256>}]} {
    %c0 = arith.constant 0 : index
    %c0_0 = arith.constant 0 : index
    %c0_1 = arith.constant 0 : index
    %0 = vector.load %arg1[%c0, %c0_0, %c0_1] : memref<1x72x256xf32, #tpu.memory_space<vmem>>, vector<1x72x256xf32>
    %1 = vector.shape_cast %0 : vector<1x72x256xf32> to vector<72x256xf32>
    %c0_2 = arith.constant 0 : index
    %c0_3 = arith.constant 0 : index
    %2 = vector.load %arg2[%c0_2, %c0_3] : memref<8x72xf32, #tpu.memory_space<vmem>>, vector<8x72xf32>
    %cst = arith.constant dense<0.000000e+00> : vector<8x256xf32>
    %3 = tpu.matmul %2, %1, %cst {dimension_numbers = #tpu.dot_dimension_numbers<[1], [0], [0], [1], [0, 0, 1, 1], [], []>} : vector<8x72xf32>, vector<72x256xf32>, vector<8x256xf32> -> vector<8x256xf32>
    %c0_4 = arith.constant 0 : index
    %c0_5 = arith.constant 0 : index
    %4 = vector.load %arg3[%c0_4, %c0_5] : memref<8x1xf32, #tpu.memory_space<vmem>>, vector<8x1xf32>
    %5 = vector.broadcast %4 : vector<8x1xf32> to vector<8x256xf32>
    %6 = arith.addf %3, %5 : vector<8x256xf32>
    %cst_6 = arith.constant 0.000000e+00 : f32
    %7 = vector.broadcast %cst_6 : f32 to vector<8x256xf32>
    %8 = arith.maximumf %6, %7 : vector<8x256xf32>
    %cst_7 = arith.constant dense<0.000000e+00> : vector<8xf32>
    %9 = vector.multi_reduction <add>, %8, %cst_7 [1] : vector<8x256xf32> to vector<8xf32>
    %10 = vector.shape_cast %9 : vector<8xf32> to vector<8x1xf32>
    %cst_8 = arith.constant 2.560000e+02 : f32
    %11 = vector.broadcast %cst_8 : f32 to vector<8x1xf32>
    %12 = arith.divf %10, %11 : vector<8x1xf32>
    %c0_9 = arith.constant 0 : index
    %c0_10 = arith.constant 0 : index
    %13 = vector.load %arg4[%c0_9, %c0_10] : memref<8x8xf32, #tpu.memory_space<vmem>>, vector<8x8xf32>
    %14 = vector.broadcast %12 : vector<8x1xf32> to vector<8x8xf32>
    %15 = arith.mulf %13, %14 : vector<8x8xf32>
    %cst_11 = arith.constant dense<0.000000e+00> : vector<8xf32>
    %16 = vector.multi_reduction <add>, %15, %cst_11 [0] : vector<8x8xf32> to vector<8xf32>
    %17 = vector.shape_cast %16 : vector<8xf32> to vector<1x8xf32>
    %c0_12 = arith.constant 0 : index
    %c0_13 = arith.constant 0 : index
    %18 = vector.load %arg5[%c0_12, %c0_13] : memref<1x8xf32, #tpu.memory_space<vmem>>, vector<1x8xf32>
    %19 = arith.addf %17, %18 : vector<1x8xf32>
    %cst_14 = arith.constant 0.000000e+00 : f32
    %20 = vector.broadcast %cst_14 : f32 to vector<1x8xf32>
    %21 = arith.maximumf %19, %20 : vector<1x8xf32>
    %c0_15 = arith.constant 0 : index
    %c0_16 = arith.constant 0 : index
    %22 = vector.load %arg6[%c0_15, %c0_16] : memref<8x8xf32, #tpu.memory_space<vmem>>, vector<8x8xf32>
    %23 = vector.broadcast %21 : vector<1x8xf32> to vector<8x8xf32>
    %24 = arith.mulf %22, %23 : vector<8x8xf32>
    %cst_17 = arith.constant dense<0.000000e+00> : vector<8xf32>
    %25 = vector.multi_reduction <add>, %24, %cst_17 [1] : vector<8x8xf32> to vector<8xf32>
    %26 = vector.shape_cast %25 : vector<8xf32> to vector<8x1xf32>
    %c0_18 = arith.constant 0 : index
    %c0_19 = arith.constant 0 : index
    %27 = vector.load %arg7[%c0_18, %c0_19] : memref<8x1xf32, #tpu.memory_space<vmem>>, vector<8x1xf32>
    %28 = arith.addf %26, %27 : vector<8x1xf32>
    %cst_20 = arith.constant 0.000000e+00 : f32
    %29 = vector.broadcast %cst_20 : f32 to vector<8x1xf32>
    %30 = arith.maximumf %28, %29 : vector<8x1xf32>
    %31 = arith.negf %30 : vector<8x1xf32>
    %32 = math.exp %31 : vector<8x1xf32>
    %cst_21 = arith.constant 1.000000e+00 : f32
    %33 = vector.broadcast %cst_21 : f32 to vector<8x1xf32>
    %34 = arith.addf %33, %32 : vector<8x1xf32>
    %35 = arith.divf %33, %34 : vector<8x1xf32>
    %c0_22 = arith.constant 0 : index
    %c0_23 = arith.constant 0 : index
    %36 = vector.load %arg8[%c0_22, %c0_23] : memref<8x8xf32, #tpu.memory_space<vmem>>, vector<8x8xf32>
    %cst_24 = arith.constant dense<0.000000e+00> : vector<8x256xf32>
    %37 = tpu.matmul %36, %8, %cst_24 {dimension_numbers = #tpu.dot_dimension_numbers<[1], [0], [0], [1], [0, 0, 1, 1], [], []>} : vector<8x8xf32>, vector<8x256xf32>, vector<8x256xf32> -> vector<8x256xf32>
    %c0_25 = arith.constant 0 : index
    %c0_26 = arith.constant 0 : index
    %38 = vector.load %arg9[%c0_25, %c0_26] : memref<8x1xf32, #tpu.memory_space<vmem>>, vector<8x1xf32>
    %39 = vector.broadcast %38 : vector<8x1xf32> to vector<8x256xf32>
    %40 = arith.addf %37, %39 : vector<8x256xf32>
    %cst_27 = arith.constant 0.000000e+00 : f32
    %41 = vector.broadcast %cst_27 : f32 to vector<8x256xf32>
    %42 = arith.maximumf %40, %41 : vector<8x256xf32>
    %cst_28 = arith.constant 0.000000e+00 : f32
    %43 = vector.broadcast %cst_28 : f32 to vector<8x256xf32>
    %c68_i32 = arith.constant 68 : i32
    %44 = tpu.dynamic_rotate %42 by %c68_i32 dim 1 : vector<8x256xf32>, i32 -> vector<8x256xf32>
    %c0_29 = arith.constant 0 : index
    %c0_30 = arith.constant 0 : index
    %45 = vector.load %arg10[%c0_29, %c0_30] : memref<8x81xf32, #tpu.memory_space<vmem>>, vector<8x1xf32>
    %46 = vector.broadcast %45 : vector<8x1xf32> to vector<8x256xf32>
    %47 = arith.mulf %44, %46 : vector<8x256xf32>
    %c0_31 = arith.constant 0 : index
    %c0_32 = arith.constant 0 : index
    %48 = vector.load %arg12[%c0_31, %c0_32] : memref<81x256xf32, #tpu.memory_space<vmem>>, vector<1x256xf32>
    %49 = vector.broadcast %48 : vector<1x256xf32> to vector<8x256xf32>
    %50 = arith.mulf %47, %49 : vector<8x256xf32>
    %51 = arith.addf %43, %50 : vector<8x256xf32>
    %c67_i32 = arith.constant 67 : i32
    %52 = tpu.dynamic_rotate %42 by %c67_i32 dim 1 : vector<8x256xf32>, i32 -> vector<8x256xf32>
    %c0_33 = arith.constant 0 : index
    %c1 = arith.constant 1 : index
    %53 = vector.load %arg10[%c0_33, %c1] : memref<8x81xf32, #tpu.memory_space<vmem>>, vector<8x1xf32>
    %54 = vector.broadcast %53 : vector<8x1xf32> to vector<8x256xf32>
    %55 = arith.mulf %52, %54 : vector<8x256xf32>
    %c1_34 = arith.constant 1 : index
    %c0_35 = arith.constant 0 : index
    %56 = vector.load %arg12[%c1_34, %c0_35] : memref<81x256xf32, #tpu.memory_space<vmem>>, vector<1x256xf32>
    %57 = vector.broadcast %56 : vector<1x256xf32> to vector<8x256xf32>
    %58 = arith.mulf %55, %57 : vector<8x256xf32>
    %59 = arith.addf %51, %58 : vector<8x256xf32>
    %c66_i32 = arith.constant 66 : i32
    %60 = tpu.dynamic_rotate %42 by %c66_i32 dim 1 : vector<8x256xf32>, i32 -> vector<8x256xf32>
    %c0_36 = arith.constant 0 : index
    %c2 = arith.constant 2 : index
    %61 = vector.load %arg10[%c0_36, %c2] : memref<8x81xf32, #tpu.memory_space<vmem>>, vector<8x1xf32>
    %62 = vector.broadcast %61 : vector<8x1xf32> to vector<8x256xf32>
    %63 = arith.mulf %60, %62 : vector<8x256xf32>
    %c2_37 = arith.constant 2 : index
    %c0_38 = arith.constant 0 : index
    %64 = vector.load %arg12[%c2_37, %c0_38] : memref<81x256xf32, #tpu.memory_space<vmem>>, vector<1x256xf32>
    %65 = vector.broadcast %64 : vector<1x256xf32> to vector<8x256xf32>
    %66 = arith.mulf %63, %65 : vector<8x256xf32>
    %67 = arith.addf %59, %66 : vector<8x256xf32>
    %c65_i32 = arith.constant 65 : i32
    %68 = tpu.dynamic_rotate %42 by %c65_i32 dim 1 : vector<8x256xf32>, i32 -> vector<8x256xf32>
    %c0_39 = arith.constant 0 : index
    %c3 = arith.constant 3 : index
    %69 = vector.load %arg10[%c0_39, %c3] : memref<8x81xf32, #tpu.memory_space<vmem>>, vector<8x1xf32>
    %70 = vector.broadcast %69 : vector<8x1xf32> to vector<8x256xf32>
    %71 = arith.mulf %68, %70 : vector<8x256xf32>
    %c3_40 = arith.constant 3 : index
    %c0_41 = arith.constant 0 : index
    %72 = vector.load %arg12[%c3_40, %c0_41] : memref<81x256xf32, #tpu.memory_space<vmem>>, vector<1x256xf32>
    %73 = vector.broadcast %72 : vector<1x256xf32> to vector<8x256xf32>
    %74 = arith.mulf %71, %73 : vector<8x256xf32>
    %75 = arith.addf %67, %74 : vector<8x256xf32>
    %c64_i32 = arith.constant 64 : i32
    %76 = tpu.dynamic_rotate %42 by %c64_i32 dim 1 : vector<8x256xf32>, i32 -> vector<8x256xf32>
    %c0_42 = arith.constant 0 : index
    %c4 = arith.constant 4 : index
    %77 = vector.load %arg10[%c0_42, %c4] : memref<8x81xf32, #tpu.memory_space<vmem>>, vector<8x1xf32>
    %78 = vector.broadcast %77 : vector<8x1xf32> to vector<8x256xf32>
    %79 = arith.mulf %76, %78 : vector<8x256xf32>
    %c4_43 = arith.constant 4 : index
    %c0_44 = arith.constant 0 : index
    %80 = vector.load %arg12[%c4_43, %c0_44] : memref<81x256xf32, #tpu.memory_space<vmem>>, vector<1x256xf32>
    %81 = vector.broadcast %80 : vector<1x256xf32> to vector<8x256xf32>
    %82 = arith.mulf %79, %81 : vector<8x256xf32>
    %83 = arith.addf %75, %82 : vector<8x256xf32>
    %c63_i32 = arith.constant 63 : i32
    %84 = tpu.dynamic_rotate %42 by %c63_i32 dim 1 : vector<8x256xf32>, i32 -> vector<8x256xf32>
    %c0_45 = arith.constant 0 : index
    %c5 = arith.constant 5 : index
    %85 = vector.load %arg10[%c0_45, %c5] : memref<8x81xf32, #tpu.memory_space<vmem>>, vector<8x1xf32>
    %86 = vector.broadcast %85 : vector<8x1xf32> to vector<8x256xf32>
    %87 = arith.mulf %84, %86 : vector<8x256xf32>
    %c5_46 = arith.constant 5 : index
    %c0_47 = arith.constant 0 : index
    %88 = vector.load %arg12[%c5_46, %c0_47] : memref<81x256xf32, #tpu.memory_space<vmem>>, vector<1x256xf32>
    %89 = vector.broadcast %88 : vector<1x256xf32> to vector<8x256xf32>
    %90 = arith.mulf %87, %89 : vector<8x256xf32>
    %91 = arith.addf %83, %90 : vector<8x256xf32>
    %c62_i32 = arith.constant 62 : i32
    %92 = tpu.dynamic_rotate %42 by %c62_i32 dim 1 : vector<8x256xf32>, i32 -> vector<8x256xf32>
    %c0_48 = arith.constant 0 : index
    %c6 = arith.constant 6 : index
    %93 = vector.load %arg10[%c0_48, %c6] : memref<8x81xf32, #tpu.memory_space<vmem>>, vector<8x1xf32>
    %94 = vector.broadcast %93 : vector<8x1xf32> to vector<8x256xf32>
    %95 = arith.mulf %92, %94 : vector<8x256xf32>
    %c6_49 = arith.constant 6 : index
    %c0_50 = arith.constant 0 : index
    %96 = vector.load %arg12[%c6_49, %c0_50] : memref<81x256xf32, #tpu.memory_space<vmem>>, vector<1x256xf32>
    %97 = vector.broadcast %96 : vector<1x256xf32> to vector<8x256xf32>
    %98 = arith.mulf %95, %97 : vector<8x256xf32>
    %99 = arith.addf %91, %98 : vector<8x256xf32>
    %c61_i32 = arith.constant 61 : i32
    %100 = tpu.dynamic_rotate %42 by %c61_i32 dim 1 : vector<8x256xf32>, i32 -> vector<8x256xf32>
    %c0_51 = arith.constant 0 : index
    %c7 = arith.constant 7 : index
    %101 = vector.load %arg10[%c0_51, %c7] : memref<8x81xf32, #tpu.memory_space<vmem>>, vector<8x1xf32>
    %102 = vector.broadcast %101 : vector<8x1xf32> to vector<8x256xf32>
    %103 = arith.mulf %100, %102 : vector<8x256xf32>
    %c7_52 = arith.constant 7 : index
    %c0_53 = arith.constant 0 : index
    %104 = vector.load %arg12[%c7_52, %c0_53] : memref<81x256xf32, #tpu.memory_space<vmem>>, vector<1x256xf32>
    %105 = vector.broadcast %104 : vector<1x256xf32> to vector<8x256xf32>
    %106 = arith.mulf %103, %105 : vector<8x256xf32>
    %107 = arith.addf %99, %106 : vector<8x256xf32>
    %c60_i32 = arith.constant 60 : i32
    %108 = tpu.dynamic_rotate %42 by %c60_i32 dim 1 : vector<8x256xf32>, i32 -> vector<8x256xf32>
    %c0_54 = arith.constant 0 : index
    %c8 = arith.constant 8 : index
    %109 = vector.load %arg10[%c0_54, %c8] : memref<8x81xf32, #tpu.memory_space<vmem>>, vector<8x1xf32>
    %110 = vector.broadcast %109 : vector<8x1xf32> to vector<8x256xf32>
    %111 = arith.mulf %108, %110 : vector<8x256xf32>
    %c8_55 = arith.constant 8 : index
    %c0_56 = arith.constant 0 : index
    %112 = vector.load %arg12[%c8_55, %c0_56] : memref<81x256xf32, #tpu.memory_space<vmem>>, vector<1x256xf32>
    %113 = vector.broadcast %112 : vector<1x256xf32> to vector<8x256xf32>
    %114 = arith.mulf %111, %113 : vector<8x256xf32>
    %115 = arith.addf %107, %114 : vector<8x256xf32>
    %c52_i32 = arith.constant 52 : i32
    %116 = tpu.dynamic_rotate %42 by %c52_i32 dim 1 : vector<8x256xf32>, i32 -> vector<8x256xf32>
    %c0_57 = arith.constant 0 : index
    %c9 = arith.constant 9 : index
    %117 = vector.load %arg10[%c0_57, %c9] : memref<8x81xf32, #tpu.memory_space<vmem>>, vector<8x1xf32>
    %118 = vector.broadcast %117 : vector<8x1xf32> to vector<8x256xf32>
    %119 = arith.mulf %116, %118 : vector<8x256xf32>
    %c9_58 = arith.constant 9 : index
    %c0_59 = arith.constant 0 : index
    %120 = vector.load %arg12[%c9_58, %c0_59] : memref<81x256xf32, #tpu.memory_space<vmem>>, vector<1x256xf32>
    %121 = vector.broadcast %120 : vector<1x256xf32> to vector<8x256xf32>
    %122 = arith.mulf %119, %121 : vector<8x256xf32>
    %123 = arith.addf %115, %122 : vector<8x256xf32>
    %c51_i32 = arith.constant 51 : i32
    %124 = tpu.dynamic_rotate %42 by %c51_i32 dim 1 : vector<8x256xf32>, i32 -> vector<8x256xf32>
    %c0_60 = arith.constant 0 : index
    %c10 = arith.constant 10 : index
    %125 = vector.load %arg10[%c0_60, %c10] : memref<8x81xf32, #tpu.memory_space<vmem>>, vector<8x1xf32>
    %126 = vector.broadcast %125 : vector<8x1xf32> to vector<8x256xf32>
    %127 = arith.mulf %124, %126 : vector<8x256xf32>
    %c10_61 = arith.constant 10 : index
    %c0_62 = arith.constant 0 : index
    %128 = vector.load %arg12[%c10_61, %c0_62] : memref<81x256xf32, #tpu.memory_space<vmem>>, vector<1x256xf32>
    %129 = vector.broadcast %128 : vector<1x256xf32> to vector<8x256xf32>
    %130 = arith.mulf %127, %129 : vector<8x256xf32>
    %131 = arith.addf %123, %130 : vector<8x256xf32>
    %c50_i32 = arith.constant 50 : i32
    %132 = tpu.dynamic_rotate %42 by %c50_i32 dim 1 : vector<8x256xf32>, i32 -> vector<8x256xf32>
    %c0_63 = arith.constant 0 : index
    %c11 = arith.constant 11 : index
    %133 = vector.load %arg10[%c0_63, %c11] : memref<8x81xf32, #tpu.memory_space<vmem>>, vector<8x1xf32>
    %134 = vector.broadcast %133 : vector<8x1xf32> to vector<8x256xf32>
    %135 = arith.mulf %132, %134 : vector<8x256xf32>
    %c11_64 = arith.constant 11 : index
    %c0_65 = arith.constant 0 : index
    %136 = vector.load %arg12[%c11_64, %c0_65] : memref<81x256xf32, #tpu.memory_space<vmem>>, vector<1x256xf32>
    %137 = vector.broadcast %136 : vector<1x256xf32> to vector<8x256xf32>
    %138 = arith.mulf %135, %137 : vector<8x256xf32>
    %139 = arith.addf %131, %138 : vector<8x256xf32>
    %c49_i32 = arith.constant 49 : i32
    %140 = tpu.dynamic_rotate %42 by %c49_i32 dim 1 : vector<8x256xf32>, i32 -> vector<8x256xf32>
    %c0_66 = arith.constant 0 : index
    %c12 = arith.constant 12 : index
    %141 = vector.load %arg10[%c0_66, %c12] : memref<8x81xf32, #tpu.memory_space<vmem>>, vector<8x1xf32>
    %142 = vector.broadcast %141 : vector<8x1xf32> to vector<8x256xf32>
    %143 = arith.mulf %140, %142 : vector<8x256xf32>
    %c12_67 = arith.constant 12 : index
    %c0_68 = arith.constant 0 : index
    %144 = vector.load %arg12[%c12_67, %c0_68] : memref<81x256xf32, #tpu.memory_space<vmem>>, vector<1x256xf32>
    %145 = vector.broadcast %144 : vector<1x256xf32> to vector<8x256xf32>
    %146 = arith.mulf %143, %145 : vector<8x256xf32>
    %147 = arith.addf %139, %146 : vector<8x256xf32>
    %c48_i32 = arith.constant 48 : i32
    %148 = tpu.dynamic_rotate %42 by %c48_i32 dim 1 : vector<8x256xf32>, i32 -> vector<8x256xf32>
    %c0_69 = arith.constant 0 : index
    %c13 = arith.constant 13 : index
    %149 = vector.load %arg10[%c0_69, %c13] : memref<8x81xf32, #tpu.memory_space<vmem>>, vector<8x1xf32>
    %150 = vector.broadcast %149 : vector<8x1xf32> to vector<8x256xf32>
    %151 = arith.mulf %148, %150 : vector<8x256xf32>
    %c13_70 = arith.constant 13 : index
    %c0_71 = arith.constant 0 : index
    %152 = vector.load %arg12[%c13_70, %c0_71] : memref<81x256xf32, #tpu.memory_space<vmem>>, vector<1x256xf32>
    %153 = vector.broadcast %152 : vector<1x256xf32> to vector<8x256xf32>
    %154 = arith.mulf %151, %153 : vector<8x256xf32>
    %155 = arith.addf %147, %154 : vector<8x256xf32>
    %c47_i32 = arith.constant 47 : i32
    %156 = tpu.dynamic_rotate %42 by %c47_i32 dim 1 : vector<8x256xf32>, i32 -> vector<8x256xf32>
    %c0_72 = arith.constant 0 : index
    %c14 = arith.constant 14 : index
    %157 = vector.load %arg10[%c0_72, %c14] : memref<8x81xf32, #tpu.memory_space<vmem>>, vector<8x1xf32>
    %158 = vector.broadcast %157 : vector<8x1xf32> to vector<8x256xf32>
    %159 = arith.mulf %156, %158 : vector<8x256xf32>
    %c14_73 = arith.constant 14 : index
    %c0_74 = arith.constant 0 : index
    %160 = vector.load %arg12[%c14_73, %c0_74] : memref<81x256xf32, #tpu.memory_space<vmem>>, vector<1x256xf32>
    %161 = vector.broadcast %160 : vector<1x256xf32> to vector<8x256xf32>
    %162 = arith.mulf %159, %161 : vector<8x256xf32>
    %163 = arith.addf %155, %162 : vector<8x256xf32>
    %c46_i32 = arith.constant 46 : i32
    %164 = tpu.dynamic_rotate %42 by %c46_i32 dim 1 : vector<8x256xf32>, i32 -> vector<8x256xf32>
    %c0_75 = arith.constant 0 : index
    %c15 = arith.constant 15 : index
    %165 = vector.load %arg10[%c0_75, %c15] : memref<8x81xf32, #tpu.memory_space<vmem>>, vector<8x1xf32>
    %166 = vector.broadcast %165 : vector<8x1xf32> to vector<8x256xf32>
    %167 = arith.mulf %164, %166 : vector<8x256xf32>
    %c15_76 = arith.constant 15 : index
    %c0_77 = arith.constant 0 : index
    %168 = vector.load %arg12[%c15_76, %c0_77] : memref<81x256xf32, #tpu.memory_space<vmem>>, vector<1x256xf32>
    %169 = vector.broadcast %168 : vector<1x256xf32> to vector<8x256xf32>
    %170 = arith.mulf %167, %169 : vector<8x256xf32>
    %171 = arith.addf %163, %170 : vector<8x256xf32>
    %c45_i32 = arith.constant 45 : i32
    %172 = tpu.dynamic_rotate %42 by %c45_i32 dim 1 : vector<8x256xf32>, i32 -> vector<8x256xf32>
    %c0_78 = arith.constant 0 : index
    %c16 = arith.constant 16 : index
    %173 = vector.load %arg10[%c0_78, %c16] : memref<8x81xf32, #tpu.memory_space<vmem>>, vector<8x1xf32>
    %174 = vector.broadcast %173 : vector<8x1xf32> to vector<8x256xf32>
    %175 = arith.mulf %172, %174 : vector<8x256xf32>
    %c16_79 = arith.constant 16 : index
    %c0_80 = arith.constant 0 : index
    %176 = vector.load %arg12[%c16_79, %c0_80] : memref<81x256xf32, #tpu.memory_space<vmem>>, vector<1x256xf32>
    %177 = vector.broadcast %176 : vector<1x256xf32> to vector<8x256xf32>
    %178 = arith.mulf %175, %177 : vector<8x256xf32>
    %179 = arith.addf %171, %178 : vector<8x256xf32>
    %c44_i32 = arith.constant 44 : i32
    %180 = tpu.dynamic_rotate %42 by %c44_i32 dim 1 : vector<8x256xf32>, i32 -> vector<8x256xf32>
    %c0_81 = arith.constant 0 : index
    %c17 = arith.constant 17 : index
    %181 = vector.load %arg10[%c0_81, %c17] : memref<8x81xf32, #tpu.memory_space<vmem>>, vector<8x1xf32>
    %182 = vector.broadcast %181 : vector<8x1xf32> to vector<8x256xf32>
    %183 = arith.mulf %180, %182 : vector<8x256xf32>
    %c17_82 = arith.constant 17 : index
    %c0_83 = arith.constant 0 : index
    %184 = vector.load %arg12[%c17_82, %c0_83] : memref<81x256xf32, #tpu.memory_space<vmem>>, vector<1x256xf32>
    %185 = vector.broadcast %184 : vector<1x256xf32> to vector<8x256xf32>
    %186 = arith.mulf %183, %185 : vector<8x256xf32>
    %187 = arith.addf %179, %186 : vector<8x256xf32>
    %c36_i32 = arith.constant 36 : i32
    %188 = tpu.dynamic_rotate %42 by %c36_i32 dim 1 : vector<8x256xf32>, i32 -> vector<8x256xf32>
    %c0_84 = arith.constant 0 : index
    %c18 = arith.constant 18 : index
    %189 = vector.load %arg10[%c0_84, %c18] : memref<8x81xf32, #tpu.memory_space<vmem>>, vector<8x1xf32>
    %190 = vector.broadcast %189 : vector<8x1xf32> to vector<8x256xf32>
    %191 = arith.mulf %188, %190 : vector<8x256xf32>
    %c18_85 = arith.constant 18 : index
    %c0_86 = arith.constant 0 : index
    %192 = vector.load %arg12[%c18_85, %c0_86] : memref<81x256xf32, #tpu.memory_space<vmem>>, vector<1x256xf32>
    %193 = vector.broadcast %192 : vector<1x256xf32> to vector<8x256xf32>
    %194 = arith.mulf %191, %193 : vector<8x256xf32>
    %195 = arith.addf %187, %194 : vector<8x256xf32>
    %c35_i32 = arith.constant 35 : i32
    %196 = tpu.dynamic_rotate %42 by %c35_i32 dim 1 : vector<8x256xf32>, i32 -> vector<8x256xf32>
    %c0_87 = arith.constant 0 : index
    %c19 = arith.constant 19 : index
    %197 = vector.load %arg10[%c0_87, %c19] : memref<8x81xf32, #tpu.memory_space<vmem>>, vector<8x1xf32>
    %198 = vector.broadcast %197 : vector<8x1xf32> to vector<8x256xf32>
    %199 = arith.mulf %196, %198 : vector<8x256xf32>
    %c19_88 = arith.constant 19 : index
    %c0_89 = arith.constant 0 : index
    %200 = vector.load %arg12[%c19_88, %c0_89] : memref<81x256xf32, #tpu.memory_space<vmem>>, vector<1x256xf32>
    %201 = vector.broadcast %200 : vector<1x256xf32> to vector<8x256xf32>
    %202 = arith.mulf %199, %201 : vector<8x256xf32>
    %203 = arith.addf %195, %202 : vector<8x256xf32>
    %c34_i32 = arith.constant 34 : i32
    %204 = tpu.dynamic_rotate %42 by %c34_i32 dim 1 : vector<8x256xf32>, i32 -> vector<8x256xf32>
    %c0_90 = arith.constant 0 : index
    %c20 = arith.constant 20 : index
    %205 = vector.load %arg10[%c0_90, %c20] : memref<8x81xf32, #tpu.memory_space<vmem>>, vector<8x1xf32>
    %206 = vector.broadcast %205 : vector<8x1xf32> to vector<8x256xf32>
    %207 = arith.mulf %204, %206 : vector<8x256xf32>
    %c20_91 = arith.constant 20 : index
    %c0_92 = arith.constant 0 : index
    %208 = vector.load %arg12[%c20_91, %c0_92] : memref<81x256xf32, #tpu.memory_space<vmem>>, vector<1x256xf32>
    %209 = vector.broadcast %208 : vector<1x256xf32> to vector<8x256xf32>
    %210 = arith.mulf %207, %209 : vector<8x256xf32>
    %211 = arith.addf %203, %210 : vector<8x256xf32>
    %c33_i32 = arith.constant 33 : i32
    %212 = tpu.dynamic_rotate %42 by %c33_i32 dim 1 : vector<8x256xf32>, i32 -> vector<8x256xf32>
    %c0_93 = arith.constant 0 : index
    %c21 = arith.constant 21 : index
    %213 = vector.load %arg10[%c0_93, %c21] : memref<8x81xf32, #tpu.memory_space<vmem>>, vector<8x1xf32>
    %214 = vector.broadcast %213 : vector<8x1xf32> to vector<8x256xf32>
    %215 = arith.mulf %212, %214 : vector<8x256xf32>
    %c21_94 = arith.constant 21 : index
    %c0_95 = arith.constant 0 : index
    %216 = vector.load %arg12[%c21_94, %c0_95] : memref<81x256xf32, #tpu.memory_space<vmem>>, vector<1x256xf32>
    %217 = vector.broadcast %216 : vector<1x256xf32> to vector<8x256xf32>
    %218 = arith.mulf %215, %217 : vector<8x256xf32>
    %219 = arith.addf %211, %218 : vector<8x256xf32>
    %c32_i32 = arith.constant 32 : i32
    %220 = tpu.dynamic_rotate %42 by %c32_i32 dim 1 : vector<8x256xf32>, i32 -> vector<8x256xf32>
    %c0_96 = arith.constant 0 : index
    %c22 = arith.constant 22 : index
    %221 = vector.load %arg10[%c0_96, %c22] : memref<8x81xf32, #tpu.memory_space<vmem>>, vector<8x1xf32>
    %222 = vector.broadcast %221 : vector<8x1xf32> to vector<8x256xf32>
    %223 = arith.mulf %220, %222 : vector<8x256xf32>
    %c22_97 = arith.constant 22 : index
    %c0_98 = arith.constant 0 : index
    %224 = vector.load %arg12[%c22_97, %c0_98] : memref<81x256xf32, #tpu.memory_space<vmem>>, vector<1x256xf32>
    %225 = vector.broadcast %224 : vector<1x256xf32> to vector<8x256xf32>
    %226 = arith.mulf %223, %225 : vector<8x256xf32>
    %227 = arith.addf %219, %226 : vector<8x256xf32>
    %c31_i32 = arith.constant 31 : i32
    %228 = tpu.dynamic_rotate %42 by %c31_i32 dim 1 : vector<8x256xf32>, i32 -> vector<8x256xf32>
    %c0_99 = arith.constant 0 : index
    %c23 = arith.constant 23 : index
    %229 = vector.load %arg10[%c0_99, %c23] : memref<8x81xf32, #tpu.memory_space<vmem>>, vector<8x1xf32>
    %230 = vector.broadcast %229 : vector<8x1xf32> to vector<8x256xf32>
    %231 = arith.mulf %228, %230 : vector<8x256xf32>
    %c23_100 = arith.constant 23 : index
    %c0_101 = arith.constant 0 : index
    %232 = vector.load %arg12[%c23_100, %c0_101] : memref<81x256xf32, #tpu.memory_space<vmem>>, vector<1x256xf32>
    %233 = vector.broadcast %232 : vector<1x256xf32> to vector<8x256xf32>
    %234 = arith.mulf %231, %233 : vector<8x256xf32>
    %235 = arith.addf %227, %234 : vector<8x256xf32>
    %c30_i32 = arith.constant 30 : i32
    %236 = tpu.dynamic_rotate %42 by %c30_i32 dim 1 : vector<8x256xf32>, i32 -> vector<8x256xf32>
    %c0_102 = arith.constant 0 : index
    %c24 = arith.constant 24 : index
    %237 = vector.load %arg10[%c0_102, %c24] : memref<8x81xf32, #tpu.memory_space<vmem>>, vector<8x1xf32>
    %238 = vector.broadcast %237 : vector<8x1xf32> to vector<8x256xf32>
    %239 = arith.mulf %236, %238 : vector<8x256xf32>
    %c24_103 = arith.constant 24 : index
    %c0_104 = arith.constant 0 : index
    %240 = vector.load %arg12[%c24_103, %c0_104] : memref<81x256xf32, #tpu.memory_space<vmem>>, vector<1x256xf32>
    %241 = vector.broadcast %240 : vector<1x256xf32> to vector<8x256xf32>
    %242 = arith.mulf %239, %241 : vector<8x256xf32>
    %243 = arith.addf %235, %242 : vector<8x256xf32>
    %c29_i32 = arith.constant 29 : i32
    %244 = tpu.dynamic_rotate %42 by %c29_i32 dim 1 : vector<8x256xf32>, i32 -> vector<8x256xf32>
    %c0_105 = arith.constant 0 : index
    %c25 = arith.constant 25 : index
    %245 = vector.load %arg10[%c0_105, %c25] : memref<8x81xf32, #tpu.memory_space<vmem>>, vector<8x1xf32>
    %246 = vector.broadcast %245 : vector<8x1xf32> to vector<8x256xf32>
    %247 = arith.mulf %244, %246 : vector<8x256xf32>
    %c25_106 = arith.constant 25 : index
    %c0_107 = arith.constant 0 : index
    %248 = vector.load %arg12[%c25_106, %c0_107] : memref<81x256xf32, #tpu.memory_space<vmem>>, vector<1x256xf32>
    %249 = vector.broadcast %248 : vector<1x256xf32> to vector<8x256xf32>
    %250 = arith.mulf %247, %249 : vector<8x256xf32>
    %251 = arith.addf %243, %250 : vector<8x256xf32>
    %c28_i32 = arith.constant 28 : i32
    %252 = tpu.dynamic_rotate %42 by %c28_i32 dim 1 : vector<8x256xf32>, i32 -> vector<8x256xf32>
    %c0_108 = arith.constant 0 : index
    %c26 = arith.constant 26 : index
    %253 = vector.load %arg10[%c0_108, %c26] : memref<8x81xf32, #tpu.memory_space<vmem>>, vector<8x1xf32>
    %254 = vector.broadcast %253 : vector<8x1xf32> to vector<8x256xf32>
    %255 = arith.mulf %252, %254 : vector<8x256xf32>
    %c26_109 = arith.constant 26 : index
    %c0_110 = arith.constant 0 : index
    %256 = vector.load %arg12[%c26_109, %c0_110] : memref<81x256xf32, #tpu.memory_space<vmem>>, vector<1x256xf32>
    %257 = vector.broadcast %256 : vector<1x256xf32> to vector<8x256xf32>
    %258 = arith.mulf %255, %257 : vector<8x256xf32>
    %259 = arith.addf %251, %258 : vector<8x256xf32>
    %c20_i32 = arith.constant 20 : i32
    %260 = tpu.dynamic_rotate %42 by %c20_i32 dim 1 : vector<8x256xf32>, i32 -> vector<8x256xf32>
    %c0_111 = arith.constant 0 : index
    %c27 = arith.constant 27 : index
    %261 = vector.load %arg10[%c0_111, %c27] : memref<8x81xf32, #tpu.memory_space<vmem>>, vector<8x1xf32>
    %262 = vector.broadcast %261 : vector<8x1xf32> to vector<8x256xf32>
    %263 = arith.mulf %260, %262 : vector<8x256xf32>
    %c27_112 = arith.constant 27 : index
    %c0_113 = arith.constant 0 : index
    %264 = vector.load %arg12[%c27_112, %c0_113] : memref<81x256xf32, #tpu.memory_space<vmem>>, vector<1x256xf32>
    %265 = vector.broadcast %264 : vector<1x256xf32> to vector<8x256xf32>
    %266 = arith.mulf %263, %265 : vector<8x256xf32>
    %267 = arith.addf %259, %266 : vector<8x256xf32>
    %c19_i32 = arith.constant 19 : i32
    %268 = tpu.dynamic_rotate %42 by %c19_i32 dim 1 : vector<8x256xf32>, i32 -> vector<8x256xf32>
    %c0_114 = arith.constant 0 : index
    %c28 = arith.constant 28 : index
    %269 = vector.load %arg10[%c0_114, %c28] : memref<8x81xf32, #tpu.memory_space<vmem>>, vector<8x1xf32>
    %270 = vector.broadcast %269 : vector<8x1xf32> to vector<8x256xf32>
    %271 = arith.mulf %268, %270 : vector<8x256xf32>
    %c28_115 = arith.constant 28 : index
    %c0_116 = arith.constant 0 : index
    %272 = vector.load %arg12[%c28_115, %c0_116] : memref<81x256xf32, #tpu.memory_space<vmem>>, vector<1x256xf32>
    %273 = vector.broadcast %272 : vector<1x256xf32> to vector<8x256xf32>
    %274 = arith.mulf %271, %273 : vector<8x256xf32>
    %275 = arith.addf %267, %274 : vector<8x256xf32>
    %c18_i32 = arith.constant 18 : i32
    %276 = tpu.dynamic_rotate %42 by %c18_i32 dim 1 : vector<8x256xf32>, i32 -> vector<8x256xf32>
    %c0_117 = arith.constant 0 : index
    %c29 = arith.constant 29 : index
    %277 = vector.load %arg10[%c0_117, %c29] : memref<8x81xf32, #tpu.memory_space<vmem>>, vector<8x1xf32>
    %278 = vector.broadcast %277 : vector<8x1xf32> to vector<8x256xf32>
    %279 = arith.mulf %276, %278 : vector<8x256xf32>
    %c29_118 = arith.constant 29 : index
    %c0_119 = arith.constant 0 : index
    %280 = vector.load %arg12[%c29_118, %c0_119] : memref<81x256xf32, #tpu.memory_space<vmem>>, vector<1x256xf32>
    %281 = vector.broadcast %280 : vector<1x256xf32> to vector<8x256xf32>
    %282 = arith.mulf %279, %281 : vector<8x256xf32>
    %283 = arith.addf %275, %282 : vector<8x256xf32>
    %c17_i32 = arith.constant 17 : i32
    %284 = tpu.dynamic_rotate %42 by %c17_i32 dim 1 : vector<8x256xf32>, i32 -> vector<8x256xf32>
    %c0_120 = arith.constant 0 : index
    %c30 = arith.constant 30 : index
    %285 = vector.load %arg10[%c0_120, %c30] : memref<8x81xf32, #tpu.memory_space<vmem>>, vector<8x1xf32>
    %286 = vector.broadcast %285 : vector<8x1xf32> to vector<8x256xf32>
    %287 = arith.mulf %284, %286 : vector<8x256xf32>
    %c30_121 = arith.constant 30 : index
    %c0_122 = arith.constant 0 : index
    %288 = vector.load %arg12[%c30_121, %c0_122] : memref<81x256xf32, #tpu.memory_space<vmem>>, vector<1x256xf32>
    %289 = vector.broadcast %288 : vector<1x256xf32> to vector<8x256xf32>
    %290 = arith.mulf %287, %289 : vector<8x256xf32>
    %291 = arith.addf %283, %290 : vector<8x256xf32>
    %c16_i32 = arith.constant 16 : i32
    %292 = tpu.dynamic_rotate %42 by %c16_i32 dim 1 : vector<8x256xf32>, i32 -> vector<8x256xf32>
    %c0_123 = arith.constant 0 : index
    %c31 = arith.constant 31 : index
    %293 = vector.load %arg10[%c0_123, %c31] : memref<8x81xf32, #tpu.memory_space<vmem>>, vector<8x1xf32>
    %294 = vector.broadcast %293 : vector<8x1xf32> to vector<8x256xf32>
    %295 = arith.mulf %292, %294 : vector<8x256xf32>
    %c31_124 = arith.constant 31 : index
    %c0_125 = arith.constant 0 : index
    %296 = vector.load %arg12[%c31_124, %c0_125] : memref<81x256xf32, #tpu.memory_space<vmem>>, vector<1x256xf32>
    %297 = vector.broadcast %296 : vector<1x256xf32> to vector<8x256xf32>
    %298 = arith.mulf %295, %297 : vector<8x256xf32>
    %299 = arith.addf %291, %298 : vector<8x256xf32>
    %c15_i32 = arith.constant 15 : i32
    %300 = tpu.dynamic_rotate %42 by %c15_i32 dim 1 : vector<8x256xf32>, i32 -> vector<8x256xf32>
    %c0_126 = arith.constant 0 : index
    %c32 = arith.constant 32 : index
    %301 = vector.load %arg10[%c0_126, %c32] : memref<8x81xf32, #tpu.memory_space<vmem>>, vector<8x1xf32>
    %302 = vector.broadcast %301 : vector<8x1xf32> to vector<8x256xf32>
    %303 = arith.mulf %300, %302 : vector<8x256xf32>
    %c32_127 = arith.constant 32 : index
    %c0_128 = arith.constant 0 : index
    %304 = vector.load %arg12[%c32_127, %c0_128] : memref<81x256xf32, #tpu.memory_space<vmem>>, vector<1x256xf32>
    %305 = vector.broadcast %304 : vector<1x256xf32> to vector<8x256xf32>
    %306 = arith.mulf %303, %305 : vector<8x256xf32>
    %307 = arith.addf %299, %306 : vector<8x256xf32>
    %c14_i32 = arith.constant 14 : i32
    %308 = tpu.dynamic_rotate %42 by %c14_i32 dim 1 : vector<8x256xf32>, i32 -> vector<8x256xf32>
    %c0_129 = arith.constant 0 : index
    %c33 = arith.constant 33 : index
    %309 = vector.load %arg10[%c0_129, %c33] : memref<8x81xf32, #tpu.memory_space<vmem>>, vector<8x1xf32>
    %310 = vector.broadcast %309 : vector<8x1xf32> to vector<8x256xf32>
    %311 = arith.mulf %308, %310 : vector<8x256xf32>
    %c33_130 = arith.constant 33 : index
    %c0_131 = arith.constant 0 : index
    %312 = vector.load %arg12[%c33_130, %c0_131] : memref<81x256xf32, #tpu.memory_space<vmem>>, vector<1x256xf32>
    %313 = vector.broadcast %312 : vector<1x256xf32> to vector<8x256xf32>
    %314 = arith.mulf %311, %313 : vector<8x256xf32>
    %315 = arith.addf %307, %314 : vector<8x256xf32>
    %c13_i32 = arith.constant 13 : i32
    %316 = tpu.dynamic_rotate %42 by %c13_i32 dim 1 : vector<8x256xf32>, i32 -> vector<8x256xf32>
    %c0_132 = arith.constant 0 : index
    %c34 = arith.constant 34 : index
    %317 = vector.load %arg10[%c0_132, %c34] : memref<8x81xf32, #tpu.memory_space<vmem>>, vector<8x1xf32>
    %318 = vector.broadcast %317 : vector<8x1xf32> to vector<8x256xf32>
    %319 = arith.mulf %316, %318 : vector<8x256xf32>
    %c34_133 = arith.constant 34 : index
    %c0_134 = arith.constant 0 : index
    %320 = vector.load %arg12[%c34_133, %c0_134] : memref<81x256xf32, #tpu.memory_space<vmem>>, vector<1x256xf32>
    %321 = vector.broadcast %320 : vector<1x256xf32> to vector<8x256xf32>
    %322 = arith.mulf %319, %321 : vector<8x256xf32>
    %323 = arith.addf %315, %322 : vector<8x256xf32>
    %c12_i32 = arith.constant 12 : i32
    %324 = tpu.dynamic_rotate %42 by %c12_i32 dim 1 : vector<8x256xf32>, i32 -> vector<8x256xf32>
    %c0_135 = arith.constant 0 : index
    %c35 = arith.constant 35 : index
    %325 = vector.load %arg10[%c0_135, %c35] : memref<8x81xf32, #tpu.memory_space<vmem>>, vector<8x1xf32>
    %326 = vector.broadcast %325 : vector<8x1xf32> to vector<8x256xf32>
    %327 = arith.mulf %324, %326 : vector<8x256xf32>
    %c35_136 = arith.constant 35 : index
    %c0_137 = arith.constant 0 : index
    %328 = vector.load %arg12[%c35_136, %c0_137] : memref<81x256xf32, #tpu.memory_space<vmem>>, vector<1x256xf32>
    %329 = vector.broadcast %328 : vector<1x256xf32> to vector<8x256xf32>
    %330 = arith.mulf %327, %329 : vector<8x256xf32>
    %331 = arith.addf %323, %330 : vector<8x256xf32>
    %c4_i32 = arith.constant 4 : i32
    %332 = tpu.dynamic_rotate %42 by %c4_i32 dim 1 : vector<8x256xf32>, i32 -> vector<8x256xf32>
    %c0_138 = arith.constant 0 : index
    %c36 = arith.constant 36 : index
    %333 = vector.load %arg10[%c0_138, %c36] : memref<8x81xf32, #tpu.memory_space<vmem>>, vector<8x1xf32>
    %334 = vector.broadcast %333 : vector<8x1xf32> to vector<8x256xf32>
    %335 = arith.mulf %332, %334 : vector<8x256xf32>
    %c36_139 = arith.constant 36 : index
    %c0_140 = arith.constant 0 : index
    %336 = vector.load %arg12[%c36_139, %c0_140] : memref<81x256xf32, #tpu.memory_space<vmem>>, vector<1x256xf32>
    %337 = vector.broadcast %336 : vector<1x256xf32> to vector<8x256xf32>
    %338 = arith.mulf %335, %337 : vector<8x256xf32>
    %339 = arith.addf %331, %338 : vector<8x256xf32>
    %c3_i32 = arith.constant 3 : i32
    %340 = tpu.dynamic_rotate %42 by %c3_i32 dim 1 : vector<8x256xf32>, i32 -> vector<8x256xf32>
    %c0_141 = arith.constant 0 : index
    %c37 = arith.constant 37 : index
    %341 = vector.load %arg10[%c0_141, %c37] : memref<8x81xf32, #tpu.memory_space<vmem>>, vector<8x1xf32>
    %342 = vector.broadcast %341 : vector<8x1xf32> to vector<8x256xf32>
    %343 = arith.mulf %340, %342 : vector<8x256xf32>
    %c37_142 = arith.constant 37 : index
    %c0_143 = arith.constant 0 : index
    %344 = vector.load %arg12[%c37_142, %c0_143] : memref<81x256xf32, #tpu.memory_space<vmem>>, vector<1x256xf32>
    %345 = vector.broadcast %344 : vector<1x256xf32> to vector<8x256xf32>
    %346 = arith.mulf %343, %345 : vector<8x256xf32>
    %347 = arith.addf %339, %346 : vector<8x256xf32>
    %c2_i32 = arith.constant 2 : i32
    %348 = tpu.dynamic_rotate %42 by %c2_i32 dim 1 : vector<8x256xf32>, i32 -> vector<8x256xf32>
    %c0_144 = arith.constant 0 : index
    %c38 = arith.constant 38 : index
    %349 = vector.load %arg10[%c0_144, %c38] : memref<8x81xf32, #tpu.memory_space<vmem>>, vector<8x1xf32>
    %350 = vector.broadcast %349 : vector<8x1xf32> to vector<8x256xf32>
    %351 = arith.mulf %348, %350 : vector<8x256xf32>
    %c38_145 = arith.constant 38 : index
    %c0_146 = arith.constant 0 : index
    %352 = vector.load %arg12[%c38_145, %c0_146] : memref<81x256xf32, #tpu.memory_space<vmem>>, vector<1x256xf32>
    %353 = vector.broadcast %352 : vector<1x256xf32> to vector<8x256xf32>
    %354 = arith.mulf %351, %353 : vector<8x256xf32>
    %355 = arith.addf %347, %354 : vector<8x256xf32>
    %c1_i32 = arith.constant 1 : i32
    %356 = tpu.dynamic_rotate %42 by %c1_i32 dim 1 : vector<8x256xf32>, i32 -> vector<8x256xf32>
    %c0_147 = arith.constant 0 : index
    %c39 = arith.constant 39 : index
    %357 = vector.load %arg10[%c0_147, %c39] : memref<8x81xf32, #tpu.memory_space<vmem>>, vector<8x1xf32>
    %358 = vector.broadcast %357 : vector<8x1xf32> to vector<8x256xf32>
    %359 = arith.mulf %356, %358 : vector<8x256xf32>
    %c39_148 = arith.constant 39 : index
    %c0_149 = arith.constant 0 : index
    %360 = vector.load %arg12[%c39_148, %c0_149] : memref<81x256xf32, #tpu.memory_space<vmem>>, vector<1x256xf32>
    %361 = vector.broadcast %360 : vector<1x256xf32> to vector<8x256xf32>
    %362 = arith.mulf %359, %361 : vector<8x256xf32>
    %363 = arith.addf %355, %362 : vector<8x256xf32>
    %c0_150 = arith.constant 0 : index
    %c40 = arith.constant 40 : index
    %364 = vector.load %arg10[%c0_150, %c40] : memref<8x81xf32, #tpu.memory_space<vmem>>, vector<8x1xf32>
    %365 = vector.broadcast %364 : vector<8x1xf32> to vector<8x256xf32>
    %366 = arith.mulf %42, %365 : vector<8x256xf32>
    %c40_151 = arith.constant 40 : index
    %c0_152 = arith.constant 0 : index
    %367 = vector.load %arg12[%c40_151, %c0_152] : memref<81x256xf32, #tpu.memory_space<vmem>>, vector<1x256xf32>
    %368 = vector.broadcast %367 : vector<1x256xf32> to vector<8x256xf32>
    %369 = arith.mulf %366, %368 : vector<8x256xf32>
    %370 = arith.addf %363, %369 : vector<8x256xf32>
    %c255_i32 = arith.constant 255 : i32
    %371 = tpu.dynamic_rotate %42 by %c255_i32 dim 1 : vector<8x256xf32>, i32 -> vector<8x256xf32>
    %c0_153 = arith.constant 0 : index
    %c41 = arith.constant 41 : index
    %372 = vector.load %arg10[%c0_153, %c41] : memref<8x81xf32, #tpu.memory_space<vmem>>, vector<8x1xf32>
    %373 = vector.broadcast %372 : vector<8x1xf32> to vector<8x256xf32>
    %374 = arith.mulf %371, %373 : vector<8x256xf32>
    %c41_154 = arith.constant 41 : index
    %c0_155 = arith.constant 0 : index
    %375 = vector.load %arg12[%c41_154, %c0_155] : memref<81x256xf32, #tpu.memory_space<vmem>>, vector<1x256xf32>
    %376 = vector.broadcast %375 : vector<1x256xf32> to vector<8x256xf32>
    %377 = arith.mulf %374, %376 : vector<8x256xf32>
    %378 = arith.addf %370, %377 : vector<8x256xf32>
    %c254_i32 = arith.constant 254 : i32
    %379 = tpu.dynamic_rotate %42 by %c254_i32 dim 1 : vector<8x256xf32>, i32 -> vector<8x256xf32>
    %c0_156 = arith.constant 0 : index
    %c42 = arith.constant 42 : index
    %380 = vector.load %arg10[%c0_156, %c42] : memref<8x81xf32, #tpu.memory_space<vmem>>, vector<8x1xf32>
    %381 = vector.broadcast %380 : vector<8x1xf32> to vector<8x256xf32>
    %382 = arith.mulf %379, %381 : vector<8x256xf32>
    %c42_157 = arith.constant 42 : index
    %c0_158 = arith.constant 0 : index
    %383 = vector.load %arg12[%c42_157, %c0_158] : memref<81x256xf32, #tpu.memory_space<vmem>>, vector<1x256xf32>
    %384 = vector.broadcast %383 : vector<1x256xf32> to vector<8x256xf32>
    %385 = arith.mulf %382, %384 : vector<8x256xf32>
    %386 = arith.addf %378, %385 : vector<8x256xf32>
    %c253_i32 = arith.constant 253 : i32
    %387 = tpu.dynamic_rotate %42 by %c253_i32 dim 1 : vector<8x256xf32>, i32 -> vector<8x256xf32>
    %c0_159 = arith.constant 0 : index
    %c43 = arith.constant 43 : index
    %388 = vector.load %arg10[%c0_159, %c43] : memref<8x81xf32, #tpu.memory_space<vmem>>, vector<8x1xf32>
    %389 = vector.broadcast %388 : vector<8x1xf32> to vector<8x256xf32>
    %390 = arith.mulf %387, %389 : vector<8x256xf32>
    %c43_160 = arith.constant 43 : index
    %c0_161 = arith.constant 0 : index
    %391 = vector.load %arg12[%c43_160, %c0_161] : memref<81x256xf32, #tpu.memory_space<vmem>>, vector<1x256xf32>
    %392 = vector.broadcast %391 : vector<1x256xf32> to vector<8x256xf32>
    %393 = arith.mulf %390, %392 : vector<8x256xf32>
    %394 = arith.addf %386, %393 : vector<8x256xf32>
    %c252_i32 = arith.constant 252 : i32
    %395 = tpu.dynamic_rotate %42 by %c252_i32 dim 1 : vector<8x256xf32>, i32 -> vector<8x256xf32>
    %c0_162 = arith.constant 0 : index
    %c44 = arith.constant 44 : index
    %396 = vector.load %arg10[%c0_162, %c44] : memref<8x81xf32, #tpu.memory_space<vmem>>, vector<8x1xf32>
    %397 = vector.broadcast %396 : vector<8x1xf32> to vector<8x256xf32>
    %398 = arith.mulf %395, %397 : vector<8x256xf32>
    %c44_163 = arith.constant 44 : index
    %c0_164 = arith.constant 0 : index
    %399 = vector.load %arg12[%c44_163, %c0_164] : memref<81x256xf32, #tpu.memory_space<vmem>>, vector<1x256xf32>
    %400 = vector.broadcast %399 : vector<1x256xf32> to vector<8x256xf32>
    %401 = arith.mulf %398, %400 : vector<8x256xf32>
    %402 = arith.addf %394, %401 : vector<8x256xf32>
    %c244_i32 = arith.constant 244 : i32
    %403 = tpu.dynamic_rotate %42 by %c244_i32 dim 1 : vector<8x256xf32>, i32 -> vector<8x256xf32>
    %c0_165 = arith.constant 0 : index
    %c45 = arith.constant 45 : index
    %404 = vector.load %arg10[%c0_165, %c45] : memref<8x81xf32, #tpu.memory_space<vmem>>, vector<8x1xf32>
    %405 = vector.broadcast %404 : vector<8x1xf32> to vector<8x256xf32>
    %406 = arith.mulf %403, %405 : vector<8x256xf32>
    %c45_166 = arith.constant 45 : index
    %c0_167 = arith.constant 0 : index
    %407 = vector.load %arg12[%c45_166, %c0_167] : memref<81x256xf32, #tpu.memory_space<vmem>>, vector<1x256xf32>
    %408 = vector.broadcast %407 : vector<1x256xf32> to vector<8x256xf32>
    %409 = arith.mulf %406, %408 : vector<8x256xf32>
    %410 = arith.addf %402, %409 : vector<8x256xf32>
    %c243_i32 = arith.constant 243 : i32
    %411 = tpu.dynamic_rotate %42 by %c243_i32 dim 1 : vector<8x256xf32>, i32 -> vector<8x256xf32>
    %c0_168 = arith.constant 0 : index
    %c46 = arith.constant 46 : index
    %412 = vector.load %arg10[%c0_168, %c46] : memref<8x81xf32, #tpu.memory_space<vmem>>, vector<8x1xf32>
    %413 = vector.broadcast %412 : vector<8x1xf32> to vector<8x256xf32>
    %414 = arith.mulf %411, %413 : vector<8x256xf32>
    %c46_169 = arith.constant 46 : index
    %c0_170 = arith.constant 0 : index
    %415 = vector.load %arg12[%c46_169, %c0_170] : memref<81x256xf32, #tpu.memory_space<vmem>>, vector<1x256xf32>
    %416 = vector.broadcast %415 : vector<1x256xf32> to vector<8x256xf32>
    %417 = arith.mulf %414, %416 : vector<8x256xf32>
    %418 = arith.addf %410, %417 : vector<8x256xf32>
    %c242_i32 = arith.constant 242 : i32
    %419 = tpu.dynamic_rotate %42 by %c242_i32 dim 1 : vector<8x256xf32>, i32 -> vector<8x256xf32>
    %c0_171 = arith.constant 0 : index
    %c47 = arith.constant 47 : index
    %420 = vector.load %arg10[%c0_171, %c47] : memref<8x81xf32, #tpu.memory_space<vmem>>, vector<8x1xf32>
    %421 = vector.broadcast %420 : vector<8x1xf32> to vector<8x256xf32>
    %422 = arith.mulf %419, %421 : vector<8x256xf32>
    %c47_172 = arith.constant 47 : index
    %c0_173 = arith.constant 0 : index
    %423 = vector.load %arg12[%c47_172, %c0_173] : memref<81x256xf32, #tpu.memory_space<vmem>>, vector<1x256xf32>
    %424 = vector.broadcast %423 : vector<1x256xf32> to vector<8x256xf32>
    %425 = arith.mulf %422, %424 : vector<8x256xf32>
    %426 = arith.addf %418, %425 : vector<8x256xf32>
    %c241_i32 = arith.constant 241 : i32
    %427 = tpu.dynamic_rotate %42 by %c241_i32 dim 1 : vector<8x256xf32>, i32 -> vector<8x256xf32>
    %c0_174 = arith.constant 0 : index
    %c48 = arith.constant 48 : index
    %428 = vector.load %arg10[%c0_174, %c48] : memref<8x81xf32, #tpu.memory_space<vmem>>, vector<8x1xf32>
    %429 = vector.broadcast %428 : vector<8x1xf32> to vector<8x256xf32>
    %430 = arith.mulf %427, %429 : vector<8x256xf32>
    %c48_175 = arith.constant 48 : index
    %c0_176 = arith.constant 0 : index
    %431 = vector.load %arg12[%c48_175, %c0_176] : memref<81x256xf32, #tpu.memory_space<vmem>>, vector<1x256xf32>
    %432 = vector.broadcast %431 : vector<1x256xf32> to vector<8x256xf32>
    %433 = arith.mulf %430, %432 : vector<8x256xf32>
    %434 = arith.addf %426, %433 : vector<8x256xf32>
    %c240_i32 = arith.constant 240 : i32
    %435 = tpu.dynamic_rotate %42 by %c240_i32 dim 1 : vector<8x256xf32>, i32 -> vector<8x256xf32>
    %c0_177 = arith.constant 0 : index
    %c49 = arith.constant 49 : index
    %436 = vector.load %arg10[%c0_177, %c49] : memref<8x81xf32, #tpu.memory_space<vmem>>, vector<8x1xf32>
    %437 = vector.broadcast %436 : vector<8x1xf32> to vector<8x256xf32>
    %438 = arith.mulf %435, %437 : vector<8x256xf32>
    %c49_178 = arith.constant 49 : index
    %c0_179 = arith.constant 0 : index
    %439 = vector.load %arg12[%c49_178, %c0_179] : memref<81x256xf32, #tpu.memory_space<vmem>>, vector<1x256xf32>
    %440 = vector.broadcast %439 : vector<1x256xf32> to vector<8x256xf32>
    %441 = arith.mulf %438, %440 : vector<8x256xf32>
    %442 = arith.addf %434, %441 : vector<8x256xf32>
    %c239_i32 = arith.constant 239 : i32
    %443 = tpu.dynamic_rotate %42 by %c239_i32 dim 1 : vector<8x256xf32>, i32 -> vector<8x256xf32>
    %c0_180 = arith.constant 0 : index
    %c50 = arith.constant 50 : index
    %444 = vector.load %arg10[%c0_180, %c50] : memref<8x81xf32, #tpu.memory_space<vmem>>, vector<8x1xf32>
    %445 = vector.broadcast %444 : vector<8x1xf32> to vector<8x256xf32>
    %446 = arith.mulf %443, %445 : vector<8x256xf32>
    %c50_181 = arith.constant 50 : index
    %c0_182 = arith.constant 0 : index
    %447 = vector.load %arg12[%c50_181, %c0_182] : memref<81x256xf32, #tpu.memory_space<vmem>>, vector<1x256xf32>
    %448 = vector.broadcast %447 : vector<1x256xf32> to vector<8x256xf32>
    %449 = arith.mulf %446, %448 : vector<8x256xf32>
    %450 = arith.addf %442, %449 : vector<8x256xf32>
    %c238_i32 = arith.constant 238 : i32
    %451 = tpu.dynamic_rotate %42 by %c238_i32 dim 1 : vector<8x256xf32>, i32 -> vector<8x256xf32>
    %c0_183 = arith.constant 0 : index
    %c51 = arith.constant 51 : index
    %452 = vector.load %arg10[%c0_183, %c51] : memref<8x81xf32, #tpu.memory_space<vmem>>, vector<8x1xf32>
    %453 = vector.broadcast %452 : vector<8x1xf32> to vector<8x256xf32>
    %454 = arith.mulf %451, %453 : vector<8x256xf32>
    %c51_184 = arith.constant 51 : index
    %c0_185 = arith.constant 0 : index
    %455 = vector.load %arg12[%c51_184, %c0_185] : memref<81x256xf32, #tpu.memory_space<vmem>>, vector<1x256xf32>
    %456 = vector.broadcast %455 : vector<1x256xf32> to vector<8x256xf32>
    %457 = arith.mulf %454, %456 : vector<8x256xf32>
    %458 = arith.addf %450, %457 : vector<8x256xf32>
    %c237_i32 = arith.constant 237 : i32
    %459 = tpu.dynamic_rotate %42 by %c237_i32 dim 1 : vector<8x256xf32>, i32 -> vector<8x256xf32>
    %c0_186 = arith.constant 0 : index
    %c52 = arith.constant 52 : index
    %460 = vector.load %arg10[%c0_186, %c52] : memref<8x81xf32, #tpu.memory_space<vmem>>, vector<8x1xf32>
    %461 = vector.broadcast %460 : vector<8x1xf32> to vector<8x256xf32>
    %462 = arith.mulf %459, %461 : vector<8x256xf32>
    %c52_187 = arith.constant 52 : index
    %c0_188 = arith.constant 0 : index
    %463 = vector.load %arg12[%c52_187, %c0_188] : memref<81x256xf32, #tpu.memory_space<vmem>>, vector<1x256xf32>
    %464 = vector.broadcast %463 : vector<1x256xf32> to vector<8x256xf32>
    %465 = arith.mulf %462, %464 : vector<8x256xf32>
    %466 = arith.addf %458, %465 : vector<8x256xf32>
    %c236_i32 = arith.constant 236 : i32
    %467 = tpu.dynamic_rotate %42 by %c236_i32 dim 1 : vector<8x256xf32>, i32 -> vector<8x256xf32>
    %c0_189 = arith.constant 0 : index
    %c53 = arith.constant 53 : index
    %468 = vector.load %arg10[%c0_189, %c53] : memref<8x81xf32, #tpu.memory_space<vmem>>, vector<8x1xf32>
    %469 = vector.broadcast %468 : vector<8x1xf32> to vector<8x256xf32>
    %470 = arith.mulf %467, %469 : vector<8x256xf32>
    %c53_190 = arith.constant 53 : index
    %c0_191 = arith.constant 0 : index
    %471 = vector.load %arg12[%c53_190, %c0_191] : memref<81x256xf32, #tpu.memory_space<vmem>>, vector<1x256xf32>
    %472 = vector.broadcast %471 : vector<1x256xf32> to vector<8x256xf32>
    %473 = arith.mulf %470, %472 : vector<8x256xf32>
    %474 = arith.addf %466, %473 : vector<8x256xf32>
    %c228_i32 = arith.constant 228 : i32
    %475 = tpu.dynamic_rotate %42 by %c228_i32 dim 1 : vector<8x256xf32>, i32 -> vector<8x256xf32>
    %c0_192 = arith.constant 0 : index
    %c54 = arith.constant 54 : index
    %476 = vector.load %arg10[%c0_192, %c54] : memref<8x81xf32, #tpu.memory_space<vmem>>, vector<8x1xf32>
    %477 = vector.broadcast %476 : vector<8x1xf32> to vector<8x256xf32>
    %478 = arith.mulf %475, %477 : vector<8x256xf32>
    %c54_193 = arith.constant 54 : index
    %c0_194 = arith.constant 0 : index
    %479 = vector.load %arg12[%c54_193, %c0_194] : memref<81x256xf32, #tpu.memory_space<vmem>>, vector<1x256xf32>
    %480 = vector.broadcast %479 : vector<1x256xf32> to vector<8x256xf32>
    %481 = arith.mulf %478, %480 : vector<8x256xf32>
    %482 = arith.addf %474, %481 : vector<8x256xf32>
    %c227_i32 = arith.constant 227 : i32
    %483 = tpu.dynamic_rotate %42 by %c227_i32 dim 1 : vector<8x256xf32>, i32 -> vector<8x256xf32>
    %c0_195 = arith.constant 0 : index
    %c55 = arith.constant 55 : index
    %484 = vector.load %arg10[%c0_195, %c55] : memref<8x81xf32, #tpu.memory_space<vmem>>, vector<8x1xf32>
    %485 = vector.broadcast %484 : vector<8x1xf32> to vector<8x256xf32>
    %486 = arith.mulf %483, %485 : vector<8x256xf32>
    %c55_196 = arith.constant 55 : index
    %c0_197 = arith.constant 0 : index
    %487 = vector.load %arg12[%c55_196, %c0_197] : memref<81x256xf32, #tpu.memory_space<vmem>>, vector<1x256xf32>
    %488 = vector.broadcast %487 : vector<1x256xf32> to vector<8x256xf32>
    %489 = arith.mulf %486, %488 : vector<8x256xf32>
    %490 = arith.addf %482, %489 : vector<8x256xf32>
    %c226_i32 = arith.constant 226 : i32
    %491 = tpu.dynamic_rotate %42 by %c226_i32 dim 1 : vector<8x256xf32>, i32 -> vector<8x256xf32>
    %c0_198 = arith.constant 0 : index
    %c56 = arith.constant 56 : index
    %492 = vector.load %arg10[%c0_198, %c56] : memref<8x81xf32, #tpu.memory_space<vmem>>, vector<8x1xf32>
    %493 = vector.broadcast %492 : vector<8x1xf32> to vector<8x256xf32>
    %494 = arith.mulf %491, %493 : vector<8x256xf32>
    %c56_199 = arith.constant 56 : index
    %c0_200 = arith.constant 0 : index
    %495 = vector.load %arg12[%c56_199, %c0_200] : memref<81x256xf32, #tpu.memory_space<vmem>>, vector<1x256xf32>
    %496 = vector.broadcast %495 : vector<1x256xf32> to vector<8x256xf32>
    %497 = arith.mulf %494, %496 : vector<8x256xf32>
    %498 = arith.addf %490, %497 : vector<8x256xf32>
    %c225_i32 = arith.constant 225 : i32
    %499 = tpu.dynamic_rotate %42 by %c225_i32 dim 1 : vector<8x256xf32>, i32 -> vector<8x256xf32>
    %c0_201 = arith.constant 0 : index
    %c57 = arith.constant 57 : index
    %500 = vector.load %arg10[%c0_201, %c57] : memref<8x81xf32, #tpu.memory_space<vmem>>, vector<8x1xf32>
    %501 = vector.broadcast %500 : vector<8x1xf32> to vector<8x256xf32>
    %502 = arith.mulf %499, %501 : vector<8x256xf32>
    %c57_202 = arith.constant 57 : index
    %c0_203 = arith.constant 0 : index
    %503 = vector.load %arg12[%c57_202, %c0_203] : memref<81x256xf32, #tpu.memory_space<vmem>>, vector<1x256xf32>
    %504 = vector.broadcast %503 : vector<1x256xf32> to vector<8x256xf32>
    %505 = arith.mulf %502, %504 : vector<8x256xf32>
    %506 = arith.addf %498, %505 : vector<8x256xf32>
    %c224_i32 = arith.constant 224 : i32
    %507 = tpu.dynamic_rotate %42 by %c224_i32 dim 1 : vector<8x256xf32>, i32 -> vector<8x256xf32>
    %c0_204 = arith.constant 0 : index
    %c58 = arith.constant 58 : index
    %508 = vector.load %arg10[%c0_204, %c58] : memref<8x81xf32, #tpu.memory_space<vmem>>, vector<8x1xf32>
    %509 = vector.broadcast %508 : vector<8x1xf32> to vector<8x256xf32>
    %510 = arith.mulf %507, %509 : vector<8x256xf32>
    %c58_205 = arith.constant 58 : index
    %c0_206 = arith.constant 0 : index
    %511 = vector.load %arg12[%c58_205, %c0_206] : memref<81x256xf32, #tpu.memory_space<vmem>>, vector<1x256xf32>
    %512 = vector.broadcast %511 : vector<1x256xf32> to vector<8x256xf32>
    %513 = arith.mulf %510, %512 : vector<8x256xf32>
    %514 = arith.addf %506, %513 : vector<8x256xf32>
    %c223_i32 = arith.constant 223 : i32
    %515 = tpu.dynamic_rotate %42 by %c223_i32 dim 1 : vector<8x256xf32>, i32 -> vector<8x256xf32>
    %c0_207 = arith.constant 0 : index
    %c59 = arith.constant 59 : index
    %516 = vector.load %arg10[%c0_207, %c59] : memref<8x81xf32, #tpu.memory_space<vmem>>, vector<8x1xf32>
    %517 = vector.broadcast %516 : vector<8x1xf32> to vector<8x256xf32>
    %518 = arith.mulf %515, %517 : vector<8x256xf32>
    %c59_208 = arith.constant 59 : index
    %c0_209 = arith.constant 0 : index
    %519 = vector.load %arg12[%c59_208, %c0_209] : memref<81x256xf32, #tpu.memory_space<vmem>>, vector<1x256xf32>
    %520 = vector.broadcast %519 : vector<1x256xf32> to vector<8x256xf32>
    %521 = arith.mulf %518, %520 : vector<8x256xf32>
    %522 = arith.addf %514, %521 : vector<8x256xf32>
    %c222_i32 = arith.constant 222 : i32
    %523 = tpu.dynamic_rotate %42 by %c222_i32 dim 1 : vector<8x256xf32>, i32 -> vector<8x256xf32>
    %c0_210 = arith.constant 0 : index
    %c60 = arith.constant 60 : index
    %524 = vector.load %arg10[%c0_210, %c60] : memref<8x81xf32, #tpu.memory_space<vmem>>, vector<8x1xf32>
    %525 = vector.broadcast %524 : vector<8x1xf32> to vector<8x256xf32>
    %526 = arith.mulf %523, %525 : vector<8x256xf32>
    %c60_211 = arith.constant 60 : index
    %c0_212 = arith.constant 0 : index
    %527 = vector.load %arg12[%c60_211, %c0_212] : memref<81x256xf32, #tpu.memory_space<vmem>>, vector<1x256xf32>
    %528 = vector.broadcast %527 : vector<1x256xf32> to vector<8x256xf32>
    %529 = arith.mulf %526, %528 : vector<8x256xf32>
    %530 = arith.addf %522, %529 : vector<8x256xf32>
    %c221_i32 = arith.constant 221 : i32
    %531 = tpu.dynamic_rotate %42 by %c221_i32 dim 1 : vector<8x256xf32>, i32 -> vector<8x256xf32>
    %c0_213 = arith.constant 0 : index
    %c61 = arith.constant 61 : index
    %532 = vector.load %arg10[%c0_213, %c61] : memref<8x81xf32, #tpu.memory_space<vmem>>, vector<8x1xf32>
    %533 = vector.broadcast %532 : vector<8x1xf32> to vector<8x256xf32>
    %534 = arith.mulf %531, %533 : vector<8x256xf32>
    %c61_214 = arith.constant 61 : index
    %c0_215 = arith.constant 0 : index
    %535 = vector.load %arg12[%c61_214, %c0_215] : memref<81x256xf32, #tpu.memory_space<vmem>>, vector<1x256xf32>
    %536 = vector.broadcast %535 : vector<1x256xf32> to vector<8x256xf32>
    %537 = arith.mulf %534, %536 : vector<8x256xf32>
    %538 = arith.addf %530, %537 : vector<8x256xf32>
    %c220_i32 = arith.constant 220 : i32
    %539 = tpu.dynamic_rotate %42 by %c220_i32 dim 1 : vector<8x256xf32>, i32 -> vector<8x256xf32>
    %c0_216 = arith.constant 0 : index
    %c62 = arith.constant 62 : index
    %540 = vector.load %arg10[%c0_216, %c62] : memref<8x81xf32, #tpu.memory_space<vmem>>, vector<8x1xf32>
    %541 = vector.broadcast %540 : vector<8x1xf32> to vector<8x256xf32>
    %542 = arith.mulf %539, %541 : vector<8x256xf32>
    %c62_217 = arith.constant 62 : index
    %c0_218 = arith.constant 0 : index
    %543 = vector.load %arg12[%c62_217, %c0_218] : memref<81x256xf32, #tpu.memory_space<vmem>>, vector<1x256xf32>
    %544 = vector.broadcast %543 : vector<1x256xf32> to vector<8x256xf32>
    %545 = arith.mulf %542, %544 : vector<8x256xf32>
    %546 = arith.addf %538, %545 : vector<8x256xf32>
    %c212_i32 = arith.constant 212 : i32
    %547 = tpu.dynamic_rotate %42 by %c212_i32 dim 1 : vector<8x256xf32>, i32 -> vector<8x256xf32>
    %c0_219 = arith.constant 0 : index
    %c63 = arith.constant 63 : index
    %548 = vector.load %arg10[%c0_219, %c63] : memref<8x81xf32, #tpu.memory_space<vmem>>, vector<8x1xf32>
    %549 = vector.broadcast %548 : vector<8x1xf32> to vector<8x256xf32>
    %550 = arith.mulf %547, %549 : vector<8x256xf32>
    %c63_220 = arith.constant 63 : index
    %c0_221 = arith.constant 0 : index
    %551 = vector.load %arg12[%c63_220, %c0_221] : memref<81x256xf32, #tpu.memory_space<vmem>>, vector<1x256xf32>
    %552 = vector.broadcast %551 : vector<1x256xf32> to vector<8x256xf32>
    %553 = arith.mulf %550, %552 : vector<8x256xf32>
    %554 = arith.addf %546, %553 : vector<8x256xf32>
    %c211_i32 = arith.constant 211 : i32
    %555 = tpu.dynamic_rotate %42 by %c211_i32 dim 1 : vector<8x256xf32>, i32 -> vector<8x256xf32>
    %c0_222 = arith.constant 0 : index
    %c64 = arith.constant 64 : index
    %556 = vector.load %arg10[%c0_222, %c64] : memref<8x81xf32, #tpu.memory_space<vmem>>, vector<8x1xf32>
    %557 = vector.broadcast %556 : vector<8x1xf32> to vector<8x256xf32>
    %558 = arith.mulf %555, %557 : vector<8x256xf32>
    %c64_223 = arith.constant 64 : index
    %c0_224 = arith.constant 0 : index
    %559 = vector.load %arg12[%c64_223, %c0_224] : memref<81x256xf32, #tpu.memory_space<vmem>>, vector<1x256xf32>
    %560 = vector.broadcast %559 : vector<1x256xf32> to vector<8x256xf32>
    %561 = arith.mulf %558, %560 : vector<8x256xf32>
    %562 = arith.addf %554, %561 : vector<8x256xf32>
    %c210_i32 = arith.constant 210 : i32
    %563 = tpu.dynamic_rotate %42 by %c210_i32 dim 1 : vector<8x256xf32>, i32 -> vector<8x256xf32>
    %c0_225 = arith.constant 0 : index
    %c65 = arith.constant 65 : index
    %564 = vector.load %arg10[%c0_225, %c65] : memref<8x81xf32, #tpu.memory_space<vmem>>, vector<8x1xf32>
    %565 = vector.broadcast %564 : vector<8x1xf32> to vector<8x256xf32>
    %566 = arith.mulf %563, %565 : vector<8x256xf32>
    %c65_226 = arith.constant 65 : index
    %c0_227 = arith.constant 0 : index
    %567 = vector.load %arg12[%c65_226, %c0_227] : memref<81x256xf32, #tpu.memory_space<vmem>>, vector<1x256xf32>
    %568 = vector.broadcast %567 : vector<1x256xf32> to vector<8x256xf32>
    %569 = arith.mulf %566, %568 : vector<8x256xf32>
    %570 = arith.addf %562, %569 : vector<8x256xf32>
    %c209_i32 = arith.constant 209 : i32
    %571 = tpu.dynamic_rotate %42 by %c209_i32 dim 1 : vector<8x256xf32>, i32 -> vector<8x256xf32>
    %c0_228 = arith.constant 0 : index
    %c66 = arith.constant 66 : index
    %572 = vector.load %arg10[%c0_228, %c66] : memref<8x81xf32, #tpu.memory_space<vmem>>, vector<8x1xf32>
    %573 = vector.broadcast %572 : vector<8x1xf32> to vector<8x256xf32>
    %574 = arith.mulf %571, %573 : vector<8x256xf32>
    %c66_229 = arith.constant 66 : index
    %c0_230 = arith.constant 0 : index
    %575 = vector.load %arg12[%c66_229, %c0_230] : memref<81x256xf32, #tpu.memory_space<vmem>>, vector<1x256xf32>
    %576 = vector.broadcast %575 : vector<1x256xf32> to vector<8x256xf32>
    %577 = arith.mulf %574, %576 : vector<8x256xf32>
    %578 = arith.addf %570, %577 : vector<8x256xf32>
    %c208_i32 = arith.constant 208 : i32
    %579 = tpu.dynamic_rotate %42 by %c208_i32 dim 1 : vector<8x256xf32>, i32 -> vector<8x256xf32>
    %c0_231 = arith.constant 0 : index
    %c67 = arith.constant 67 : index
    %580 = vector.load %arg10[%c0_231, %c67] : memref<8x81xf32, #tpu.memory_space<vmem>>, vector<8x1xf32>
    %581 = vector.broadcast %580 : vector<8x1xf32> to vector<8x256xf32>
    %582 = arith.mulf %579, %581 : vector<8x256xf32>
    %c67_232 = arith.constant 67 : index
    %c0_233 = arith.constant 0 : index
    %583 = vector.load %arg12[%c67_232, %c0_233] : memref<81x256xf32, #tpu.memory_space<vmem>>, vector<1x256xf32>
    %584 = vector.broadcast %583 : vector<1x256xf32> to vector<8x256xf32>
    %585 = arith.mulf %582, %584 : vector<8x256xf32>
    %586 = arith.addf %578, %585 : vector<8x256xf32>
    %c207_i32 = arith.constant 207 : i32
    %587 = tpu.dynamic_rotate %42 by %c207_i32 dim 1 : vector<8x256xf32>, i32 -> vector<8x256xf32>
    %c0_234 = arith.constant 0 : index
    %c68 = arith.constant 68 : index
    %588 = vector.load %arg10[%c0_234, %c68] : memref<8x81xf32, #tpu.memory_space<vmem>>, vector<8x1xf32>
    %589 = vector.broadcast %588 : vector<8x1xf32> to vector<8x256xf32>
    %590 = arith.mulf %587, %589 : vector<8x256xf32>
    %c68_235 = arith.constant 68 : index
    %c0_236 = arith.constant 0 : index
    %591 = vector.load %arg12[%c68_235, %c0_236] : memref<81x256xf32, #tpu.memory_space<vmem>>, vector<1x256xf32>
    %592 = vector.broadcast %591 : vector<1x256xf32> to vector<8x256xf32>
    %593 = arith.mulf %590, %592 : vector<8x256xf32>
    %594 = arith.addf %586, %593 : vector<8x256xf32>
    %c206_i32 = arith.constant 206 : i32
    %595 = tpu.dynamic_rotate %42 by %c206_i32 dim 1 : vector<8x256xf32>, i32 -> vector<8x256xf32>
    %c0_237 = arith.constant 0 : index
    %c69 = arith.constant 69 : index
    %596 = vector.load %arg10[%c0_237, %c69] : memref<8x81xf32, #tpu.memory_space<vmem>>, vector<8x1xf32>
    %597 = vector.broadcast %596 : vector<8x1xf32> to vector<8x256xf32>
    %598 = arith.mulf %595, %597 : vector<8x256xf32>
    %c69_238 = arith.constant 69 : index
    %c0_239 = arith.constant 0 : index
    %599 = vector.load %arg12[%c69_238, %c0_239] : memref<81x256xf32, #tpu.memory_space<vmem>>, vector<1x256xf32>
    %600 = vector.broadcast %599 : vector<1x256xf32> to vector<8x256xf32>
    %601 = arith.mulf %598, %600 : vector<8x256xf32>
    %602 = arith.addf %594, %601 : vector<8x256xf32>
    %c205_i32 = arith.constant 205 : i32
    %603 = tpu.dynamic_rotate %42 by %c205_i32 dim 1 : vector<8x256xf32>, i32 -> vector<8x256xf32>
    %c0_240 = arith.constant 0 : index
    %c70 = arith.constant 70 : index
    %604 = vector.load %arg10[%c0_240, %c70] : memref<8x81xf32, #tpu.memory_space<vmem>>, vector<8x1xf32>
    %605 = vector.broadcast %604 : vector<8x1xf32> to vector<8x256xf32>
    %606 = arith.mulf %603, %605 : vector<8x256xf32>
    %c70_241 = arith.constant 70 : index
    %c0_242 = arith.constant 0 : index
    %607 = vector.load %arg12[%c70_241, %c0_242] : memref<81x256xf32, #tpu.memory_space<vmem>>, vector<1x256xf32>
    %608 = vector.broadcast %607 : vector<1x256xf32> to vector<8x256xf32>
    %609 = arith.mulf %606, %608 : vector<8x256xf32>
    %610 = arith.addf %602, %609 : vector<8x256xf32>
    %c204_i32 = arith.constant 204 : i32
    %611 = tpu.dynamic_rotate %42 by %c204_i32 dim 1 : vector<8x256xf32>, i32 -> vector<8x256xf32>
    %c0_243 = arith.constant 0 : index
    %c71 = arith.constant 71 : index
    %612 = vector.load %arg10[%c0_243, %c71] : memref<8x81xf32, #tpu.memory_space<vmem>>, vector<8x1xf32>
    %613 = vector.broadcast %612 : vector<8x1xf32> to vector<8x256xf32>
    %614 = arith.mulf %611, %613 : vector<8x256xf32>
    %c71_244 = arith.constant 71 : index
    %c0_245 = arith.constant 0 : index
    %615 = vector.load %arg12[%c71_244, %c0_245] : memref<81x256xf32, #tpu.memory_space<vmem>>, vector<1x256xf32>
    %616 = vector.broadcast %615 : vector<1x256xf32> to vector<8x256xf32>
    %617 = arith.mulf %614, %616 : vector<8x256xf32>
    %618 = arith.addf %610, %617 : vector<8x256xf32>
    %c196_i32 = arith.constant 196 : i32
    %619 = tpu.dynamic_rotate %42 by %c196_i32 dim 1 : vector<8x256xf32>, i32 -> vector<8x256xf32>
    %c0_246 = arith.constant 0 : index
    %c72 = arith.constant 72 : index
    %620 = vector.load %arg10[%c0_246, %c72] : memref<8x81xf32, #tpu.memory_space<vmem>>, vector<8x1xf32>
    %621 = vector.broadcast %620 : vector<8x1xf32> to vector<8x256xf32>
    %622 = arith.mulf %619, %621 : vector<8x256xf32>
    %c72_247 = arith.constant 72 : index
    %c0_248 = arith.constant 0 : index
    %623 = vector.load %arg12[%c72_247, %c0_248] : memref<81x256xf32, #tpu.memory_space<vmem>>, vector<1x256xf32>
    %624 = vector.broadcast %623 : vector<1x256xf32> to vector<8x256xf32>
    %625 = arith.mulf %622, %624 : vector<8x256xf32>
    %626 = arith.addf %618, %625 : vector<8x256xf32>
    %c195_i32 = arith.constant 195 : i32
    %627 = tpu.dynamic_rotate %42 by %c195_i32 dim 1 : vector<8x256xf32>, i32 -> vector<8x256xf32>
    %c0_249 = arith.constant 0 : index
    %c73 = arith.constant 73 : index
    %628 = vector.load %arg10[%c0_249, %c73] : memref<8x81xf32, #tpu.memory_space<vmem>>, vector<8x1xf32>
    %629 = vector.broadcast %628 : vector<8x1xf32> to vector<8x256xf32>
    %630 = arith.mulf %627, %629 : vector<8x256xf32>
    %c73_250 = arith.constant 73 : index
    %c0_251 = arith.constant 0 : index
    %631 = vector.load %arg12[%c73_250, %c0_251] : memref<81x256xf32, #tpu.memory_space<vmem>>, vector<1x256xf32>
    %632 = vector.broadcast %631 : vector<1x256xf32> to vector<8x256xf32>
    %633 = arith.mulf %630, %632 : vector<8x256xf32>
    %634 = arith.addf %626, %633 : vector<8x256xf32>
    %c194_i32 = arith.constant 194 : i32
    %635 = tpu.dynamic_rotate %42 by %c194_i32 dim 1 : vector<8x256xf32>, i32 -> vector<8x256xf32>
    %c0_252 = arith.constant 0 : index
    %c74 = arith.constant 74 : index
    %636 = vector.load %arg10[%c0_252, %c74] : memref<8x81xf32, #tpu.memory_space<vmem>>, vector<8x1xf32>
    %637 = vector.broadcast %636 : vector<8x1xf32> to vector<8x256xf32>
    %638 = arith.mulf %635, %637 : vector<8x256xf32>
    %c74_253 = arith.constant 74 : index
    %c0_254 = arith.constant 0 : index
    %639 = vector.load %arg12[%c74_253, %c0_254] : memref<81x256xf32, #tpu.memory_space<vmem>>, vector<1x256xf32>
    %640 = vector.broadcast %639 : vector<1x256xf32> to vector<8x256xf32>
    %641 = arith.mulf %638, %640 : vector<8x256xf32>
    %642 = arith.addf %634, %641 : vector<8x256xf32>
    %c193_i32 = arith.constant 193 : i32
    %643 = tpu.dynamic_rotate %42 by %c193_i32 dim 1 : vector<8x256xf32>, i32 -> vector<8x256xf32>
    %c0_255 = arith.constant 0 : index
    %c75 = arith.constant 75 : index
    %644 = vector.load %arg10[%c0_255, %c75] : memref<8x81xf32, #tpu.memory_space<vmem>>, vector<8x1xf32>
    %645 = vector.broadcast %644 : vector<8x1xf32> to vector<8x256xf32>
    %646 = arith.mulf %643, %645 : vector<8x256xf32>
    %c75_256 = arith.constant 75 : index
    %c0_257 = arith.constant 0 : index
    %647 = vector.load %arg12[%c75_256, %c0_257] : memref<81x256xf32, #tpu.memory_space<vmem>>, vector<1x256xf32>
    %648 = vector.broadcast %647 : vector<1x256xf32> to vector<8x256xf32>
    %649 = arith.mulf %646, %648 : vector<8x256xf32>
    %650 = arith.addf %642, %649 : vector<8x256xf32>
    %c192_i32 = arith.constant 192 : i32
    %651 = tpu.dynamic_rotate %42 by %c192_i32 dim 1 : vector<8x256xf32>, i32 -> vector<8x256xf32>
    %c0_258 = arith.constant 0 : index
    %c76 = arith.constant 76 : index
    %652 = vector.load %arg10[%c0_258, %c76] : memref<8x81xf32, #tpu.memory_space<vmem>>, vector<8x1xf32>
    %653 = vector.broadcast %652 : vector<8x1xf32> to vector<8x256xf32>
    %654 = arith.mulf %651, %653 : vector<8x256xf32>
    %c76_259 = arith.constant 76 : index
    %c0_260 = arith.constant 0 : index
    %655 = vector.load %arg12[%c76_259, %c0_260] : memref<81x256xf32, #tpu.memory_space<vmem>>, vector<1x256xf32>
    %656 = vector.broadcast %655 : vector<1x256xf32> to vector<8x256xf32>
    %657 = arith.mulf %654, %656 : vector<8x256xf32>
    %658 = arith.addf %650, %657 : vector<8x256xf32>
    %c191_i32 = arith.constant 191 : i32
    %659 = tpu.dynamic_rotate %42 by %c191_i32 dim 1 : vector<8x256xf32>, i32 -> vector<8x256xf32>
    %c0_261 = arith.constant 0 : index
    %c77 = arith.constant 77 : index
    %660 = vector.load %arg10[%c0_261, %c77] : memref<8x81xf32, #tpu.memory_space<vmem>>, vector<8x1xf32>
    %661 = vector.broadcast %660 : vector<8x1xf32> to vector<8x256xf32>
    %662 = arith.mulf %659, %661 : vector<8x256xf32>
    %c77_262 = arith.constant 77 : index
    %c0_263 = arith.constant 0 : index
    %663 = vector.load %arg12[%c77_262, %c0_263] : memref<81x256xf32, #tpu.memory_space<vmem>>, vector<1x256xf32>
    %664 = vector.broadcast %663 : vector<1x256xf32> to vector<8x256xf32>
    %665 = arith.mulf %662, %664 : vector<8x256xf32>
    %666 = arith.addf %658, %665 : vector<8x256xf32>
    %c190_i32 = arith.constant 190 : i32
    %667 = tpu.dynamic_rotate %42 by %c190_i32 dim 1 : vector<8x256xf32>, i32 -> vector<8x256xf32>
    %c0_264 = arith.constant 0 : index
    %c78 = arith.constant 78 : index
    %668 = vector.load %arg10[%c0_264, %c78] : memref<8x81xf32, #tpu.memory_space<vmem>>, vector<8x1xf32>
    %669 = vector.broadcast %668 : vector<8x1xf32> to vector<8x256xf32>
    %670 = arith.mulf %667, %669 : vector<8x256xf32>
    %c78_265 = arith.constant 78 : index
    %c0_266 = arith.constant 0 : index
    %671 = vector.load %arg12[%c78_265, %c0_266] : memref<81x256xf32, #tpu.memory_space<vmem>>, vector<1x256xf32>
    %672 = vector.broadcast %671 : vector<1x256xf32> to vector<8x256xf32>
    %673 = arith.mulf %670, %672 : vector<8x256xf32>
    %674 = arith.addf %666, %673 : vector<8x256xf32>
    %c189_i32 = arith.constant 189 : i32
    %675 = tpu.dynamic_rotate %42 by %c189_i32 dim 1 : vector<8x256xf32>, i32 -> vector<8x256xf32>
    %c0_267 = arith.constant 0 : index
    %c79 = arith.constant 79 : index
    %676 = vector.load %arg10[%c0_267, %c79] : memref<8x81xf32, #tpu.memory_space<vmem>>, vector<8x1xf32>
    %677 = vector.broadcast %676 : vector<8x1xf32> to vector<8x256xf32>
    %678 = arith.mulf %675, %677 : vector<8x256xf32>
    %c79_268 = arith.constant 79 : index
    %c0_269 = arith.constant 0 : index
    %679 = vector.load %arg12[%c79_268, %c0_269] : memref<81x256xf32, #tpu.memory_space<vmem>>, vector<1x256xf32>
    %680 = vector.broadcast %679 : vector<1x256xf32> to vector<8x256xf32>
    %681 = arith.mulf %678, %680 : vector<8x256xf32>
    %682 = arith.addf %674, %681 : vector<8x256xf32>
    %c188_i32 = arith.constant 188 : i32
    %683 = tpu.dynamic_rotate %42 by %c188_i32 dim 1 : vector<8x256xf32>, i32 -> vector<8x256xf32>
    %c0_270 = arith.constant 0 : index
    %c80 = arith.constant 80 : index
    %684 = vector.load %arg10[%c0_270, %c80] : memref<8x81xf32, #tpu.memory_space<vmem>>, vector<8x1xf32>
    %685 = vector.broadcast %684 : vector<8x1xf32> to vector<8x256xf32>
    %686 = arith.mulf %683, %685 : vector<8x256xf32>
    %c80_271 = arith.constant 80 : index
    %c0_272 = arith.constant 0 : index
    %687 = vector.load %arg12[%c80_271, %c0_272] : memref<81x256xf32, #tpu.memory_space<vmem>>, vector<1x256xf32>
    %688 = vector.broadcast %687 : vector<1x256xf32> to vector<8x256xf32>
    %689 = arith.mulf %686, %688 : vector<8x256xf32>
    %690 = arith.addf %682, %689 : vector<8x256xf32>
    %c0_273 = arith.constant 0 : index
    %c0_274 = arith.constant 0 : index
    %691 = vector.load %arg11[%c0_273, %c0_274] : memref<8x1xf32, #tpu.memory_space<vmem>>, vector<8x1xf32>
    %692 = vector.broadcast %691 : vector<8x1xf32> to vector<8x256xf32>
    %693 = arith.addf %690, %692 : vector<8x256xf32>
    %cst_275 = arith.constant 0.000000e+00 : f32
    %694 = vector.broadcast %cst_275 : f32 to vector<8x256xf32>
    %695 = arith.maximumf %693, %694 : vector<8x256xf32>
    %c0_276 = arith.constant 0 : index
    %c0_277 = arith.constant 0 : index
    %696 = vector.load %arg13[%c0_276, %c0_277] : memref<8x1xf32, #tpu.memory_space<vmem>>, vector<8x1xf32>
    %697 = vector.broadcast %696 : vector<8x1xf32> to vector<8x256xf32>
    %698 = arith.mulf %695, %697 : vector<8x256xf32>
    %cst_278 = arith.constant dense<0.000000e+00> : vector<256xf32>
    %699 = vector.multi_reduction <add>, %698, %cst_278 [0] : vector<8x256xf32> to vector<256xf32>
    %700 = vector.shape_cast %699 : vector<256xf32> to vector<1x256xf32>
    %c0_279 = arith.constant 0 : index
    %c0_280 = arith.constant 0 : index
    %701 = vector.load %arg14[%c0_279, %c0_280] : memref<1x1xf32, #tpu.memory_space<vmem>>, vector<1x1xf32>
    %702 = vector.broadcast %701 : vector<1x1xf32> to vector<1x256xf32>
    %703 = arith.addf %700, %702 : vector<1x256xf32>
    %cst_281 = arith.constant 0.000000e+00 : f32
    %704 = vector.broadcast %cst_281 : f32 to vector<1x256xf32>
    %705 = arith.maximumf %703, %704 : vector<1x256xf32>
    %706 = arith.negf %705 : vector<1x256xf32>
    %707 = math.exp %706 : vector<1x256xf32>
    %cst_282 = arith.constant 1.000000e+00 : f32
    %708 = vector.broadcast %cst_282 : f32 to vector<1x256xf32>
    %709 = arith.addf %708, %707 : vector<1x256xf32>
    %710 = arith.divf %708, %709 : vector<1x256xf32>
    %711 = vector.broadcast %35 : vector<8x1xf32> to vector<8x256xf32>
    %712 = vector.broadcast %710 : vector<1x256xf32> to vector<8x256xf32>
    %713 = arith.mulf %711, %712 : vector<8x256xf32>
    %cst_283 = arith.constant 1.000000e+00 : f32
    %714 = vector.broadcast %cst_283 : f32 to vector<8x256xf32>
    %715 = arith.addf %714, %713 : vector<8x256xf32>
    %716 = arith.mulf %8, %715 : vector<8x256xf32>
    %c0_284 = arith.constant 0 : index
    %c0_285 = arith.constant 0 : index
    %c0_286 = arith.constant 0 : index
    %717 = vector.load %arg15[%c0_284, %c0_285, %c0_286] : memref<1x8x256xf32, #tpu.memory_space<vmem>>, vector<1x8x256xf32>
    %718 = vector.shape_cast %717 : vector<1x8x256xf32> to vector<8x256xf32>
    %719 = vector.shape_cast %716 : vector<8x256xf32> to vector<1x8x256xf32>
    tpu.vector_store %arg15[%c0_284, %c0_285, %c0_286], %719 {strides = array<i32>} : memref<1x8x256xf32, #tpu.memory_space<vmem>>, vector<1x8x256xf32>,
    return
  }
  func.func @transform_0(%arg0: i32) -> (i32, i32, i32) {
    %c0_i32 = arith.constant 0 : i32
    %c0_i32_0 = arith.constant 0 : i32
    %c0_i32_1 = arith.constant 0 : i32
    return %arg0, %c0_i32, %c0_i32_0 : i32, i32, i32
  }
  func.func @transform_1(%arg0: i32) -> (i32, i32) {
    %c0_i32 = arith.constant 0 : i32
    %c0_i32_0 = arith.constant 0 : i32
    %c0_i32_1 = arith.constant 0 : i32
    return %c0_i32, %c0_i32_0 : i32, i32
  }
  func.func @transform_2(%arg0: i32) -> (i32, i32) {
    %c0_i32 = arith.constant 0 : i32
    %c0_i32_0 = arith.constant 0 : i32
    %c0_i32_1 = arith.constant 0 : i32
    return %c0_i32, %c0_i32_0 : i32, i32
  }
  func.func @transform_3(%arg0: i32) -> (i32, i32) {
    %c0_i32 = arith.constant 0 : i32
    %c0_i32_0 = arith.constant 0 : i32
    %c0_i32_1 = arith.constant 0 : i32
    return %c0_i32, %c0_i32_0 : i32, i32
  }
  func.func @transform_4(%arg0: i32) -> (i32, i32) {
    %c0_i32 = arith.constant 0 : i32
    %c0_i32_0 = arith.constant 0 : i32
    %c0_i32_1 = arith.constant 0 : i32
    return %c0_i32, %c0_i32_0 : i32, i32
  }
  func.func @transform_5(%arg0: i32) -> (i32, i32) {
    %c0_i32 = arith.constant 0 : i32
    %c0_i32_0 = arith.constant 0 : i32
    %c0_i32_1 = arith.constant 0 : i32
    return %c0_i32, %c0_i32_0 : i32, i32
  }
  func.func @transform_6(%arg0: i32) -> (i32, i32) {
    %c0_i32 = arith.constant 0 : i32
    %c0_i32_0 = arith.constant 0 : i32
    %c0_i32_1 = arith.constant 0 : i32
    return %c0_i32, %c0_i32_0 : i32, i32
  }
  func.func @transform_7(%arg0: i32) -> (i32, i32) {
    %c0_i32 = arith.constant 0 : i32
    %c0_i32_0 = arith.constant 0 : i32
    %c0_i32_1 = arith.constant 0 : i32
    return %c0_i32, %c0_i32_0 : i32, i32
  }
  func.func @transform_8(%arg0: i32) -> (i32, i32) {
    %c0_i32 = arith.constant 0 : i32
    %c0_i32_0 = arith.constant 0 : i32
    %c0_i32_1 = arith.constant 0 : i32
    return %c0_i32, %c0_i32_0 : i32, i32
  }
  func.func @transform_9(%arg0: i32) -> (i32, i32) {
    %c0_i32 = arith.constant 0 : i32
    %c0_i32_0 = arith.constant 0 : i32
    %c0_i32_1 = arith.constant 0 : i32
    return %c0_i32, %c0_i32_0 : i32, i32
  }
  func.func @transform_10(%arg0: i32) -> (i32, i32) {
    %c0_i32 = arith.constant 0 : i32
    %c0_i32_0 = arith.constant 0 : i32
    %c0_i32_1 = arith.constant 0 : i32
    return %c0_i32, %c0_i32_0 : i32, i32
  }
  func.func @transform_11(%arg0: i32) -> (i32, i32) {
    %c0_i32 = arith.constant 0 : i32
    %c0_i32_0 = arith.constant 0 : i32
    %c0_i32_1 = arith.constant 0 : i32
    return %c0_i32, %c0_i32_0 : i32, i32
  }
  func.func @transform_12(%arg0: i32) -> (i32, i32) {
    %c0_i32 = arith.constant 0 : i32
    %c0_i32_0 = arith.constant 0 : i32
    %c0_i32_1 = arith.constant 0 : i32
    return %c0_i32, %c0_i32_0 : i32, i32
  }
  func.func @transform_13(%arg0: i32) -> (i32, i32) {
    %c0_i32 = arith.constant 0 : i32
    %c0_i32_0 = arith.constant 0 : i32
    %c0_i32_1 = arith.constant 0 : i32
    return %c0_i32, %c0_i32_0 : i32, i32
  }
  func.func @transform_14(%arg0: i32) -> (i32, i32, i32) {
    %c0_i32 = arith.constant 0 : i32
    %c0_i32_0 = arith.constant 0 : i32
    %c0_i32_1 = arith.constant 0 : i32
    return %arg0, %c0_i32, %c0_i32_0 : i32, i32, i32
  }
}

</mosaic_0001>

<bundles_post_ra>
// kernel: tpu_custom_call.1
= control target key start
LH: loop header
LB: loop body
LE: loop exit
PB: predicated region body
PF: predicated region fallthrough
CT: control target
= control target key end

     0   :  { %s4793_s0 = inlined_call_operand.hbm [shape: f32[2,72,256], index: 0, kind: input, shape index: {}]   ;;  %s4794_s1 = inlined_call_operand.vmem [shape: f32[8,72], index: 1, kind: input, shape index: {}]   ;;  %s4795_s2 = inlined_call_operand.vmem [shape: f32[8,1], index: 2, kind: input, shape index: {}]   ;;  %s4796_s3 = inlined_call_operand.vmem [shape: f32[8,8], index: 3, kind: input, shape index: {}]   ;;  %s4797_s4 = inlined_call_operand.vmem [shape: f32[1,8], index: 4, kind: input, shape index: {}]   ;;  %s4798_s5 = inlined_call_operand.vmem [shape: f32[8,8], index: 5, kind: input, shape index: {}]   ;;  %s4799_s6 = inlined_call_operand.vmem [shape: f32[8,1], index: 6, kind: input, shape index: {}]   ;;  %s4800_s7 = inlined_call_operand.vmem [shape: f32[8,8], index: 7, kind: input, shape index: {}]   ;;  %s4801_s8 = inlined_call_operand.vmem [shape: f32[8,1], index: 8, kind: input, shape index: {}]   ;;  %s4802_s9 = inlined_call_operand.vmem [shape: f32[8,81], index: 9, kind: input, shape index: {}]   ;;  %s4803_s10 = inlined_call_operand.vmem [shape: f32[8,1], index: 10, kind: input, shape index: {}]   ;;  %s4804_s11 = inlined_call_operand.hbm [shape: f32[81,256], index: 11, kind: input, shape index: {}]   ;;  %s4805_s12 = inlined_call_operand.vmem [shape: f32[8,1], index: 12, kind: input, shape index: {}]   ;;  %s4806_s13 = inlined_call_operand.<no memory space> [shape: f32[1,1], index: 13, kind: input, shape index: {}]   ;;  %s4807_s14 = inlined_call_operand.hbm [shape: f32[2,8,256], index: 14, kind: output, shape index: {}]  }
   0x1   :  { %4862 = sst [smem:[#allocation51_spill]] %s4803_s10  ;;  %v19_v0 = vstv %s4806_s13 }
   0x2   :  { %4863 = sst [smem:[#allocation52_spill]] %s4804_s11  ;;  %20 = vst [vmem:[#allocation2] sm:$0x1] %v19_v0 }
   0x3   :  { %4864 = sst [smem:[#allocation53_spill]] %s4807_s14 }
   0x4   :  { %21 = vsyncpa [#allocation4], 0 }
   0x5   :  { %23 = vsyncpa [#allocation4 + $0x1], 0 }
   0x6   :  { %24 = vsyncpa [#allocation7], 0 }
   0x7   :  { %25 = vsyncpa [#allocation5], 0 }
   0x8   :  { %27 = vsyncpa [#allocation5 + $0x1], 0  ;;  %s3452_s15 = smov 0   ;;  %s3454_s16 = smov 0  }
   0x9   :  { %s3456_s17 = smov 0   ;;  %s3458_s18 = smov 0  }
   0xa LB: > { %4865 = sst [smem:[#allocation12_spill]] %s3204_s15  ;;  %s3473_s13 = sadd.s32 4294967295, %s3216_s18   ;;  %s3216_s18 = sphi %s3458_s18, %s4962_s18   ;;  %s3212_s17 = sphi %s3456_s17, %s4964_s17   ;;  %s3208_s16 = sphi %s3454_s16, %s4966_s16   ;;  %s3204_s15 = sphi %s3452_s15, %s4965_s15  }
   0xb   : > { %4866 = sst [smem:[#allocation13_spill]] %s3212_s17  ;;  %s2748_s19 = sadd.s32 4294967294, %s3216_s18  }
   0xc   : > { %4867 = sst [smem:[#allocation14_spill]] %s3216_s18  ;;  %p53_p0 = scmp.ne.s32.totalorder %s3208_s16, %s3204_s15 }
   0xd   : > { %p54_p1 = scmp.eq.s32.totalorder %s3473_s13, 0  ;;  %p350_p2 = scmp.eq.s32.totalorder %s3473_s13, 1 }
   0xe   : > { %p356_p3 = scmp.eq.s32.totalorder %s2748_s19, 1  ;;  %p2749_p5 = scmp.ge.s32.totalorder %s3216_s18, 1 }
   0xf   : > { %p3482_p4 = por %p54_p1, %p53_p0  ;;  %p363_p7 = scmp.lt.s32.totalorder %s3216_s18, 3 }
  0x10   : > { %p3487_p6 = por %p356_p3, %p53_p0  ;;  %s4871_s11 = sld [smem:[#allocation52_spill]] }
  0x11   : > { %p3495_p8 = pnand %p2749_p5, %p363_p7  ;;  %s3218_s26 = smov [#allocation6]  }
  0x12   : > { %s4869_s21 = scalar_select %p3487_p6, 1, 0 }
  0x13   : > { %p2780_p9 = pneg %p3495_p8  ;;  %s406_s27 = sshll.u32 %s3218_s26, 4  ;;  %s407_s27 = int_to_ptr.vmem [resolvable:$true] %s406_s27 }
  0x14   : > { %4870 = sst [smem:[#allocation15_spill]] %s4869_s21  ;;  %s3505_s28 = sadd.s32 1, %s3216_s18  }
  0x15   : > { %p2781_p10 = pnand %p2780_p9, %p54_p1  ;;  %4873 = sst [smem:[#allocation16_spill]] %s3505_s28 }
  0x16   : > { %s404_s24 = sshll.u32 %s4871_s11, 4  ;;  %s4811_s29 = smov 256   ;;  %s405_s24 = int_to_ptr.hbm [resolvable:$true] %s404_s24 }
  0x17   : > { %s4812_s30 = smov 16   ;;  %s37_s19 = ssub.s32 %s3216_s18, %s3505_s28 }
  0x18   : > { %2783 = dma.hbm_to_vmem [thread:$0]  (!%p2781_p10), %s405_s24, 2816, %s407_s27, [#allocation7], %s4811_s29, %s4811_s29, %s4812_s30  }
  0x19   : > { %s40_s22 = sadd.s32 1, %s3212_s17  ;;  %p38_p12 = scmp.eq.s32.totalorder %s37_s19, 0 }
  0x1a   : > { %p47_p13 = scmp.ne.s32.totalorder %s3212_s17, %s3208_s16  ;;  %p48_p0 = scmp.eq.s32.totalorder %s3216_s18, 0 }
  0x1b   : > { %p2793_p3 = scmp.lt.s32.totalorder %s3216_s18, 2  ;;  %s426_s11 = sand.u32 1, %s3212_s17  }
  0x1c   : > { %s3518_s23 = scalar_select %p38_p12, %s3212_s17, %s40_s22  }
  0x1d   : > { %p49_p5 = por %p48_p0, %p47_p13  ;;  %p3522_p7 = por %p350_p2, %p47_p13 }
  0x1e   : > { %4874 = sst [smem:[#allocation17_spill]] %s3518_s23  ;;  %s2770_s21 = smul.u32 144, %s3216_s18 }
  0x1f   : > { %s2769_s15 = smul.u32 144, %s426_s11  ;;  %p3531_p9 = pnand %p2793_p3, %p49_p5 }
  0x20   : > { %s435_s24 = scalar_lea.hbm %s4793_s0, %s2770_s21  ;;  %s427_s30 = scalar_lea.sflag [#allocation4], %s426_s11 }
  0x21   : > { %s436_s19 = sshll.u32 %s435_s24, 4  ;;  %s430_s22 = scalar_lea.vmem [#allocation3], %s2769_s15  ;;  %s437_s19 = int_to_ptr.hbm [resolvable:$true] %s436_s19 }
  0x22   : > { %s438_s29 = sshll.u32 %s430_s22, 4  ;;  %s3116_s23 = sshra.s32 %s437_s19, 4  ;;  %s439_s29 = int_to_ptr.vmem [resolvable:$true] %s438_s29  ;;  %s3117_s23 = int_to_ptr.hbm [resolvable:$true] %s3116_s23 }
  0x23   : > { %s3118_s17 = scalar_lea.hbm %s3117_s23, 144  ;;  %p3120_p10 = pneg %p3531_p9 }
  0x24   : > { %p3119_p2 = scmp.ne.s32.totalorder %s3117_s23, %s3118_s17  ;;  %s3123_s21 = scalar_lea.hbm %s4793_s0, 288 }
  0x25   : > { %p3124_p0 = scmp.lt.s32.totalorder %s3117_s23, %s4793_s0  ;;  %p3125_p3 = scmp.lt.s32.totalorder %s3123_s21, %s3118_s17 }
  0x26   : > { %p3121_p12 = pnand %p3120_p10, %p3119_p2 }
  0x27   : > { %p3126_p5 = por %p3125_p3, %p3124_p0 }
  0x28   : > { %p3122_p13 = pneg %p3121_p12 }
  0x2a   : > { %p3127_p11 = pnand %p3126_p5, %p3122_p13 }
  0x2c   : > { %3130 = shalt.err (!%p3127_p11)
}
  0x2d   : > { %s4877_s11 = smov 16   ;;  %s4878_s15 = smov 256  }
  0x2e   : > { %2787 = dma.hbm_to_vmem [thread:$0]  (!%p3531_p9), %s437_s19, 2304, %s439_s29, %s427_s30, %s4878_s15, %s4878_s15, %s4877_s11  }
  0x2f   : > { %450 = sbr.rel (%p3495_p8) target bundleno = 1139 (0x473), region = 76 }
  0x34   : > { %s3551_s24 = sand.u32 1, %s3208_s16  }
  0x35   : > { %s2771_s18 = smul.u32 144, %s3551_s24  ;;  %s453_s17 = scalar_lea.sflag [#allocation4], %s3551_s24 }
  0x37   : > { %s3555_s28 = scalar_lea.vmem [#allocation3], %s2771_s18 }
  0x38   : > { %3191 = dma.done.wait (%p3482_p4), %s453_s17, 2304  }
  0x39   : > { %3193 = vsyncadd (%p3482_p4), %s453_s17, 4294964992 }
  0x3a   : > { %3195 = dma.done.wait (%p54_p1), [#allocation7], 2816  }
  0x3b   : > { %3197 = vsyncadd (%p54_p1), [#allocation7], 4294964480  ;;  %v4817_v1 = vmov 0   ;;  %v523_v2 = vld [vmem:[%s3555_s28 + $0x80] sm:$0xff]  ;;  %v524_v3 = vld [vmem:[%s3555_s28 + $0x88] sm:$0xff]  ;;  %v3222_v19 = vmov 1  }
  0x3c   : > { %2985 = vset.pattern.permute.xlu1 %v4817_v1  ;;  %2984 = vset.pattern.permute.xlu0 %v4817_v1  ;;  %v521_v4 = vld [vmem:[%s3555_s28 + $0x70] sm:$0xff]  ;;  %v522_v5 = vld [vmem:[%s3555_s28 + $0x78] sm:$0xff]  ;;  %v519_v6 = vld [vmem:[%s3555_s28 + $0x60] sm:$0xff]  ;;  %vm532_vm0 = vcmask 588800   ;;  %v3223_v25 = vmov 4   ;;  %v3224_v26 = vmov 5  }
  0x3d   : > { %2986 = vset.pattern.permute.xlu2 %v4817_v1  ;;  %543 = vmatpush.msra.mxu0 %v523_v2  ;;  %v520_v7 = vld [vmem:[%s3555_s28 + $0x68] sm:$0xff]  ;;  %v517_v9 = vld [vmem:[%s3555_s28 + $0x50] sm:$0xff]  ;;  %v518_v10 = vld [vmem:[%s3555_s28 + $0x58] sm:$0xff]  ;;  %v3225_v27 = vmov 6   ;;  %v3226_v28 = vmov 7   ;;  %v3227_v29 = vmov 8  }
  0x3e   : > { %563 = vmatpush.msra.mxu1 %v524_v3  ;;  %v631_v8 = vld [vmem:[%s4801_s8] sm:$0xff]  ;;  %v3228_v30 = vmov 9   ;;  %v3229_v31 = vmov 10   ;;  %v3230_v32 = vmov 11   ;;  %v3231_v33 = vmov 12   ;;  %s3255_s21 = smov 66  }
  0x3f   : > { %544 = vmatpush.msra.mxu0 %v521_v4  ;;  %634 = vperm.xlu1 %2985, %v631_v8   ;;  %v3582_v11 = vld [vmem:[%s4802_s9] sm:$0xff]  ;;  %v3232_v34 = vmov 13   ;;  %v3233_v35 = vmov 14   ;;  %v3234_v36 = vmov 15   ;;  %v3235_v37 = vmov 16   ;;  %s3256_s11 = smov 68  }
  0x40   : > { %564 = vmatpush.msra.mxu1 %v522_v5  ;;  %v515_v12 = vld [vmem:[%s3555_s28 + $0x40] sm:$0xff]  ;;  %v516_v13 = vld [vmem:[%s3555_s28 + $0x48] sm:$0xff]  ;;  %694 = vperm.xlu2 %2986, %v3582_v11   ;;  %v513_v15 = vld [vmem:[%s3555_s28 + $0x30] sm:$0xff]  ;;  %v3236_v38 = vmov 17   ;;  %vm591_vm1 = vcmask 64512   ;;  %v3237_v48 = vmov 18  }
  0x41   : > { %545 = vmatpush.msra.mxu0 %v519_v6  ;;  %v526_v14 = vld [vmem:[%s4795_s2] sm:$0xff]  ;;  %v3238_v49 = vmov 19   ;;  %v3239_v50 = vmov 20   ;;  %v3240_v51 = vmov 21   ;;  %v3241_v52 = vmov 22   ;;  %s3257_s15 = smov 65  }
  0x42   : > { %565 = vmatpush.msra.mxu1 %v520_v7  ;;  %v514_v16 = vld [vmem:[%s3555_s28 + $0x38] sm:$0xff]  ;;  %529 = vperm.xlu0 %2984, %v526_v14   ;;  %v511_v17 = vld [vmem:[%s3555_s28 + $0x20] sm:$0xff]  ;;  %v512_v18 = vld [vmem:[%s3555_s28 + $0x28] sm:$0xff]  ;;  %v3242_v54 = vmov 23   ;;  %v3243_v56 = vmov 24   ;;  %v3244_v58 = vmov 25  }
  0x43   : > { %546 = vmatpush.msra.mxu0 %v517_v9  ;;  %v509_v20 = vld [vmem:[%s3555_s28 + $0x10] sm:$0xff]  ;;  %v510_v21 = vld [vmem:[%s3555_s28 + $0x18] sm:$0xff]  ;;  %v507_v22 = vld [vmem:[%s3555_s28] sm:$0xff]  ;;  %v3245_v59 = vmov 26   ;;  %v3246_v61 = vmov 27   ;;  %v3247_v63 = vmov 2  }
  0x44   : > { %566 = vmatpush.msra.mxu1 %v518_v10  ;;  %v508_v23 = vld [vmem:[%s3555_s28 + $0x8] sm:$0xff]  ;;  %v3248_v0 = vmov 28   ;;  %v3249_v3 = vmov 3   ;;  %v3250_v4 = vmov 29   ;;  %v3251_v6 = vmov 30   ;;  %s3259_s18 = smov 63  }
  0x45   : > { %547 = vmatpush.msra.mxu0 %v515_v12  ;;  %v525_v24 = vld [vmem:[%s4794_s1] sm:$0xff]  ;;  %v3252_v8 = vmov 31   ;;  %v3253_v9 = vmov 256.0   ;;  %v3254_v12 = vmov 32   ;;  %s3260_s20 = smov 64   ;;  %s3261_s25 = smov 67  }
  0x46   : > { %567 = vmatpush.msra.mxu1 %v516_v13  ;;  %v630_v46 = vld [vmem:[%s4800_s7] sm:$0xff]  ;;  %3070 = vrcp.f32 %v3253_v9  ;;  %s3262_s29 = smov 62   ;;  %s3263_s30 = smov 61  }
  0x47   : > { %548 = vmatpush.msra.mxu0 %v513_v15  ;;  %2987 = vset.pattern.permute.xlu1 %v3222_v19  ;;  %s3264_s23 = smov 60   ;;  %s3265_s27 = smov 52  }
  0x48   : > { %568 = vmatpush.msra.mxu1 %v514_v16  ;;  %717 = vperm.xlu1 %2987, %v3582_v11   ;;  %s3266_s10 = smov 51   ;;  %s3267_s14 = smov 50  }
  0x49   : > { %549 = vmatpush.msra.mxu0 %v511_v17  ;;  %2988 = vset.pattern.permute.xlu2 %v3247_v63  ;;  %s3271_s17 = smov 47   ;;  %s3272_s28 = smov 46  }
  0x4a   : > { %569 = vmatpush.msra.mxu1 %v512_v18  ;;  %741 = vperm.xlu2 %2988, %v3582_v11   ;;  %s3284_s19 = smov 127   ;;  %s3285_s22 = smov 32  }
  0x4b   : > { %550 = vmatpush.msra.mxu0 %v509_v20 }
  0x4c   : > { %570 = vmatpush.msra.mxu1 %v510_v21  ;;  %v3071_v13 = vpop.eup %3070 }
  0x4d   : > { %551 = vmatpush.msra.mxu0 %v507_v22  ;;  %v582_v14 = vmul.f32 256.0, %v3071_v13  ;;  %vm586_vm2 = vweird.f32 %v3071_v13 }
  0x4e   : > { %571 = vmatpush.msra.mxu1 %v508_v23  ;;  %2756 = vmatmul.msk.f32.vlgmr.msra.gmra.mxu0 %vm532_vm0, %v525_v24  ;;  %v3258_v23 = vmov 33  }
  0x4f   : > { %2757 = vmatmul.msk.f32.vlgmr.msra.gmra.mxu1 %vm532_vm0, %v525_v24  ;;  %v583_v22 = vsub.f32 1.0, %v582_v14 }
  0x50   : > { %2990 = vset.pattern.permute.xlu1 %v3223_v25 }
  0x51   : > { %789 = vperm.xlu1 %2990, %v3582_v11   ;;  %v584_v24 = vmul.f32 %v3071_v13, %v583_v22  ;;  %v3280_v22 = vmov 38  }
  0x52   : > { %2989 = vset.pattern.permute.xlu2 %v3249_v3 }
  0x53   : > { %765 = vperm.xlu2 %2989, %v3582_v11   ;;  %v585_v25 = vadd.f32 %v3071_v13, %v584_v24 }
  0x59   : > { %2991 = vset.pattern.permute.xlu1 %v3224_v26 }
  0x5a   : > { %813 = vperm.xlu1 %2991, %v3582_v11  }
  0x62   : > { %2992 = vset.pattern.permute.xlu1 %v3225_v27  ;;  %v587_v27 = vsel %vm586_vm2, %v3071_v13, %v585_v25 }
  0x63   : > { %837 = vperm.xlu1 %2992, %v3582_v11  }
  0x6b   : > { %2993 = vset.pattern.permute.xlu1 %v3226_v28 }
  0x6c   : > { %861 = vperm.xlu1 %2993, %v3582_v11  }
  0x74   : > { %2994 = vset.pattern.permute.xlu1 %v3227_v29 }
  0x75   : > { %885 = vperm.xlu1 %2994, %v3582_v11  }
  0x7d   : > { %2995 = vset.pattern.permute.xlu1 %v3228_v30  ;;  %v589_v30 = vld [vmem:[%s4796_s3] sm:$0xff] }
  0x7e   : > { %909 = vperm.xlu1 %2995, %v3582_v11  }
  0x86   : > { %2996 = vset.pattern.permute.xlu1 %v3229_v31 }
  0x87   : > { %933 = vperm.xlu1 %2996, %v3582_v11  }
  0x8f   : > { %2997 = vset.pattern.permute.xlu1 %v3230_v32 }
  0x90   : > { %957 = vperm.xlu1 %2997, %v3582_v11  }
  0x98   : > { %2998 = vset.pattern.permute.xlu1 %v3231_v33 }
  0x99   : > { %981 = vperm.xlu1 %2998, %v3582_v11  }
  0xa1   : > { %2999 = vset.pattern.permute.xlu1 %v3232_v34 }
  0xa2   : > { %1005 = vperm.xlu1 %2999, %v3582_v11  }
  0xaa   : > { %3000 = vset.pattern.permute.xlu1 %v3233_v35 }
  0xab   : > { %1029 = vperm.xlu1 %3000, %v3582_v11  }
  0xb1   : > { %v635_v53 = vpop.permute.xlu1 %634 }
  0xb3   : > { %3001 = vset.pattern.permute.xlu1 %v3234_v36 }
  0xb4   : > { %1053 = vperm.xlu1 %3001, %v3582_v11   ;;  %v530_v39 = vpop.permute.xlu0 %529 }
  0xba   : > { %v3635_v55 = vpop.permute.xlu1 %717 }
  0xbc   : > { %3002 = vset.pattern.permute.xlu1 %v3235_v37 }
  0xbd   : > { %1077 = vperm.xlu1 %3002, %v3582_v11  }
  0xc3   : > { %v3638_v57 = vpop.permute.xlu1 %789 }
  0xc5   : > { %3003 = vset.pattern.permute.xlu1 %v3236_v38 }
  0xc6   : > { %1101 = vperm.xlu1 %3003, %v3582_v11  }
  0xcb   : > { %v553_v40 = vpop.f32.mrf.mxu0 }
  0xcc   : > { %v573_v41 = vpop.f32.mrf.mxu1  ;;  %v554_v42 = vadd.f32 %v553_v40, %v530_v39  ;;  %v3641_v60 = vpop.permute.xlu1 %813 }
  0xcd   : > { %v574_v43 = vadd.f32 %v573_v41, %v530_v39 }
  0xce   : > { %v3616_v44 = vmax.f32 %v554_v42, 0.0  ;;  %3004 = vset.pattern.permute.xlu1 %v3237_v48  ;;  %v599_v42 = vld [vmem:[%s4797_s4] sm:$0x1] }
  0xcf   : > { %v3618_v45 = vmax.f32 %v574_v43, 0.0  ;;  %1125 = vperm.xlu1 %3004, %v3582_v11  }
  0xd0   : > { %4879 = vst [vmem:[#allocation18_spill] sm:$0xff] %v3616_v44  ;;  %655 = vmatpush.msra.mxu2 %v3616_v44 }
  0xd1   : > { %4880 = vst [vmem:[#allocation19_spill] sm:$0xff] %v3618_v45  ;;  %675 = vmatpush.msra.mxu3 %v3618_v45  ;;  %v578_v47 = vadd.f32 %v3618_v45, %v3616_v44  ;;  %2759 = vmatmul.msk.f32.vlgmr.msra.gmra.mxu2 %vm591_vm1, %v630_v46 }
  0xd2   : > { %2760 = vmatmul.msk.f32.vlgmr.msra.gmra.mxu3 %vm591_vm1, %v630_v46 }
  0xd3   : > { %579 = vadd.xlane.f32.xlu0 %v578_v47 }
  0xd5   : > { %v3645_v62 = vpop.permute.xlu1 %837 }
  0xd7   : > { %3005 = vset.pattern.permute.xlu1 %v3238_v49 }
  0xd8   : > { %1149 = vperm.xlu1 %3005, %v3582_v11  }
  0xde   : > { %v3649_v2 = vpop.permute.xlu1 %861 }
  0xe0   : > { %3006 = vset.pattern.permute.xlu1 %v3239_v50  ;;  %v602_v50 = vld [vmem:[%s4798_s5] sm:$0xff] }
  0xe1   : > { %1173 = vperm.xlu1 %3006, %v3582_v11  }
  0xe7   : > { %v3653_v5 = vpop.permute.xlu1 %885 }
  0xe9   : > { %3007 = vset.pattern.permute.xlu1 %v3240_v51  ;;  %v3268_v51 = vmov 34  }
  0xea   : > { %1197 = vperm.xlu1 %3007, %v3582_v11  }
  0xf0   : > { %v3656_v7 = vpop.permute.xlu1 %909 }
  0xf2   : > { %3008 = vset.pattern.permute.xlu1 %v3241_v52  ;;  %v3717_v52 = vpop.permute.xlu2 %694 }
  0xf3   : > { %1221 = vperm.xlu1 %3008, %v3582_v11  }
  0xf9   : > { %v3659_v10 = vpop.permute.xlu1 %933 }
  0xfb   : > { %3009 = vset.pattern.permute.xlu1 %v3242_v54 }
  0xfc   : > { %1245 = vperm.xlu1 %3009, %v3582_v11  }
 0x102   : > { %v3662_v19 = vpop.permute.xlu1 %957 }
 0x104   : > { %3010 = vset.pattern.permute.xlu1 %v3243_v56 }
 0x105   : > { %1269 = vperm.xlu1 %3010, %v3582_v11  }
 0x10b   : > { %v3672_v26 = vpop.permute.xlu1 %981 }
 0x10d   : > { %3011 = vset.pattern.permute.xlu1 %v3244_v58  ;;  %v3725_v58 = vpop.permute.xlu2 %741 }
 0x10e   : > { %1293 = vperm.xlu1 %3011, %v3582_v11  }
 0x114   : > { %v3684_v31 = vpop.permute.xlu1 %1005 }
 0x116   : > { %3012 = vset.pattern.permute.xlu1 %v3245_v59 }
 0x117   : > { %1317 = vperm.xlu1 %3012, %v3582_v11  }
 0x11d   : > { %v3691_v35 = vpop.permute.xlu1 %1029 }
 0x11f   : > { %3013 = vset.pattern.permute.xlu1 %v3246_v61  ;;  %v3734_v61 = vpop.permute.xlu2 %765 }
 0x120   : > { %1341 = vperm.xlu1 %3013, %v3582_v11  }
 0x126   : > { %v3697_v39 = vpop.permute.xlu1 %1053 }
 0x127   : > { %4881 = vst [vmem:[#allocation20_spill] sm:$0xff] %v3697_v39 }
 0x128   : > { %3014 = vset.pattern.permute.xlu1 %v3248_v0 }
 0x129   : > { %1365 = vperm.xlu1 %3014, %v3582_v11  }
 0x12f   : > { %v3705_v43 = vpop.permute.xlu1 %1077 }
 0x130   : > { %4882 = vst [vmem:[#allocation21_spill] sm:$0xff] %v3705_v43 }
 0x131   : > { %3015 = vset.pattern.permute.xlu1 %v3250_v4 }
 0x132   : > { %1389 = vperm.xlu1 %3015, %v3582_v11  }
 0x138   : > { %v3712_v49 = vpop.permute.xlu1 %1101 }
 0x139   : > { %4883 = vst [vmem:[#allocation22_spill] sm:$0xff] %v3712_v49 }
 0x13a   : > { %3016 = vset.pattern.permute.xlu1 %v3251_v6  ;;  %v3274_v6 = vmov 35  }
 0x13b   : > { %1413 = vperm.xlu1 %3016, %v3582_v11  }
 0x141   : > { %v3723_v56 = vpop.permute.xlu1 %1125 }
 0x142   : > { %4884 = vst [vmem:[#allocation23_spill] sm:$0xff] %v3723_v56 }
 0x143   : > { %3017 = vset.pattern.permute.xlu1 %v3252_v8 }
 0x144   : > { %1437 = vperm.xlu1 %3017, %v3582_v11  }
 0x146   : > { %v580_v28 = vpop.xlane.xlu0 %579 }
 0x147   : > { %v588_v29 = vmul.f32 %v587_v27, %v580_v28  ;;  %v3282_v27 = vmov 39  }
 0x149   : > { %v590_v32 = vmul.f32 %v589_v30, %v588_v29 }
 0x14a   : > { %v3730_v59 = vpop.permute.xlu1 %1149 }
 0x14b   : > { %v592_v33 = vsel %vm591_vm1, %v590_v32, 0.0  ;;  %4885 = vst [vmem:[#allocation24_spill] sm:$0xff] %v3730_v59 }
 0x14c   : > { %3018 = vset.pattern.permute.xlu1 %v3254_v12  ;;  %v593_v34 = vrot.slane %v592_v33, 4  ;;  %v3276_v12 = vmov 36  }
 0x14d   : > { %1461 = vperm.xlu1 %3018, %v3582_v11  }
 0x14e   : > { %v594_v36 = vadd.f32 %v593_v34, %v592_v33 }
 0x150   : > { %v595_v37 = vrot.slane %v594_v36, 2 }
 0x152   : > { %v596_v38 = vadd.f32 %v595_v37, %v594_v36 }
 0x153   : > { %v3738_v63 = vpop.permute.xlu1 %1173 }
 0x154   : > { %v657_v15 = vpop.f32.mrf.mxu2  ;;  %v597_v40 = vrot.slane %v596_v38, 1  ;;  %4886 = vst [vmem:[#allocation25_spill] sm:$0xff] %v3738_v63 }
 0x155   : > { %v677_v16 = vpop.f32.mrf.mxu3  ;;  %v658_v17 = vadd.f32 %v657_v15, %v635_v53  ;;  %3019 = vset.pattern.permute.xlu1 %v3258_v23  ;;  %v3278_v15 = vmov 37  }
 0x156   : > { %v678_v18 = vadd.f32 %v677_v16, %v635_v53  ;;  %v598_v41 = vadd.f32 %v597_v40, %v596_v38 }
 0x157   : > { %v3664_v20 = vmax.f32 %v658_v17, 0.0 }
 0x158   : > { %v3666_v21 = vmax.f32 %v678_v18, 0.0  ;;  %v600_v46 = vadd.f32 %v599_v42, %v598_v41 }
 0x159   : > { %682 = vrot.lane.b32.xlu2 %v3664_v20, %s3256_s11 }
 0x15a   : > { %735 = vrot.lane.b32.xlu1 %v3666_v21, %s3255_s21  ;;  %759 = vrot.lane.b32.xlu0 %v3666_v21, %s3257_s15  ;;  %v601_v47 = vmax.f32 %v600_v46, 0.0 }
 0x15c   : > { %v603_v48 = vperm.slane %v601_v47, 0  ;;  %v3749_v3 = vpop.permute.xlu1 %1197 }
 0x15d   : > { %4887 = vst [vmem:[#allocation26_spill] sm:$0xff] %v3749_v3 }
 0x15e   : > { %v604_v53 = vmul.f32 %v603_v48, %v602_v50 }
 0x160   : > { %v605_v54 = vsel %vm591_vm1, %v604_v53, 0.0 }
 0x161   : > { %684 = vrot.lane.b32.xlu2 %v3666_v21, %s3256_s11  ;;  %s3289_s11 = smov 30  }
 0x162   : > { %757 = vrot.lane.b32.xlu1 %v3664_v20, %s3257_s15  ;;  %805 = vrot.lane.b32.xlu0 %v3664_v20, %s3259_s18  ;;  %s3269_s15 = smov 49  }
 0x165   : > { %v3759_v9 = vpop.permute.xlu1 %1221 }
 0x166   : > { %4888 = vst [vmem:[#allocation27_spill] sm:$0xff] %v3759_v9  ;;  %v723_v9 = vld [vmem:[#allocation6 + $0x1] ss:$8 sm:$0x3] }
 0x169   : > { %709 = vrot.lane.b32.xlu2 %v3664_v20, %s3261_s25 }
 0x16a   : > { %781 = vrot.lane.b32.xlu1 %v3664_v20, %s3260_s20  ;;  %829 = vrot.lane.b32.xlu0 %v3664_v20, %s3262_s29 }
 0x16e   : > { %v3769_v16 = vpop.permute.xlu1 %1245 }
 0x16f   : > { %4889 = vst [vmem:[#allocation28_spill] sm:$0xff] %v3769_v16 }
 0x171   : > { %711 = vrot.lane.b32.xlu2 %v3666_v21, %s3261_s25  ;;  %s3275_s25 = smov 44  }
 0x172   : > { %1485 = vperm.xlu1 %3019, %v3582_v11   ;;  %853 = vrot.lane.b32.xlu0 %v3664_v20, %s3263_s30 }
 0x177   : > { %v3781_v23 = vpop.permute.xlu1 %1269 }
 0x178   : > { %4890 = vst [vmem:[#allocation29_spill] sm:$0xff] %v3781_v23  ;;  %v699_v23 = vld [vmem:[#allocation6] ss:$8 sm:$0x3] }
 0x179   : > { %733 = vrot.lane.b32.xlu2 %v3664_v20, %s3255_s21  ;;  %s3288_s21 = smov 125   ;;  %v701_v56 = vperm.slane %v699_v23, 0 }
 0x17a   : > { %877 = vrot.lane.b32.xlu0 %v3664_v20, %s3264_s23  ;;  %3020 = vset.pattern.permute.xlu1 %v3268_v51 }
 0x180   : > { %v3796_v28 = vpop.permute.xlu1 %1293 }
 0x181   : > { %783 = vrot.lane.b32.xlu2 %v3666_v21, %s3260_s20  ;;  %s3273_s20 = smov 45   ;;  %4891 = vst [vmem:[#allocation30_spill] sm:$0xff] %v3796_v28 }
 0x182   : > { %901 = vrot.lane.b32.xlu0 %v3664_v20, %s3265_s27 }
 0x189   : > { %807 = vrot.lane.b32.xlu2 %v3666_v21, %s3259_s18  ;;  %s3270_s18 = smov 48   ;;  %v3812_v33 = vpop.permute.xlu1 %1317 }
 0x18a   : > { %925 = vrot.lane.b32.xlu0 %v3664_v20, %s3266_s10  ;;  %4892 = vst [vmem:[#allocation31_spill] sm:$0xff] %v3812_v33 }
 0x191   : > { %831 = vrot.lane.b32.xlu2 %v3666_v21, %s3262_s29  ;;  %s3277_s29 = smov 36  }
 0x192   : > { %949 = vrot.lane.b32.xlu0 %v3664_v20, %s3267_s14  ;;  %v3824_v37 = vpop.permute.xlu1 %1341 }
 0x193   : > { %4893 = vst [vmem:[#allocation32_spill] sm:$0xff] %v3824_v37 }
 0x199   : > { %855 = vrot.lane.b32.xlu2 %v3666_v21, %s3263_s30  ;;  %s3279_s30 = smov 35  }
 0x19a   : > { %973 = vrot.lane.b32.xlu0 %v3664_v20, %s3269_s15 }
 0x19b   : > { %v3836_v41 = vpop.permute.xlu1 %1365 }
 0x19c   : > { %606 = vadd.xlane.f32.xlu1 %v605_v54  ;;  %4894 = vst [vmem:[#allocation33_spill] sm:$0xff] %v3836_v41 }
 0x1a1   : > { %879 = vrot.lane.b32.xlu2 %v3666_v21, %s3264_s23  ;;  %s3281_s23 = smov 34  }
 0x1a2   : > { %997 = vrot.lane.b32.xlu0 %v3664_v20, %s3270_s18 }
 0x1a4   : > { %v3854_v47 = vpop.permute.xlu1 %1389 }
 0x1a5   : > { %4895 = vst [vmem:[#allocation34_spill] sm:$0xff] %v3854_v47  ;;  %v686_v47 = vlaneseq }
 0x1a7   : > { %v3922_v41 = vand.u32 127, %v686_v47 }
 0x1a9   : > { %903 = vrot.lane.b32.xlu2 %v3666_v21, %s3265_s27  ;;  %s3283_s27 = smov 33   ;;  %vm713_vm3 = vcmp.lt.s32.totalorder %v3922_v41, 67  ;;  %vm688_vm4 = vcmp.lt.s32.totalorder %v3922_v41, 68  ;;  %vm737_vm5 = vcmp.lt.s32.totalorder %v3922_v41, 66  ;;  %vm761_vm6 = vcmp.lt.s32.totalorder %v3922_v41, 65 }
 0x1aa   : > { %1021 = vrot.lane.b32.xlu0 %v3664_v20, %s3271_s17  ;;  %vm785_vm7 = vcmp.lt.s32.totalorder %v3922_v41, 64  ;;  %vm809_vm8 = vcmp.lt.s32.totalorder %v3922_v41, 63  ;;  %vm833_vm9 = vcmp.lt.s32.totalorder %v3922_v41, 62  ;;  %vm857_vm10 = vcmp.lt.s32.totalorder %v3922_v41, 61 }
 0x1ab   : > { %vm881_vm11 = vcmp.lt.s32.totalorder %v3922_v41, 60  ;;  %vm905_vm12 = vcmp.lt.s32.totalorder %v3922_v41, 52  ;;  %vm929_vm13 = vcmp.lt.s32.totalorder %v3922_v41, 51  ;;  %vm953_vm14 = vcmp.lt.s32.totalorder %v3922_v41, 50 }
 0x1ac   : > { %vm977_vm15 = vcmp.lt.s32.totalorder %v3922_v41, 49  ;;  %vm1001_vm0 = vcmp.lt.s32.totalorder %v3922_v41, 48  ;;  %vm1025_vm1 = vcmp.lt.s32.totalorder %v3922_v41, 47  ;;  %vm1049_vm2 = vcmp.lt.s32.totalorder %v3922_v41, 46 }
 0x1ad   : > { %v3870_v54 = vpop.permute.xlu1 %1413 }
 0x1ae   : > { %4896 = vst [vmem:[#allocation35_spill] sm:$0xff] %v3870_v54 }
 0x1b1   : > { %927 = vrot.lane.b32.xlu2 %v3666_v21, %s3266_s10  ;;  %s3286_s10 = smov 126  }
 0x1b2   : > { %1045 = vrot.lane.b32.xlu0 %v3664_v20, %s3272_s28 }
 0x1b3   : > { %v3743_v0 = vpop.permute.xlu2 %682 }
 0x1b5   : > { %1509 = vperm.xlu1 %3020, %v3582_v11  }
 0x1b9   : > { %951 = vrot.lane.b32.xlu2 %v3666_v21, %s3267_s14  ;;  %s3287_s14 = smov 31  }
 0x1ba   : > { %1069 = vrot.lane.b32.xlu0 %v3664_v20, %s3273_s20 }
 0x1bb   : > { %v3751_v4 = vpop.permute.xlu2 %684 }
 0x1bc   : > { %v3947_v3 = vsel %vm688_vm4, %v3743_v0, %v3751_v4  ;;  %v3951_v63 = vsel %vm688_vm4, %v3751_v4, %v3743_v0  ;;  %v725_v0 = vperm.slane %v723_v9, 0  ;;  %v726_v4 = vperm.slane %v723_v9, 1 }
 0x1bd   : > { %3021 = vset.pattern.permute.xlu1 %v3274_v6  ;;  %4905 = vst [vmem:[#allocation44_spill] sm:$0xff] %v3947_v3  ;;  %vm1097_vm4 = vcmp.lt.s32.totalorder %v3922_v41, 44 }
 0x1be   : > { %1533 = vperm.xlu1 %3021, %v3582_v11   ;;  %4906 = vst [vmem:[#allocation45_spill] sm:$0xff] %v3951_v63 }
 0x1c1   : > { %975 = vrot.lane.b32.xlu2 %v3666_v21, %s3269_s15  ;;  %s3290_s15 = smov 124  }
 0x1c2   : > { %1093 = vrot.lane.b32.xlu0 %v3664_v20, %s3275_s25 }
 0x1c3   : > { %v3757_v8 = vpop.permute.xlu2 %709 }
 0x1c6   : > { %3022 = vset.pattern.permute.xlu1 %v3276_v12 }
 0x1c7   : > { %1557 = vperm.xlu1 %3022, %v3582_v11  }
 0x1c9   : > { %999 = vrot.lane.b32.xlu2 %v3666_v21, %s3270_s18  ;;  %s3291_s18 = smov 29  }
 0x1ca   : > { %1117 = vrot.lane.b32.xlu0 %v3664_v20, %s3277_s29 }
 0x1cb   : > { %v3765_v13 = vpop.permute.xlu2 %711 }
 0x1cc   : > { %v3767_v14 = vpop.permute.xlu0 %759  ;;  %v3937_v47 = vsel %vm713_vm3, %v3757_v8, %v3765_v13  ;;  %v3941_v16 = vsel %vm713_vm3, %v3765_v13, %v3757_v8  ;;  %v747_v13 = vld [vmem:[#allocation6 + $0x2] ss:$8 sm:$0x3]  ;;  %vm1073_vm3 = vcmp.lt.s32.totalorder %v3922_v41, 45 }
 0x1cd   : > { %4903 = vst [vmem:[#allocation42_spill] sm:$0xff] %v3937_v47  ;;  %v721_v43 = vmul.f32 %v3635_v55, %v3937_v47 }
 0x1ce   : > { %4904 = vst [vmem:[#allocation43_spill] sm:$0xff] %v3941_v16 }
 0x1cf   : > { %3023 = vset.pattern.permute.xlu1 %v3278_v15  ;;  %v3882_v15 = vpop.permute.xlu1 %1437 }
 0x1d0   : > { %1581 = vperm.xlu1 %3023, %v3582_v11   ;;  %4897 = vst [vmem:[#allocation36_spill] sm:$0xff] %v3882_v15 }
 0x1d1   : > { %1023 = vrot.lane.b32.xlu2 %v3666_v21, %s3271_s17  ;;  %s3292_s17 = smov 116  }
 0x1d2   : > { %1141 = vrot.lane.b32.xlu0 %v3664_v20, %s3279_s30 }
 0x1d3   : > { %v3776_v17 = vpop.permute.xlu2 %733 }
 0x1d4   : > { %v3778_v18 = vpop.permute.xlu0 %805 }
 0x1d7   : > { %v3894_v1 = vpop.permute.xlu1 %1461 }
 0x1d8   : > { %3024 = vset.pattern.permute.xlu1 %v3280_v22  ;;  %4898 = vst [vmem:[#allocation37_spill] sm:$0xff] %v3894_v1 }
 0x1d9   : > { %1605 = vperm.xlu1 %3024, %v3582_v11   ;;  %1047 = vrot.lane.b32.xlu2 %v3666_v21, %s3272_s28  ;;  %s3293_s28 = smov 28  }
 0x1da   : > { %1165 = vrot.lane.b32.xlu0 %v3664_v20, %s3281_s23 }
 0x1db   : > { %v3787_v24 = vpop.permute.xlu2 %783 }
 0x1dc   : > { %v3789_v25 = vpop.permute.xlu0 %829 }
 0x1df   : > { %v736_v1 = vpop.permute.xlu1 %735 }
 0x1e0   : > { %v3959_v8 = vsel %vm737_vm5, %v736_v1, %v3776_v17 }
 0x1e1   : > { %3025 = vset.pattern.permute.xlu1 %v3282_v27  ;;  %1071 = vrot.lane.b32.xlu2 %v3666_v21, %s3273_s20  ;;  %s3294_s20 = smov 115   ;;  %4908 = vst [vmem:[#allocation47_spill] sm:$0xff] %v3959_v8 }
 0x1e2   : > { %1629 = vperm.xlu1 %3025, %v3582_v11   ;;  %1189 = vrot.lane.b32.xlu0 %v3664_v20, %s3283_s27 }
 0x1e3   : > { %v3798_v29 = vpop.permute.xlu2 %807 }
 0x1e4   : > { %v3800_v30 = vpop.permute.xlu0 %853 }
 0x1e7   : > { %v758_v28 = vpop.permute.xlu1 %757 }
 0x1e8   : > { %v3978_v9 = vsel %vm761_vm6, %v758_v28, %v3767_v14 }
 0x1e9   : > { %1095 = vrot.lane.b32.xlu2 %v3666_v21, %s3275_s25  ;;  %s3295_s25 = smov 20   ;;  %4910 = vst [vmem:[#allocation49_spill] sm:$0xff] %v3978_v9 }
 0x1ea   : > { %1664 = vrot.lane.b32.xlu1 %v3666_v21, %s3284_s19  ;;  %1213 = vrot.lane.b32.xlu0 %v3664_v20, %s3285_s22 }
 0x1eb   : > { %v3808_v11 = vpop.permute.xlu2 %831 }
 0x1ec   : > { %v3810_v32 = vpop.permute.xlu0 %877 }
 0x1ef   : > { %v782_v47 = vpop.permute.xlu1 %781 }
 0x1f1   : > { %1119 = vrot.lane.b32.xlu2 %v3666_v21, %s3277_s29  ;;  %s3296_s29 = smov 114  }
 0x1f2   : > { %1686 = vrot.lane.b32.xlu1 %v3664_v20, %s3286_s10  ;;  %1237 = vrot.lane.b32.xlu0 %v3664_v20, %s3287_s14 }
 0x1f3   : > { %v3820_v34 = vpop.permute.xlu2 %855 }
 0x1f4   : > { %v3822_v36 = vpop.permute.xlu0 %901 }
 0x1f9   : > { %1143 = vrot.lane.b32.xlu2 %v3666_v21, %s3279_s30  ;;  %s3297_s30 = smov 19  }
 0x1fa   : > { %1710 = vrot.lane.b32.xlu1 %v3664_v20, %s3288_s21  ;;  %1261 = vrot.lane.b32.xlu0 %v3664_v20, %s3289_s11 }
 0x1fb   : > { %v3832_v38 = vpop.permute.xlu2 %879 }
 0x1fc   : > { %v3834_v40 = vpop.permute.xlu0 %925 }
 0x201   : > { %1167 = vrot.lane.b32.xlu2 %v3666_v21, %s3281_s23  ;;  %s3298_s23 = smov 113  }
 0x202   : > { %1734 = vrot.lane.b32.xlu1 %v3664_v20, %s3290_s15  ;;  %1285 = vrot.lane.b32.xlu0 %v3664_v20, %s3291_s18 }
 0x203   : > { %v3844_v42 = vpop.permute.xlu2 %903 }
 0x204   : > { %v3846_v46 = vpop.permute.xlu0 %949 }
 0x209   : > { %1191 = vrot.lane.b32.xlu2 %v3666_v21, %s3283_s27  ;;  %s3299_s27 = smov 18  }
 0x20a   : > { %1758 = vrot.lane.b32.xlu1 %v3664_v20, %s3292_s17  ;;  %1309 = vrot.lane.b32.xlu0 %v3664_v20, %s3293_s28 }
 0x20b   : > { %v3856_v48 = vpop.permute.xlu2 %927 }
 0x20c   : > { %v3858_v50 = vpop.permute.xlu0 %973 }
 0x211   : > { %1215 = vrot.lane.b32.xlu2 %v3666_v21, %s3285_s22  ;;  %s4825_s22 = smov 112  }
 0x212   : > { %1782 = vrot.lane.b32.xlu1 %v3664_v20, %s3294_s20  ;;  %1333 = vrot.lane.b32.xlu0 %v3664_v20, %s3295_s25 }
 0x213   : > { %v3866_v51 = vpop.permute.xlu2 %951 }
 0x214   : > { %v3868_v53 = vpop.permute.xlu0 %997 }
 0x219   : > { %1239 = vrot.lane.b32.xlu2 %v3666_v21, %s3287_s14  ;;  %s3301_s14 = smov 17  }
 0x21a   : > { %1806 = vrot.lane.b32.xlu1 %v3664_v20, %s3296_s29  ;;  %1357 = vrot.lane.b32.xlu0 %v3664_v20, %s3297_s30 }
 0x21b   : > { %v3878_v6 = vpop.permute.xlu2 %975 }
 0x21c   : > { %v3880_v12 = vpop.permute.xlu0 %1021 }
 0x221   : > { %1263 = vrot.lane.b32.xlu2 %v3666_v21, %s3289_s11  ;;  %s4861_s11 = smov 111  }
 0x222   : > { %1830 = vrot.lane.b32.xlu1 %v3664_v20, %s3298_s23  ;;  %1381 = vrot.lane.b32.xlu0 %v3664_v20, %s3299_s27 }
 0x223   : > { %v3890_v22 = vpop.permute.xlu2 %999 }
 0x224   : > { %v3892_v27 = vpop.permute.xlu0 %1045 }
 0x229   : > { %1287 = vrot.lane.b32.xlu2 %v3666_v21, %s3291_s18  ;;  %s3303_s18 = smov 16  }
 0x22a   : > { %1854 = vrot.lane.b32.xlu1 %v3664_v20, %s4825_s22  ;;  %1405 = vrot.lane.b32.xlu0 %v3664_v20, %s3301_s14  ;;  %s4833_s22 = smov 110  }
 0x22b   : > { %v3902_v45 = vpop.permute.xlu2 %1023 }
 0x22c   : > { %v3904_v44 = vpop.permute.xlu0 %1069 }
 0x22d   : > { %4899 = vst [vmem:[#allocation38_spill] sm:$0xff] %v3904_v44  ;;  %v749_v44 = vperm.slane %v747_v13, 0 }
 0x231   : > { %1311 = vrot.lane.b32.xlu2 %v3666_v21, %s3293_s28  ;;  %s3305_s28 = smov 15  }
 0x232   : > { %1878 = vrot.lane.b32.xlu1 %v3664_v20, %s4861_s11  ;;  %1429 = vrot.lane.b32.xlu0 %v3664_v20, %s3303_s18  ;;  %s3322_s11 = smov 94  }
 0x233   : > { %v3912_v15 = vpop.permute.xlu2 %1047 }
 0x234   : > { %v3914_v54 = vpop.permute.xlu0 %1093 }
 0x235   : > { %4900 = vst [vmem:[#allocation39_spill] sm:$0xff] %v3914_v54  ;;  %v720_v54 = vmul.f32 %v3635_v55, %v3941_v16  ;;  %v750_v55 = vperm.slane %v747_v13, 1 }
 0x239   : > { %1335 = vrot.lane.b32.xlu2 %v3666_v21, %s3295_s25  ;;  %s4851_s25 = smov 109  }
 0x23a   : > { %1902 = vrot.lane.b32.xlu1 %v3664_v20, %s4833_s22  ;;  %1453 = vrot.lane.b32.xlu0 %v3664_v20, %s3305_s28  ;;  %s3307_s22 = smov 14  }
 0x23b   : > { %v3924_v37 = vpop.permute.xlu2 %1071 }
 0x23c   : > { %4901 = vst [vmem:[#allocation40_spill] sm:$0xff] %v3924_v37  ;;  %v3926_v33 = vpop.permute.xlu0 %1117  ;;  %v771_v37 = vld [vmem:[#allocation6 + $0x3] ss:$8 sm:$0x3] }
 0x23d   : > { %4902 = vst [vmem:[#allocation41_spill] sm:$0xff] %v3926_v33  ;;  %v3956_v33 = vsel %vm737_vm5, %v3776_v17, %v736_v1  ;;  %v698_v1 = vmul.f32 %v3717_v52, %v3947_v3  ;;  %v702_v17 = vperm.slane %v699_v23, 1  ;;  %v730_v23 = vmul.f32 %v726_v4, %v721_v43  ;;  %v795_v3 = vld [vmem:[#allocation6 + $0x4] ss:$8 sm:$0x3] }
 0x23e   : > { %v745_v16 = vmul.f32 %v3725_v58, %v3956_v33  ;;  %v773_v39 = vperm.slane %v771_v37, 0  ;;  %v3993_v43 = vsel %vm785_vm7, %v782_v47, %v3787_v24  ;;  %vm1121_vm5 = vcmp.lt.s32.totalorder %v3922_v41, 36 }
 0x23f   : > { %v706_v13 = vmul.f32 %v702_v17, %v698_v1 }
 0x241   : > { %1359 = vrot.lane.b32.xlu2 %v3666_v21, %s3297_s30  ;;  %s4855_s30 = smov 108   ;;  %v732_v17 = vadd.f32 %v730_v23, %v706_v13 }
 0x242   : > { %1926 = vrot.lane.b32.xlu1 %v3664_v20, %s4851_s25  ;;  %1477 = vrot.lane.b32.xlu0 %v3664_v20, %s3307_s22  ;;  %s3309_s25 = smov 13  }
 0x243   : > { %v3953_v59 = vpop.permute.xlu2 %1095 }
 0x244   : > { %4907 = vst [vmem:[#allocation46_spill] sm:$0xff] %v3953_v59  ;;  %v3961_v49 = vpop.permute.xlu0 %1141  ;;  %v697_v59 = vmul.f32 %v3717_v52, %v3951_v63  ;;  %v3981_v63 = vsel %vm761_vm6, %v3767_v14, %v758_v28  ;;  %v729_v52 = vmul.f32 %v725_v0, %v720_v54  ;;  %v754_v28 = vmul.f32 %v750_v55, %v745_v16 }
 0x245   : > { %4909 = vst [vmem:[#allocation48_spill] sm:$0xff] %v3961_v49  ;;  %v744_v49 = vmul.f32 %v3725_v58, %v3959_v8  ;;  %v3998_v54 = vsel %vm785_vm7, %v3787_v24, %v782_v47  ;;  %v769_v0 = vmul.f32 %v3734_v61, %v3978_v9  ;;  %v798_v55 = vperm.slane %v795_v3, 1 }
 0x246   : > { %4911 = vst [vmem:[#allocation50_spill] sm:$0xff] %v3981_v63  ;;  %v705_v58 = vmul.f32 %v701_v56, %v697_v59  ;;  %v774_v56 = vperm.slane %v771_v37, 1  ;;  %v768_v59 = vmul.f32 %v3734_v61, %v3981_v63  ;;  %v4013_v24 = vsel %vm809_vm8, %v3778_v18, %v3798_v29 }
 0x247   : > { %v753_v14 = vmul.f32 %v749_v44, %v744_v49  ;;  %v819_v44 = vld [vmem:[#allocation6 + $0x5] ss:$8 sm:$0x3]  ;;  %v797_v49 = vperm.slane %v795_v3, 0  ;;  %v4019_v61 = vsel %vm809_vm8, %v3798_v29, %v3778_v18  ;;  %v792_v37 = vmul.f32 %v3638_v57, %v3998_v54 }
 0x248   : > { %v731_v1 = vadd.f32 %v729_v52, %v705_v58  ;;  %v793_v47 = vmul.f32 %v3638_v57, %v3993_v43  ;;  %v821_v52 = vperm.slane %v819_v44, 0  ;;  %v843_v3 = vld [vmem:[#allocation6 + $0x6] ss:$8 sm:$0x3]  ;;  %v756_v58 = vadd.f32 %v754_v28, %v732_v17 }
 0x249   : > { %1383 = vrot.lane.b32.xlu2 %v3666_v21, %s3299_s27  ;;  %v777_v13 = vmul.f32 %v773_v39, %v768_v59  ;;  %v778_v63 = vmul.f32 %v774_v56, %v769_v0  ;;  %v822_v9 = vperm.slane %v819_v44, 1  ;;  %v816_v8 = vmul.f32 %v3641_v60, %v4019_v61  ;;  %s4856_s27 = smov 100   ;;  %v867_v28 = vld [vmem:[#allocation6 + $0x7] ss:$8 sm:$0x3] }
 0x24a   : > { %1950 = vrot.lane.b32.xlu1 %v3664_v20, %s4855_s30  ;;  %1501 = vrot.lane.b32.xlu0 %v3664_v20, %s3309_s25  ;;  %v755_v23 = vadd.f32 %v753_v14, %v731_v1  ;;  %v817_v18 = vmul.f32 %v3641_v60, %v4013_v24  ;;  %v4034_v57 = vsel %vm833_vm9, %v3789_v25, %v3808_v11  ;;  %v845_v60 = vperm.slane %v843_v3, 0  ;;  %s3311_s30 = smov 12  }
 0x24b   : > { %v4004_v4 = vpop.permute.xlu2 %1119  ;;  %v4040_v39 = vsel %vm833_vm9, %v3808_v11, %v3789_v25  ;;  %v801_v29 = vmul.f32 %v797_v49, %v792_v37  ;;  %v802_v14 = vmul.f32 %v798_v55, %v793_v47  ;;  %v846_v56 = vperm.slane %v843_v3, 1  ;;  %v891_v37 = vld [vmem:[#allocation6 + $0x10] ss:$8 sm:$0x3] }
 0x24c   : > { %v4006_v16 = vpop.permute.xlu0 %1165  ;;  %v779_v25 = vadd.f32 %v777_v13, %v755_v23  ;;  %v780_v11 = vadd.f32 %v778_v63, %v756_v58  ;;  %v840_v0 = vmul.f32 %v3645_v62, %v4040_v39  ;;  %v841_v44 = vmul.f32 %v3645_v62, %v4034_v57 }
 0x24d   : > { %v4059_v49 = vsel %vm857_vm10, %v3800_v30, %v3820_v34  ;;  %v4065_v1 = vsel %vm857_vm10, %v3820_v34, %v3800_v30  ;;  %v825_v17 = vmul.f32 %v821_v52, %v816_v8  ;;  %v826_v55 = vmul.f32 %v822_v9, %v817_v18  ;;  %v915_v9 = vld [vmem:[#allocation6 + $0x11] ss:$8 sm:$0x3] }
 0x24e   : > { %v869_v47 = vperm.slane %v867_v28, 0  ;;  %v4073_v62 = vsel %vm881_vm11, %v3832_v38, %v3810_v32  ;;  %v803_v3 = vadd.f32 %v801_v29, %v779_v25  ;;  %v804_v23 = vadd.f32 %v802_v14, %v780_v11 }
 0x24f   : > { %v870_v58 = vperm.slane %v867_v28, 1  ;;  %v4080_v30 = vsel %vm881_vm11, %v3810_v32, %v3832_v38  ;;  %v864_v34 = vmul.f32 %v3649_v2, %v4065_v1  ;;  %v865_v8 = vmul.f32 %v3649_v2, %v4059_v49 }
 0x250   : > { %v893_v52 = vperm.slane %v891_v37, 0  ;;  %v849_v13 = vmul.f32 %v845_v60, %v840_v0  ;;  %v850_v18 = vmul.f32 %v846_v56, %v841_v44  ;;  %v3312_v29 = vmov 40   ;;  %v939_v56 = vld [vmem:[#allocation6 + $0x12] ss:$8 sm:$0x3] }
 0x251   : > { %1407 = vrot.lane.b32.xlu2 %v3666_v21, %s3301_s14  ;;  %3026 = vset.pattern.permute.xlu0 %v3312_v29  ;;  %v894_v14 = vperm.slane %v891_v37, 1  ;;  %v888_v28 = vmul.f32 %v3653_v5, %v4073_v62  ;;  %v827_v25 = vadd.f32 %v825_v17, %v803_v3  ;;  %v828_v11 = vadd.f32 %v826_v55, %v804_v23  ;;  %s4858_s14 = smov 99   ;;  %v963_v44 = vld [vmem:[#allocation6 + $0x13] ss:$8 sm:$0x3] }
 0x252   : > { %1974 = vrot.lane.b32.xlu1 %v3664_v20, %s4856_s27  ;;  %1525 = vrot.lane.b32.xlu0 %v3664_v20, %s3311_s30  ;;  %v906_v32 = vsel %vm905_vm12, %v3822_v36, %v3844_v42  ;;  %v907_v38 = vsel %vm905_vm12, %v3844_v42, %v3822_v36  ;;  %v889_v2 = vmul.f32 %v3653_v5, %v4080_v30  ;;  %v917_v60 = vperm.slane %v915_v9, 0  ;;  %s3314_s27 = smov 4   ;;  %v987_v29 = vld [vmem:[#allocation6 + $0x14] ss:$8 sm:$0x3] }
 0x253   : > { %v4049_v59 = vpop.permute.xlu2 %1143  ;;  %v873_v0 = vmul.f32 %v869_v47, %v864_v34  ;;  %v874_v36 = vmul.f32 %v870_v58, %v865_v8  ;;  %v918_v42 = vperm.slane %v915_v9, 1  ;;  %v851_v55 = vadd.f32 %v849_v13, %v827_v25 }
 0x254   : > { %v4067_v63 = vpop.permute.xlu0 %1189  ;;  %v852_v37 = vadd.f32 %v850_v18, %v828_v11  ;;  %v912_v3 = vmul.f32 %v3656_v7, %v907_v38  ;;  %v913_v5 = vmul.f32 %v3656_v7, %v906_v32  ;;  %v930_v23 = vsel %vm929_vm13, %v3834_v40, %v3856_v48 }
 0x255   : > { %v931_v47 = vsel %vm929_vm13, %v3856_v48, %v3834_v40  ;;  %v941_v34 = vperm.slane %v939_v56, 0  ;;  %v897_v8 = vmul.f32 %v893_v52, %v888_v28  ;;  %v898_v9 = vmul.f32 %v894_v14, %v889_v2  ;;  %v4123_v40 = vld [vmem:[#allocation6 + $0x15] ss:$8 sm:$0x3] }
 0x256   : > { %v942_v13 = vperm.slane %v939_v56, 1  ;;  %v965_v18 = vperm.slane %v963_v44, 0  ;;  %v875_v25 = vadd.f32 %v873_v0, %v851_v55  ;;  %v876_v7 = vadd.f32 %v874_v36, %v852_v37 }
 0x257   : > { %v936_v11 = vmul.f32 %v3659_v10, %v931_v47  ;;  %v937_v32 = vmul.f32 %v3659_v10, %v930_v23  ;;  %v955_v38 = vsel %vm953_vm14, %v3866_v51, %v3846_v46  ;;  %v921_v48 = vmul.f32 %v917_v60, %v912_v3 }
 0x258   : > { %v922_v52 = vmul.f32 %v918_v42, %v913_v5  ;;  %v966_v14 = vperm.slane %v963_v44, 1  ;;  %v954_v28 = vsel %vm953_vm14, %v3846_v46, %v3866_v51  ;;  %v989_v2 = vperm.slane %v987_v29, 0  ;;  %v4140_v51 = vld [vmem:[#allocation6 + $0x16] ss:$8 sm:$0x3] }
 0x259   : > { %1431 = vrot.lane.b32.xlu2 %v3666_v21, %s3303_s18  ;;  %v990_v56 = vperm.slane %v987_v29, 1  ;;  %s4857_s18 = smov 98   ;;  %v899_v10 = vadd.f32 %v897_v8, %v875_v25  ;;  %v900_v0 = vadd.f32 %v898_v9, %v876_v7  ;;  %v960_v60 = vmul.f32 %v3662_v19, %v955_v38 }
 0x25a   : > { %1998 = vrot.lane.b32.xlu1 %v3664_v20, %s4858_s14  ;;  %1549 = vrot.lane.b32.xlu0 %v3664_v20, %s3314_s27  ;;  %v979_v36 = vsel %vm977_vm15, %v3878_v6, %v3858_v50  ;;  %v1013_v46 = vperm.slane %v4123_v40, 0  ;;  %v945_v42 = vmul.f32 %v941_v34, %v936_v11  ;;  %v946_v44 = vmul.f32 %v942_v13, %v937_v32  ;;  %s3318_s14 = smov 2  }
 0x25b   : > { %v4102_v17 = vpop.permute.xlu2 %1167  ;;  %v961_v55 = vmul.f32 %v3662_v19, %v954_v28  ;;  %v978_v37 = vsel %vm977_vm15, %v3858_v50, %v3878_v6  ;;  %v1014_v5 = vperm.slane %v4123_v40, 1  ;;  %v923_v47 = vadd.f32 %v921_v48, %v899_v10  ;;  %v1059_v6 = vld [vmem:[#allocation6 + $0x17] ss:$8 sm:$0x3] }
 0x25c   : > { %v4114_v58 = vpop.permute.xlu0 %1213  ;;  %v924_v8 = vadd.f32 %v922_v52, %v900_v0  ;;  %v984_v34 = vmul.f32 %v3672_v26, %v979_v36  ;;  %v1003_v19 = vsel %vm1001_vm0, %v3890_v22, %v3868_v53  ;;  %v1037_v9 = vperm.slane %v4140_v51, 0 }
 0x25d   : > { %v1038_v50 = vperm.slane %v4140_v51, 1  ;;  %v969_v13 = vmul.f32 %v965_v18, %v960_v60  ;;  %v985_v29 = vmul.f32 %v3672_v26, %v978_v37  ;;  %v1002_v25 = vsel %vm1001_vm0, %v3868_v53, %v3890_v22  ;;  %v4177_v53 = vld [vmem:[#allocation6 + $0x20] ss:$8 sm:$0x3] }
 0x25e   : > { %v970_v7 = vmul.f32 %v966_v14, %v961_v55  ;;  %v1027_v11 = vsel %vm1025_vm1, %v3902_v45, %v3880_v12  ;;  %v947_v32 = vadd.f32 %v945_v42, %v923_v47  ;;  %v948_v38 = vadd.f32 %v946_v44, %v924_v8  ;;  %v1107_v60 = vld [vmem:[#allocation6 + $0x21] ss:$8 sm:$0x3]  ;;  %v4913_v55 = vld [vmem:[#allocation38_spill] sm:$0xff] }
 0x25f   : > { %v1008_v40 = vmul.f32 %v3684_v31, %v1003_v19  ;;  %v1026_v26 = vsel %vm1025_vm1, %v3880_v12, %v3902_v45  ;;  %v1061_v18 = vperm.slane %v1059_v6, 0  ;;  %v1062_v48 = vperm.slane %v1059_v6, 1  ;;  %v4912_v42 = vld [vmem:[#allocation20_spill] sm:$0xff] }
 0x260   : > { %v993_v22 = vmul.f32 %v989_v2, %v984_v34  ;;  %v1009_v52 = vmul.f32 %v3684_v31, %v1002_v25  ;;  %v1051_v14 = vsel %vm1049_vm2, %v3912_v15, %v3892_v27  ;;  %v994_v45 = vmul.f32 %v990_v56, %v985_v29 }
 0x261   : > { %1455 = vrot.lane.b32.xlu2 %v3666_v21, %s3305_s28  ;;  %s3316_s28 = smov 3   ;;  %v1032_v12 = vmul.f32 %v3691_v35, %v1027_v11  ;;  %v1050_v31 = vsel %vm1049_vm2, %v3892_v27, %v3912_v15  ;;  %v971_v28 = vadd.f32 %v969_v13, %v947_v32  ;;  %v1033_v2 = vmul.f32 %v3691_v35, %v1026_v26  ;;  %v4914_v15 = vld [vmem:[#allocation40_spill] sm:$0xff]  ;;  %v4916_v32 = vld [vmem:[#allocation39_spill] sm:$0xff] }
 0x262   : > { %2022 = vrot.lane.b32.xlu1 %v3664_v20, %s4857_s18  ;;  %1573 = vrot.lane.b32.xlu0 %v3664_v20, %s3316_s28  ;;  %s4859_s18 = smov 97   ;;  %v1085_v10 = vperm.slane %v4177_v53, 0  ;;  %v1086_v0 = vperm.slane %v4177_v53, 1  ;;  %v972_v36 = vadd.f32 %v970_v7, %v948_v38  ;;  %v1017_v51 = vmul.f32 %v1013_v46, %v1008_v40  ;;  %v1131_v13 = vld [vmem:[#allocation6 + $0x22] ss:$8 sm:$0x3] }
 0x263   : > { %v4149_v3 = vpop.permute.xlu2 %1191  ;;  %v1056_v44 = vmul.f32 %v4912_v42, %v1051_v14  ;;  %v1075_v27 = vsel %vm1073_vm3, %v4914_v15, %v4913_v55  ;;  %v1018_v35 = vmul.f32 %v1014_v5, %v1009_v52  ;;  %v1057_v47 = vmul.f32 %v4912_v42, %v1050_v31  ;;  %v4915_v7 = vld [vmem:[#allocation21_spill] sm:$0xff]  ;;  %v4917_v38 = vld [vmem:[#allocation46_spill] sm:$0xff] }
 0x264   : > { %v4153_v23 = vpop.permute.xlu0 %1237  ;;  %v1074_v8 = vsel %vm1073_vm3, %v4913_v55, %v4914_v15  ;;  %v995_v46 = vadd.f32 %v993_v22, %v971_v28  ;;  %v1041_v34 = vmul.f32 %v1037_v9, %v1032_v12  ;;  %v1109_v19 = vperm.slane %v1107_v60, 0  ;;  %v4225_v14 = vld [vmem:[#allocation6 + $0x23] ss:$8 sm:$0x3] }
 0x265   : > { %v1110_v6 = vperm.slane %v1107_v60, 1  ;;  %v996_v29 = vadd.f32 %v994_v45, %v972_v36  ;;  %v1042_v25 = vmul.f32 %v1038_v50, %v1033_v2  ;;  %v1080_v11 = vmul.f32 %v4915_v7, %v1075_v27  ;;  %v4918_v45 = vld [vmem:[#allocation22_spill] sm:$0xff]  ;;  %v4919_v31 = vld [vmem:[#allocation41_spill] sm:$0xff] }
 0x266   : > { %v1099_v5 = vsel %vm1097_vm4, %v4917_v38, %v4916_v32  ;;  %v1065_v40 = vmul.f32 %v1061_v18, %v1056_v44  ;;  %v1081_v26 = vmul.f32 %v4915_v7, %v1074_v8  ;;  %v1098_v9 = vsel %vm1097_vm4, %v4916_v32, %v4917_v38 }
 0x267   : > { %v1019_v53 = vadd.f32 %v1017_v51, %v995_v46  ;;  %v1066_v22 = vmul.f32 %v1062_v48, %v1057_v47  ;;  %v1133_v50 = vperm.slane %v1131_v13, 0  ;;  %v1134_v52 = vperm.slane %v1131_v13, 1  ;;  %v4244_v51 = vld [vmem:[#allocation6 + $0x24] ss:$8 sm:$0x3]  ;;  %v4920_v47 = vld [vmem:[#allocation23_spill] sm:$0xff] }
 0x268   : > { %v1020_v18 = vadd.f32 %v1018_v35, %v996_v29  ;;  %v1104_v12 = vmul.f32 %v4918_v45, %v1099_v5  ;;  %v1123_v28 = vsel %vm1121_vm5, %v4004_v4, %v4919_v31  ;;  %vm1145_vm6 = vcmp.lt.s32.totalorder %v3922_v41, 35  ;;  %v4921_v46 = vld [vmem:[#allocation48_spill] sm:$0xff] }
 0x269   : > { %1479 = vrot.lane.b32.xlu2 %v3666_v21, %s3307_s22  ;;  %s4860_s22 = smov 96   ;;  %v1043_v48 = vadd.f32 %v1041_v34, %v1019_v53  ;;  %v1089_v2 = vmul.f32 %v1085_v10, %v1080_v11  ;;  %v1105_v60 = vmul.f32 %v4918_v45, %v1098_v9  ;;  %v1122_v36 = vsel %vm1121_vm5, %v4919_v31, %v4004_v4  ;;  %v4258_v34 = vld [vmem:[#allocation6 + $0x25] ss:$8 sm:$0x3] }
 0x26a   : > { %2046 = vrot.lane.b32.xlu1 %v3664_v20, %s4859_s18  ;;  %1597 = vrot.lane.b32.xlu0 %v3664_v20, %s3318_s14  ;;  %s3320_s18 = smov 1   ;;  %v1044_v44 = vadd.f32 %v1042_v25, %v1020_v18  ;;  %v1090_v55 = vmul.f32 %v1086_v0, %v1081_v26  ;;  %v1157_v15 = vperm.slane %v4225_v14, 0  ;;  %v1158_v27 = vperm.slane %v4225_v14, 1  ;;  %v4922_v5 = vld [vmem:[#allocation24_spill] sm:$0xff]  ;;  %v4923_v45 = vld [vmem:[#allocation25_spill] sm:$0xff] }
 0x26b   : > { %v4199_v56 = vpop.permute.xlu2 %1215  ;;  %v1067_v10 = vadd.f32 %v1065_v40, %v1043_v48  ;;  %v1128_v8 = vmul.f32 %v4920_v47, %v1123_v28  ;;  %v1147_v4 = vsel %vm1145_vm6, %v4049_v59, %v4921_v46  ;;  %vm1169_vm7 = vcmp.lt.s32.totalorder %v3922_v41, 34  ;;  %v4274_v9 = vld [vmem:[#allocation6 + $0x26] ss:$8 sm:$0x3] }
 0x26c   : > { %v4207_v37 = vpop.permute.xlu0 %1261  ;;  %v1068_v13 = vadd.f32 %v1066_v22, %v1044_v44  ;;  %v1113_v0 = vmul.f32 %v1109_v19, %v1104_v12  ;;  %v1129_v29 = vmul.f32 %v4920_v47, %v1122_v36  ;;  %v1146_v25 = vsel %vm1145_vm6, %v4921_v46, %v4049_v59  ;;  %v1251_v28 = vld [vmem:[#allocation6 + $0x27] ss:$8 sm:$0x3] }
 0x26d   : > { %v1181_v7 = vperm.slane %v4244_v51, 0  ;;  %v1114_v11 = vmul.f32 %v1110_v6, %v1105_v60  ;;  %v1182_v32 = vperm.slane %v4244_v51, 1  ;;  %vm1193_vm8 = vcmp.lt.s32.totalorder %v3922_v41, 33 }
 0x26e   : > { %v1091_v38 = vadd.f32 %v1089_v2, %v1067_v10  ;;  %v1152_v40 = vmul.f32 %v4922_v5, %v1147_v4  ;;  %v1171_v19 = vsel %vm1169_vm7, %v4102_v17, %v4006_v16  ;;  %v1205_v26 = vperm.slane %v4258_v34, 0  ;;  %v4924_v10 = vld [vmem:[#allocation26_spill] sm:$0xff] }
 0x26f   : > { %v1092_v59 = vadd.f32 %v1090_v55, %v1068_v13  ;;  %v1137_v53 = vmul.f32 %v1133_v50, %v1128_v8  ;;  %v1153_v6 = vmul.f32 %v4922_v5, %v1146_v25  ;;  %v1170_v22 = vsel %vm1169_vm7, %v4006_v16, %v4102_v17  ;;  %v4294_v16 = vld [vmem:[%s4802_s9] sm:$0xff] }
 0x270   : > { %v1206_v14 = vperm.slane %v4258_v34, 1  ;;  %v1138_v18 = vmul.f32 %v1134_v52, %v1129_v29  ;;  %v1195_v50 = vsel %vm1193_vm8, %v4149_v3, %v4067_v63  ;;  %vm1217_vm9 = vcmp.lt.s32.totalorder %v3922_v41, 32  ;;  %v4925_v29 = vld [vmem:[#allocation27_spill] sm:$0xff] }
 0x271   : > { %1503 = vrot.lane.b32.xlu2 %v3666_v21, %s3309_s25  ;;  %s3321_s25 = smov 95   ;;  %v1115_v17 = vadd.f32 %v1113_v0, %v1091_v38  ;;  %v1176_v12 = vmul.f32 %v4923_v45, %v1171_v19  ;;  %v1194_v52 = vsel %vm1193_vm8, %v4067_v63, %v4149_v3  ;;  %v1229_v31 = vperm.slane %v4274_v9, 0 }
 0x272   : > { %2070 = vrot.lane.b32.xlu1 %v3664_v20, %s4860_s22  ;;  %1621 = vrot.lane.b32.xlu0 %v3664_v20, %s3320_s18  ;;  %v1116_v2 = vadd.f32 %v1114_v11, %v1092_v59  ;;  %v1161_v60 = vmul.f32 %v1157_v15, %v1152_v40  ;;  %v1177_v36 = vmul.f32 %v4923_v45, %v1170_v22  ;;  %v1230_v51 = vperm.slane %v4274_v9, 1  ;;  %v4926_v40 = vld [vmem:[#allocation28_spill] sm:$0xff]  ;;  %s4939_s22 = smov 109  }
 0x273   : > { %v4246_v42 = vpop.permute.xlu2 %1239  ;;  %vm1241_vm10 = vcmp.lt.s32.totalorder %v3922_v41, 31  ;;  %v1162_v55 = vmul.f32 %v1158_v27, %v1153_v6  ;;  %v1200_v47 = vmul.f32 %v4924_v10, %v1195_v50  ;;  %v1219_v63 = vsel %vm1217_vm9, %v4199_v56, %v4114_v58 }
 0x274   : > { %v4250_v35 = vpop.permute.xlu0 %1285  ;;  %v1139_v3 = vadd.f32 %v1137_v53, %v1115_v17  ;;  %v1201_v8 = vmul.f32 %v4924_v10, %v1194_v52  ;;  %v1218_v15 = vsel %vm1217_vm9, %v4114_v58, %v4199_v56  ;;  %v1253_v46 = vperm.slane %v1251_v28, 0  ;;  %v1275_v58 = vld [vmem:[#allocation6 + $0x30] ss:$8 sm:$0x3]  ;;  %v4927_v52 = vld [vmem:[#allocation29_spill] sm:$0xff]  ;;  %v4348_v10 = vpop.permute.xlu1 %1485 }
 0x275   : > { %v1140_v4 = vadd.f32 %v1138_v18, %v1116_v2  ;;  %v1185_v34 = vmul.f32 %v1181_v7, %v1176_v12  ;;  %v1254_v13 = vperm.slane %v1251_v28, 1  ;;  %v1243_v27 = vsel %vm1241_vm10, %v4246_v42, %v4153_v23 }
 0x276   : > { %vm1265_vm11 = vcmp.lt.s32.totalorder %v3922_v41, 30  ;;  %v1186_v0 = vmul.f32 %v1182_v32, %v1177_v36  ;;  %v1224_v25 = vmul.f32 %v4925_v29, %v1219_v63  ;;  %v1242_v11 = vsel %vm1241_vm10, %v4153_v23, %v4246_v42 }
 0x277   : > { %v1163_v56 = vadd.f32 %v1161_v60, %v1139_v3  ;;  %v1209_v38 = vmul.f32 %v1205_v26, %v1200_v47  ;;  %v1225_v7 = vmul.f32 %v4925_v29, %v1218_v15  ;;  %vm1289_vm12 = vcmp.lt.s32.totalorder %v3922_v41, 29  ;;  %v1299_v26 = vld [vmem:[#allocation6 + $0x31] ss:$8 sm:$0x3] }
 0x278   : > { %v1164_v32 = vadd.f32 %v1162_v55, %v1140_v4  ;;  %v1210_v5 = vmul.f32 %v1206_v14, %v1201_v8  ;;  %v1248_v19 = vmul.f32 %v4926_v40, %v1243_v27  ;;  %v1249_v9 = vmul.f32 %v4926_v40, %v1242_v11 }
 0x279   : > { %1527 = vrot.lane.b32.xlu2 %v3666_v21, %s3311_s30  ;;  %v1277_v59 = vperm.slane %v1275_v58, 0  ;;  %v1278_v53 = vperm.slane %v1275_v58, 1  ;;  %v1187_v22 = vadd.f32 %v1185_v34, %v1163_v56  ;;  %v1233_v14 = vmul.f32 %v1229_v31, %v1224_v25  ;;  %v4928_v31 = vld [vmem:[#allocation30_spill] sm:$0xff]  ;;  %s3326_s30 = smov 84  }
 0x27a   : > { %2094 = vrot.lane.b32.xlu1 %v3664_v20, %s3321_s25  ;;  %1646 = vperm.xlu0 %3026, %v4294_v16   ;;  %v1188_v45 = vadd.f32 %v1186_v0, %v1164_v32  ;;  %v1234_v12 = vmul.f32 %v1230_v51, %v1225_v7  ;;  %v1257_v2 = vmul.f32 %v1253_v46, %v1248_v19  ;;  %v1302_v60 = vperm.slane %v1299_v26, 1  ;;  %v4929_v7 = vld [vmem:[#allocation31_spill] sm:$0xff] }
 0x27b   : > { %v1264_v48 = vpop.permute.xlu2 %1263  ;;  %v1211_v36 = vadd.f32 %v1209_v38, %v1187_v22  ;;  %v1258_v47 = vmul.f32 %v1254_v13, %v1249_v9  ;;  %v3323_v8 = vmov 41   ;;  %vm1313_vm13 = vcmp.lt.s32.totalorder %v3922_v41, 28 }
 0x27c   : > { %v4306_v44 = vpop.permute.xlu0 %1309  ;;  %v1266_v23 = vsel %vm1265_vm11, %v4207_v37, %v1264_v48  ;;  %v1267_v42 = vsel %vm1265_vm11, %v1264_v48, %v4207_v37  ;;  %v1301_v48 = vperm.slane %v1299_v26, 0  ;;  %v1212_v55 = vadd.f32 %v1210_v5, %v1188_v45  ;;  %3027 = vset.pattern.permute.xlu2 %v3323_v8 }
 0x27d   : > { %v1272_v37 = vmul.f32 %v4927_v52, %v1267_v42  ;;  %v1273_v28 = vmul.f32 %v4927_v52, %v1266_v23  ;;  %v1235_v51 = vadd.f32 %v1233_v14, %v1211_v36  ;;  %vm1337_vm14 = vcmp.lt.s32.totalorder %v3922_v41, 20  ;;  %v4930_v52 = vld [vmem:[#allocation32_spill] sm:$0xff] }
 0x27e   : > { %v1236_v46 = vadd.f32 %v1234_v12, %v1212_v55  ;;  %vm1361_vm15 = vcmp.lt.s32.totalorder %v3922_v41, 19  ;;  %vm1385_vm0 = vcmp.lt.s32.totalorder %v3922_v41, 18  ;;  %vm1409_vm1 = vcmp.lt.s32.totalorder %v3922_v41, 17 }
 0x27f   : > { %v1281_v15 = vmul.f32 %v1277_v59, %v1272_v37  ;;  %v1282_v4 = vmul.f32 %v1278_v53, %v1273_v28  ;;  %v1259_v25 = vadd.f32 %v1257_v2, %v1235_v51  ;;  %v1347_v59 = vld [vmem:[#allocation6 + $0x33] ss:$8 sm:$0x3]  ;;  %v4363_v53 = vpop.xlane.xlu1 %606  ;;  %v4931_v51 = vld [vmem:[#allocation33_spill] sm:$0xff]  ;;  %vm1433_vm2 = vcmp.lt.s32.totalorder %v3922_v41, 16 }
 0x280   : > { %v1260_v11 = vadd.f32 %v1258_v47, %v1236_v46  ;;  %v1349_v22 = vperm.slane %v1347_v59, 0  ;;  %v1350_v14 = vperm.slane %v1347_v59, 1  ;;  %vm1457_vm3 = vcmp.lt.s32.totalorder %v3922_v41, 15 }
 0x281   : > { %1551 = vrot.lane.b32.xlu2 %v3666_v21, %s3314_s27  ;;  %v1283_v40 = vadd.f32 %v1281_v15, %v1259_v25  ;;  %vm1481_vm4 = vcmp.lt.s32.totalorder %v3922_v41, 14  ;;  %s4937_s27 = smov 111   ;;  %vm1505_vm5 = vcmp.lt.s32.totalorder %v3922_v41, 13  ;;  %vm1529_vm6 = vcmp.lt.s32.totalorder %v3922_v41, 12 }
 0x282   : > { %2118 = vrot.lane.b32.xlu1 %v3664_v20, %s3322_s11  ;;  %1688 = vrot.lane.b32.xlu0 %v3666_v21, %s3286_s10  ;;  %s3324_s10 = smov 93   ;;  %v1284_v19 = vadd.f32 %v1282_v4, %v1260_v11  ;;  %vm1553_vm7 = vcmp.lt.s32.totalorder %v3922_v41, 4  ;;  %vm1577_vm8 = vcmp.lt.s32.totalorder %v3922_v41, 3  ;;  %vm1601_vm9 = vcmp.lt.s32.totalorder %v3922_v41, 2 }
 0x283   : > { %v1288_v6 = vpop.permute.xlu2 %1287  ;;  %vm1625_vm10 = vcmp.lt.s32.totalorder %v3922_v41, 1  ;;  %vm1666_vm11 = vcmp.lt.s32.totalorder %v3922_v41, 127 }
 0x284   : > { %v1290_v18 = vsel %vm1289_vm12, %v4250_v35, %v1288_v6  ;;  %v1291_v50 = vsel %vm1289_vm12, %v1288_v6, %v4250_v35  ;;  %v1334_v17 = vpop.permute.xlu0 %1333  ;;  %v1323_v35 = vld [vmem:[#allocation6 + $0x32] ss:$8 sm:$0x3]  ;;  %vm1690_vm12 = vcmp.lt.s32.totalorder %v3922_v41, 126 }
 0x285   : > { %v1296_v63 = vmul.f32 %v4928_v31, %v1291_v50  ;;  %v1297_v3 = vmul.f32 %v4928_v31, %v1290_v18  ;;  %v1325_v34 = vperm.slane %v1323_v35, 0  ;;  %v1326_v13 = vperm.slane %v1323_v35, 1 }
 0x287   : > { %v1305_v27 = vmul.f32 %v1301_v48, %v1296_v63  ;;  %v1306_v0 = vmul.f32 %v1302_v60, %v1297_v3  ;;  %v1371_v60 = vld [vmem:[#allocation6 + $0x34] ss:$8 sm:$0x3]  ;;  %v4374_v36 = vpop.permute.xlu1 %1509 }
 0x288   : > { %v1373_v47 = vperm.slane %v1371_v60, 0  ;;  %v1374_v31 = vperm.slane %v1371_v60, 1 }
 0x289   : > { %1575 = vrot.lane.b32.xlu2 %v3666_v21, %s3316_s28  ;;  %v1307_v26 = vadd.f32 %v1305_v27, %v1283_v40  ;;  %v1308_v9 = vadd.f32 %v1306_v0, %v1284_v19  ;;  %s3338_s28 = smov 77  }
 0x28a   : > { %2142 = vrot.lane.b32.xlu1 %v3664_v20, %s3324_s10  ;;  %1712 = vrot.lane.b32.xlu0 %v3666_v21, %s3288_s21  ;;  %s3325_s21 = smov 92  }
 0x28b   : > { %v1312_v29 = vpop.permute.xlu2 %1311 }
 0x28c   : > { %v1314_v58 = vsel %vm1313_vm13, %v4306_v44, %v1312_v29  ;;  %v1315_v56 = vsel %vm1313_vm13, %v1312_v29, %v4306_v44  ;;  %v1358_v38 = vpop.permute.xlu0 %1357  ;;  %vm1714_vm13 = vcmp.lt.s32.totalorder %v3922_v41, 125 }
 0x28d   : > { %v1320_v32 = vmul.f32 %v4929_v7, %v1315_v56  ;;  %v1321_v5 = vmul.f32 %v4929_v7, %v1314_v58 }
 0x28f   : > { %v1329_v23 = vmul.f32 %v1325_v34, %v1320_v32  ;;  %v1330_v42 = vmul.f32 %v1326_v13, %v1321_v5  ;;  %v1395_v13 = vld [vmem:[#allocation6 + $0x35] ss:$8 sm:$0x3]  ;;  %v4392_v29 = vpop.permute.xlu1 %1533 }
 0x290   : > { %v1397_v25 = vperm.slane %v1395_v13, 0  ;;  %v1398_v11 = vperm.slane %v1395_v13, 1  ;;  %v4932_v32 = vld [vmem:[#allocation34_spill] sm:$0xff]  ;;  %v1467_v13 = vld [vmem:[#allocation6 + $0x40] ss:$8 sm:$0x3] }
 0x291   : > { %1599 = vrot.lane.b32.xlu2 %v3666_v21, %s3318_s14  ;;  %v1331_v44 = vadd.f32 %v1329_v23, %v1307_v26  ;;  %v1332_v6 = vadd.f32 %v1330_v42, %v1308_v9  ;;  %v1419_v42 = vld [vmem:[#allocation6 + $0x36] ss:$8 sm:$0x3]  ;;  %s3336_s14 = smov 78  }
 0x292   : > { %2166 = vrot.lane.b32.xlu1 %v3664_v20, %s3325_s21  ;;  %1736 = vrot.lane.b32.xlu0 %v3666_v21, %s3290_s15  ;;  %s3327_s15 = smov 83   ;;  %v1421_v59 = vperm.slane %v1419_v42, 0 }
 0x293   : > { %v1336_v18 = vpop.permute.xlu2 %1335 }
 0x294   : > { %v1338_v50 = vsel %vm1337_vm14, %v1334_v17, %v1336_v18  ;;  %v1339_v45 = vsel %vm1337_vm14, %v1336_v18, %v1334_v17  ;;  %v1382_v12 = vpop.permute.xlu0 %1381  ;;  %vm1738_vm14 = vcmp.lt.s32.totalorder %v3922_v41, 124 }
 0x295   : > { %v1344_v37 = vmul.f32 %v4930_v52, %v1339_v45  ;;  %v1345_v28 = vmul.f32 %v4930_v52, %v1338_v50  ;;  %v4933_v45 = vld [vmem:[#allocation35_spill] sm:$0xff] }
 0x297   : > { %v1353_v48 = vmul.f32 %v1349_v22, %v1344_v37  ;;  %v1354_v2 = vmul.f32 %v1350_v14, %v1345_v28  ;;  %v4402_v50 = vpop.permute.xlu1 %1557 }
 0x299   : > { %1623 = vrot.lane.b32.xlu2 %v3666_v21, %s3320_s18  ;;  %v1355_v17 = vadd.f32 %v1353_v48, %v1331_v44  ;;  %v1356_v55 = vadd.f32 %v1354_v2, %v1332_v6  ;;  %v1422_v44 = vperm.slane %v1419_v42, 1  ;;  %v1443_v48 = vld [vmem:[#allocation6 + $0x37] ss:$8 sm:$0x3]  ;;  %v3329_v2 = vmov 42   ;;  %s4938_s18 = smov 110  }
 0x29a   : > { %2190 = vrot.lane.b32.xlu1 %v3664_v20, %s3326_s30  ;;  %1760 = vrot.lane.b32.xlu0 %v3666_v21, %s3292_s17  ;;  %s3330_s17 = smov 81  }
 0x29b   : > { %v1360_v63 = vpop.permute.xlu2 %1359 }
 0x29c   : > { %v1362_v3 = vsel %vm1361_vm15, %v1358_v38, %v1360_v63  ;;  %v1363_v35 = vsel %vm1361_vm15, %v1360_v63, %v1358_v38  ;;  %v1406_v8 = vpop.permute.xlu0 %1405  ;;  %vm1762_vm15 = vcmp.lt.s32.totalorder %v3922_v41, 116 }
 0x29d   : > { %v1368_v15 = vmul.f32 %v4931_v51, %v1363_v35  ;;  %v1369_v4 = vmul.f32 %v4931_v51, %v1362_v3 }
 0x29f   : > { %v1377_v46 = vmul.f32 %v1373_v47, %v1368_v15  ;;  %v1378_v34 = vmul.f32 %v1374_v31, %v1369_v4  ;;  %v1446_v47 = vperm.slane %v1443_v48, 1  ;;  %v4414_v4 = vpop.permute.xlu1 %1581 }
 0x2a1   : > { %1662 = vrot.lane.b32.xlu2 %v3664_v20, %s3284_s19  ;;  %v1379_v27 = vadd.f32 %v1377_v46, %v1355_v17  ;;  %v1380_v0 = vadd.f32 %v1378_v34, %v1356_v55  ;;  %s3328_s19 = smov 82   ;;  %v1445_v55 = vperm.slane %v1443_v48, 0 }
 0x2a2   : > { %2214 = vrot.lane.b32.xlu1 %v3664_v20, %s3327_s15  ;;  %1784 = vrot.lane.b32.xlu0 %v3666_v21, %s3294_s20  ;;  %s3331_s20 = smov 80  }
 0x2a3   : > { %v1384_v58 = vpop.permute.xlu2 %1383 }
 0x2a4   : > { %v1386_v56 = vsel %vm1385_vm0, %v1382_v12, %v1384_v58  ;;  %v1387_v38 = vsel %vm1385_vm0, %v1384_v58, %v1382_v12  ;;  %v1430_v7 = vpop.permute.xlu0 %1429  ;;  %v1470_v58 = vperm.slane %v1467_v13, 1  ;;  %vm1786_vm0 = vcmp.lt.s32.totalorder %v3922_v41, 115 }
 0x2a5   : > { %v1392_v5 = vmul.f32 %v4932_v32, %v1387_v38  ;;  %v1393_v40 = vmul.f32 %v4932_v32, %v1386_v56 }
 0x2a7   : > { %v1401_v19 = vmul.f32 %v1397_v25, %v1392_v5  ;;  %v1402_v23 = vmul.f32 %v1398_v11, %v1393_v40  ;;  %v3332_v25 = vmov 43   ;;  %v1469_v11 = vperm.slane %v1467_v13, 0  ;;  %v4936_v5 = vld [vmem:[#allocation37_spill] sm:$0xff] }
 0x2a9   : > { %1670 = vperm.xlu2 %3027, %v4294_v16   ;;  %v1403_v26 = vadd.f32 %v1401_v19, %v1379_v27  ;;  %v1404_v9 = vadd.f32 %v1402_v23, %v1380_v0 }
 0x2aa   : > { %2238 = vrot.lane.b32.xlu1 %v3664_v20, %s3328_s19  ;;  %1808 = vrot.lane.b32.xlu0 %v3666_v21, %s3296_s29  ;;  %s4935_s29 = smov 112  }
 0x2ab   : > { %v1408_v6 = vpop.permute.xlu2 %1407 }
 0x2ac   : > { %v1410_v22 = vsel %vm1409_vm1, %v1406_v8, %v1408_v6  ;;  %v1411_v14 = vsel %vm1409_vm1, %v1408_v6, %v1406_v8  ;;  %v1454_v18 = vpop.permute.xlu0 %1453  ;;  %v4934_v8 = vld [vmem:[#allocation36_spill] sm:$0xff]  ;;  %vm1810_vm1 = vcmp.lt.s32.totalorder %v3922_v41, 114 }
 0x2ad   : > { %v1416_v12 = vmul.f32 %v4933_v45, %v1411_v14  ;;  %v1417_v52 = vmul.f32 %v4933_v45, %v1410_v22  ;;  %v3335_v22 = vmov 44  }
 0x2af   : > { %v1425_v37 = vmul.f32 %v1421_v59, %v1416_v12  ;;  %v1426_v28 = vmul.f32 %v1422_v44, %v1417_v52  ;;  %v4424_v59 = vpop.permute.xlu1 %1605 }
 0x2b1   : > { %3028 = vset.pattern.permute.xlu2 %v3329_v2  ;;  %v1427_v60 = vadd.f32 %v1425_v37, %v1403_v26  ;;  %v1428_v17 = vadd.f32 %v1426_v28, %v1404_v9  ;;  %v1491_v26 = vld [vmem:[#allocation6 + $0x41] ss:$8 sm:$0x3]  ;;  %v3333_v9 = vmov 72  }
 0x2b2   : > { %2262 = vrot.lane.b32.xlu1 %v3664_v20, %s3330_s17  ;;  %1832 = vrot.lane.b32.xlu0 %v3666_v21, %s3298_s23  ;;  %s3334_s23 = smov 79   ;;  %v1493_v14 = vperm.slane %v1491_v26, 0 }
 0x2b3   : > { %1694 = vperm.xlu2 %3028, %v4294_v16   ;;  %v1432_v31 = vpop.permute.xlu2 %1431  ;;  %3058 = vset.pattern.permute.xlu1 %v3333_v9  ;;  %v1563_v9 = vld [vmem:[#allocation6 + $0x44] ss:$8 sm:$0x3] }
 0x2b4   : > { %v1434_v63 = vsel %vm1433_vm2, %v1430_v7, %v1432_v31  ;;  %v1435_v3 = vsel %vm1433_vm2, %v1432_v31, %v1430_v7  ;;  %v1478_v35 = vpop.permute.xlu0 %1477  ;;  %vm1834_vm2 = vcmp.lt.s32.totalorder %v3922_v41, 113 }
 0x2b5   : > { %v1440_v51 = vmul.f32 %v4934_v8, %v1435_v3  ;;  %v1441_v15 = vmul.f32 %v4934_v8, %v1434_v63 }
 0x2b7   : > { %v1449_v46 = vmul.f32 %v1445_v55, %v1440_v51  ;;  %v1450_v34 = vmul.f32 %v1446_v47, %v1441_v15  ;;  %v4439_v31 = vpop.permute.xlu1 %1629  ;;  %v3337_v15 = vmov 45  }
 0x2b9   : > { %v1451_v27 = vadd.f32 %v1449_v46, %v1427_v60  ;;  %v1452_v0 = vadd.f32 %v1450_v34, %v1428_v17  ;;  %v1515_v17 = vld [vmem:[#allocation6 + $0x42] ss:$8 sm:$0x3] }
 0x2ba   : > { %2286 = vrot.lane.b32.xlu1 %v3664_v20, %s3331_s20  ;;  %1856 = vrot.lane.b32.xlu0 %v3666_v21, %s4935_s29  ;;  %v1517_v63 = vperm.slane %v1515_v17, 0  ;;  %v1518_v3 = vperm.slane %v1515_v17, 1  ;;  %s3340_s29 = smov 76   ;;  %v1587_v17 = vld [vmem:[#allocation6 + $0x45] ss:$8 sm:$0x3] }
 0x2bb   : > { %3029 = vset.pattern.permute.xlu2 %v3332_v25  ;;  %v1456_v56 = vpop.permute.xlu2 %1455 }
 0x2bc   : > { %1718 = vperm.xlu2 %3029, %v4294_v16   ;;  %v1458_v38 = vsel %vm1457_vm3, %v1454_v18, %v1456_v56  ;;  %v1459_v7 = vsel %vm1457_vm3, %v1456_v56, %v1454_v18  ;;  %v1502_v32 = vpop.permute.xlu0 %1501  ;;  %v1494_v18 = vperm.slane %v1491_v26, 1  ;;  %vm1858_vm3 = vcmp.lt.s32.totalorder %v3922_v41, 112 }
 0x2bd   : > { %v1464_v40 = vmul.f32 %v4936_v5, %v1459_v7  ;;  %v1465_v19 = vmul.f32 %v4936_v5, %v1458_v38 }
 0x2bf   : > { %v1473_v23 = vmul.f32 %v1469_v11, %v1464_v40  ;;  %v1474_v42 = vmul.f32 %v1470_v58, %v1465_v19  ;;  %v4449_v5 = vpop.permute.xlu1 %1664 }
 0x2c1   : > { %v1475_v44 = vadd.f32 %v1473_v23, %v1451_v27  ;;  %v1476_v6 = vadd.f32 %v1474_v42, %v1452_v0  ;;  %v1539_v0 = vld [vmem:[#allocation6 + $0x43] ss:$8 sm:$0x3]  ;;  %v3339_v23 = vmov 46  }
 0x2c2   : > { %2310 = vrot.lane.b32.xlu1 %v3664_v20, %s3334_s23  ;;  %1880 = vrot.lane.b32.xlu0 %v3666_v21, %s4937_s27  ;;  %v1541_v58 = vperm.slane %v1539_v0, 0  ;;  %v1542_v56 = vperm.slane %v1539_v0, 1  ;;  %s4940_s27 = smov 108  }
 0x2c3   : > { %v1480_v45 = vpop.permute.xlu2 %1479 }
 0x2c4   : > { %3030 = vset.pattern.permute.xlu2 %v3335_v22  ;;  %v1482_v12 = vsel %vm1481_vm4, %v1478_v35, %v1480_v45  ;;  %v1483_v52 = vsel %vm1481_vm4, %v1480_v45, %v1478_v35  ;;  %v1526_v37 = vpop.permute.xlu0 %1525  ;;  %v1565_v22 = vperm.slane %v1563_v9, 0  ;;  %vm1882_vm4 = vcmp.lt.s32.totalorder %v3922_v41, 111 }
 0x2c5   : > { %1742 = vperm.xlu2 %3030, %v4294_v16   ;;  %v1488_v28 = vmul.f32 %v4348_v10, %v1483_v52  ;;  %v1489_v48 = vmul.f32 %v4348_v10, %v1482_v12 }
 0x2c7   : > { %v1497_v2 = vmul.f32 %v1493_v14, %v1488_v28  ;;  %v1498_v60 = vmul.f32 %v1494_v18, %v1489_v48  ;;  %v3341_v28 = vmov 47   ;;  %v4461_v48 = vpop.permute.xlu1 %1686 }
 0x2c9   : > { %v1499_v55 = vadd.f32 %v1497_v2, %v1475_v44  ;;  %v1500_v47 = vadd.f32 %v1498_v60, %v1476_v6 }
 0x2ca   : > { %2334 = vrot.lane.b32.xlu1 %v3664_v20, %s3336_s14  ;;  %1904 = vrot.lane.b32.xlu0 %v3666_v21, %s4938_s18  ;;  %s4941_s18 = smov 100  }
 0x2cb   : > { %v1504_v35 = vpop.permute.xlu2 %1503 }
 0x2cc   : > { %v1506_v10 = vsel %vm1505_vm5, %v1502_v32, %v1504_v35  ;;  %v1507_v8 = vsel %vm1505_vm5, %v1504_v35, %v1502_v32  ;;  %v1550_v51 = vpop.permute.xlu0 %1549  ;;  %vm1906_vm5 = vcmp.lt.s32.totalorder %v3922_v41, 110 }
 0x2cd   : > { %3031 = vset.pattern.permute.xlu2 %v3337_v15  ;;  %v1512_v46 = vmul.f32 %v4374_v36, %v1507_v8  ;;  %v1513_v34 = vmul.f32 %v4374_v36, %v1506_v10 }
 0x2ce   : > { %1766 = vperm.xlu2 %3031, %v4294_v16  }
 0x2cf   : > { %v1521_v13 = vmul.f32 %v1517_v63, %v1512_v46  ;;  %v1522_v27 = vmul.f32 %v1518_v3, %v1513_v34  ;;  %v1589_v63 = vperm.slane %v1587_v17, 0  ;;  %v4471_v0 = vpop.permute.xlu1 %1710 }
 0x2d1   : > { %v1523_v25 = vadd.f32 %v1521_v13, %v1499_v55  ;;  %v1524_v11 = vadd.f32 %v1522_v27, %v1500_v47  ;;  %v3342_v13 = vmov 48   ;;  %v1611_v27 = vld [vmem:[#allocation6 + $0x46] ss:$8 sm:$0x3] }
 0x2d2   : > { %2358 = vrot.lane.b32.xlu1 %v3664_v20, %s3338_s28  ;;  %1928 = vrot.lane.b32.xlu0 %v3666_v21, %s4939_s22  ;;  %s4942_s22 = smov 99  }
 0x2d3   : > { %v1528_v38 = vpop.permute.xlu2 %1527 }
 0x2d4   : > { %v1530_v36 = vsel %vm1529_vm6, %v1526_v37, %v1528_v38  ;;  %v1531_v7 = vsel %vm1529_vm6, %v1528_v38, %v1526_v37  ;;  %v1574_v32 = vpop.permute.xlu0 %1573  ;;  %vm1930_vm6 = vcmp.lt.s32.totalorder %v3922_v41, 109 }
 0x2d5   : > { %v1536_v40 = vmul.f32 %v4392_v29, %v1531_v7  ;;  %v1537_v19 = vmul.f32 %v4392_v29, %v1530_v36  ;;  %v1566_v29 = vperm.slane %v1563_v9, 1  ;;  %v1635_v9 = vld [vmem:[#allocation6 + $0x47] ss:$8 sm:$0x3] }
 0x2d6   : > { %3032 = vset.pattern.permute.xlu2 %v3339_v23 }
 0x2d7   : > { %1790 = vperm.xlu2 %3032, %v4294_v16   ;;  %v1545_v42 = vmul.f32 %v1541_v58, %v1536_v40  ;;  %v1546_v26 = vmul.f32 %v1542_v56, %v1537_v19  ;;  %v1614_v56 = vperm.slane %v1611_v27, 1 }
 0x2d9   : > { %v1547_v44 = vadd.f32 %v1545_v42, %v1523_v25  ;;  %v1548_v6 = vadd.f32 %v1546_v26, %v1524_v11  ;;  %v3343_v25 = vmov 75   ;;  %v3344_v26 = vmov 49  }
 0x2da   : > { %2382 = vrot.lane.b32.xlu1 %v3664_v20, %s3340_s29  ;;  %1952 = vrot.lane.b32.xlu0 %v3666_v21, %s4940_s27  ;;  %s4943_s27 = smov 98  }
 0x2db   : > { %v1552_v14 = vpop.permute.xlu2 %1551 }
 0x2dc   : > { %v1554_v18 = vsel %vm1553_vm7, %v1550_v51, %v1552_v14  ;;  %v1555_v45 = vsel %vm1553_vm7, %v1552_v14, %v1550_v51  ;;  %v1598_v12 = vpop.permute.xlu0 %1597  ;;  %v4483_v14 = vpop.permute.xlu1 %1734  ;;  %vm1954_vm7 = vcmp.lt.s32.totalorder %v3922_v41, 108 }
 0x2dd   : > { %v1560_v52 = vmul.f32 %v4402_v50, %v1555_v45  ;;  %v1561_v37 = vmul.f32 %v4402_v50, %v1554_v18  ;;  %v1590_v50 = vperm.slane %v1587_v17, 1  ;;  %v1638_v18 = vperm.slane %v1635_v9, 1 }
 0x2df   : > { %3033 = vset.pattern.permute.xlu2 %v3341_v28  ;;  %v1569_v2 = vmul.f32 %v1565_v22, %v1560_v52  ;;  %v1570_v60 = vmul.f32 %v1566_v29, %v1561_v37  ;;  %v3345_v29 = vmov 77  }
 0x2e0   : > { %1814 = vperm.xlu2 %3033, %v4294_v16  }
 0x2e1   : > { %v1571_v55 = vadd.f32 %v1569_v2, %v1547_v44  ;;  %v1572_v47 = vadd.f32 %v1570_v60, %v1548_v6  ;;  %v1652_v44 = vld [vmem:[#allocation6 + $0x50] ss:$8 sm:$0x3] }
 0x2e2   : > { %2407 = vperm.xlu1 %3058, %v4294_v16   ;;  %1976 = vrot.lane.b32.xlu0 %v3666_v21, %s4941_s18  ;;  %v1655_v52 = vperm.slane %v1652_v44, 1  ;;  %s4944_s18 = smov 97  }
 0x2e3   : > { %v1576_v3 = vpop.permute.xlu2 %1575 }
 0x2e4   : > { %v1578_v35 = vsel %vm1577_vm8, %v1574_v32, %v1576_v3  ;;  %v1579_v10 = vsel %vm1577_vm8, %v1576_v3, %v1574_v32  ;;  %v1622_v8 = vpop.permute.xlu0 %1621  ;;  %vm1978_vm8 = vcmp.lt.s32.totalorder %v3922_v41, 100 }
 0x2e5   : > { %v1584_v51 = vmul.f32 %v4414_v4, %v1579_v10  ;;  %v1585_v15 = vmul.f32 %v4414_v4, %v1578_v35  ;;  %v1613_v4 = vperm.slane %v1611_v27, 0  ;;  %v3346_v10 = vmov 50   ;;  %v1676_v27 = vld [vmem:[#allocation6 + $0x51] ss:$8 sm:$0x3] }
 0x2e7   : > { %v1593_v46 = vmul.f32 %v1589_v63, %v1584_v51  ;;  %v1594_v34 = vmul.f32 %v1590_v50, %v1585_v15 }
 0x2e8   : > { %3034 = vset.pattern.permute.xlu2 %v3342_v13 }
 0x2e9   : > { %1838 = vperm.xlu2 %3034, %v4294_v16   ;;  %v1595_v11 = vadd.f32 %v1593_v46, %v1571_v55  ;;  %v1596_v58 = vadd.f32 %v1594_v34, %v1572_v47 }
 0x2ea   : > { %3061 = vset.pattern.permute.xlu1 %v3343_v25  ;;  %2000 = vrot.lane.b32.xlu0 %v3666_v21, %s4942_s22  ;;  %s4945_s22 = smov 96   ;;  %v3348_v25 = vmov 51  }
 0x2eb   : > { %2458 = vperm.xlu1 %3061, %v4294_v16   ;;  %v1600_v38 = vpop.permute.xlu2 %1599 }
 0x2ec   : > { %v1602_v36 = vsel %vm1601_vm9, %v1598_v12, %v1600_v38  ;;  %v1603_v7 = vsel %vm1601_vm9, %v1600_v38, %v1598_v12  ;;  %v1647_v32 = vpop.permute.xlu0 %1646  ;;  %v1654_v12 = vperm.slane %v1652_v44, 0  ;;  %vm2002_vm9 = vcmp.lt.s32.totalorder %v3922_v41, 99 }
 0x2ed   : > { %v1608_v40 = vmul.f32 %v4424_v59, %v1603_v7  ;;  %v1609_v19 = vmul.f32 %v4424_v59, %v1602_v36  ;;  %v1637_v59 = vperm.slane %v1635_v9, 0  ;;  %v1649_v60 = vmul.f32 %v1647_v32, %v3664_v20 }
 0x2ee   : > { %v1650_v17 = vmul.f32 %v1647_v32, %v3666_v21 }
 0x2ef   : > { %v1617_v23 = vmul.f32 %v1613_v4, %v1608_v40  ;;  %v1618_v42 = vmul.f32 %v1614_v56, %v1609_v19  ;;  %v1658_v3 = vmul.f32 %v1654_v12, %v1649_v60  ;;  %v4946_v40 = vmov 0  }
 0x2f0   : > { %v1659_v35 = vmul.f32 %v1655_v52, %v1650_v17  ;;  %v1724_v17 = vld [vmem:[#allocation6 + $0x53] ss:$8 sm:$0x3] }
 0x2f1   : > { %3035 = vset.pattern.permute.xlu2 %v3344_v26  ;;  %v1619_v6 = vadd.f32 %v1617_v23, %v1595_v11  ;;  %v1620_v22 = vadd.f32 %v1618_v42, %v1596_v58  ;;  %v1678_v11 = vperm.slane %v1676_v27, 0  ;;  %v1679_v58 = vperm.slane %v1676_v27, 1  ;;  %v1700_v26 = vld [vmem:[#allocation6 + $0x52] ss:$8 sm:$0x3] }
 0x2f2   : > { %1862 = vperm.xlu2 %3035, %v4294_v16   ;;  %2024 = vrot.lane.b32.xlu0 %v3666_v21, %s4943_s27  ;;  %s4955_s27 = sld [smem:[#allocation53_spill]] }
 0x2f3   : > { %3063 = vset.pattern.permute.xlu1 %v3345_v29  ;;  %v1624_v45 = vpop.permute.xlu2 %1623 }
 0x2f4   : > { %2492 = vperm.xlu1 %3063, %v4294_v16   ;;  %v1626_v37 = vsel %vm1625_vm10, %v1622_v8, %v1624_v45  ;;  %v1627_v28 = vsel %vm1625_vm10, %v1624_v45, %v1622_v8  ;;  %v1689_v2 = vpop.permute.xlu0 %1688  ;;  %v3347_v8 = vmov 80   ;;  %vm2026_vm10 = vcmp.lt.s32.totalorder %v3922_v41, 98 }
 0x2f5   : > { %v1632_v55 = vmul.f32 %v4439_v31, %v1627_v28  ;;  %v1633_v47 = vmul.f32 %v4439_v31, %v1626_v37  ;;  %v4494_v31 = vpop.permute.xlu1 %1758  ;;  %v1691_v29 = vsel %vm1690_vm12, %v4461_v48, %v1689_v2 }
 0x2f7   : > { %v1641_v63 = vmul.f32 %v1637_v59, %v1632_v55  ;;  %v1642_v50 = vmul.f32 %v1638_v18, %v1633_v47  ;;  %v1692_v59 = vsel %vm1690_vm12, %v1689_v2, %v4461_v48  ;;  %v3350_v48 = vmov 53  }
 0x2f8   : > { %v1726_v2 = vperm.slane %v1724_v17, 0  ;;  %vm2074_vm12 = vcmp.lt.s32.totalorder %v3922_v41, 96 }
 0x2f9   : > { %v1643_v51 = vadd.f32 %v1641_v63, %v1619_v6  ;;  %v1644_v15 = vadd.f32 %v1642_v50, %v1620_v22  ;;  %v1702_v6 = vperm.slane %v1700_v26, 0  ;;  %v1703_v22 = vperm.slane %v1700_v26, 1  ;;  %v1772_v26 = vld [vmem:[#allocation6 + $0x55] ss:$8 sm:$0x3] }
 0x2fa   : > { %3036 = vset.pattern.permute.xlu2 %v3346_v10  ;;  %2048 = vrot.lane.b32.xlu0 %v3666_v21, %s4944_s18  ;;  %v1727_v50 = vperm.slane %v1724_v17, 1  ;;  %v1796_v17 = vld [vmem:[#allocation6 + $0x56] ss:$8 sm:$0x3] }
 0x2fb   : > { %1886 = vperm.xlu2 %3036, %v4294_v16   ;;  %v1663_v20 = vpop.permute.xlu2 %1662  ;;  %v1660_v46 = vadd.f32 %v1658_v3, %v1643_v51  ;;  %v1661_v34 = vadd.f32 %v1659_v35, %v1644_v15 }
 0x2fc   : > { %3066 = vset.pattern.permute.xlu1 %v3347_v8  ;;  %v1713_v13 = vpop.permute.xlu0 %1712  ;;  %v1667_v4 = vsel %vm1666_vm11, %v1663_v20, %v4449_v5  ;;  %v1668_v56 = vsel %vm1666_vm11, %v4449_v5, %v1663_v20  ;;  %v3349_v5 = vmov 52   ;;  %vm2050_vm11 = vcmp.lt.s32.totalorder %v3922_v41, 97 }
 0x2fd   : > { %2543 = vperm.xlu1 %3066, %v4294_v16   ;;  %v4503_v42 = vpop.permute.xlu1 %1782  ;;  %v1715_v3 = vsel %vm1714_vm13, %v4471_v0, %v1713_v13  ;;  %v1716_v35 = vsel %vm1714_vm13, %v1713_v13, %v4471_v0  ;;  %v3351_v0 = vmov 54   ;;  %vm2098_vm13 = vcmp.lt.s32.totalorder %v3922_v41, 95 }
 0x302   : > { %2072 = vrot.lane.b32.xlu0 %v3666_v21, %s4945_s22 }
 0x303   : > { %3037 = vset.pattern.permute.xlu2 %v3348_v25  ;;  %v1671_v38 = vpop.permute.xlu2 %1670 }
 0x304   : > { %1910 = vperm.xlu2 %3037, %v4294_v16   ;;  %v1673_v36 = vmul.f32 %v1671_v38, %v1667_v4  ;;  %v1674_v7 = vmul.f32 %v1671_v38, %v1668_v56  ;;  %v1737_v32 = vpop.permute.xlu0 %1736 }
 0x305   : > { %3068 = vset.pattern.permute.xlu1 %v4946_v40  ;;  %v4511_v60 = vpop.permute.xlu1 %1806  ;;  %v1739_v4 = vsel %vm1738_vm14, %v4483_v14, %v1737_v32  ;;  %v1740_v56 = vsel %vm1738_vm14, %v1737_v32, %v4483_v14  ;;  %v1774_v14 = vperm.slane %v1772_v26, 0  ;;  %v1775_v32 = vperm.slane %v1772_v26, 1  ;;  %v1844_v26 = vld [vmem:[#allocation6 + $0x60] ss:$8 sm:$0x3] }
 0x306   : > { %v1682_v19 = vmul.f32 %v1678_v11, %v1673_v36  ;;  %v1683_v23 = vmul.f32 %v1679_v58, %v1674_v7  ;;  %vm2122_vm14 = vcmp.lt.s32.totalorder %v3922_v41, 94 }
 0x308   : > { %v1684_v9 = vadd.f32 %v1682_v19, %v1660_v46  ;;  %v1685_v44 = vadd.f32 %v1683_v23, %v1661_v34  ;;  %v1748_v46 = vld [vmem:[#allocation6 + $0x54] ss:$8 sm:$0x3] }
 0x309   : > { %v1750_v13 = vperm.slane %v1748_v46, 0  ;;  %v1751_v58 = vperm.slane %v1748_v46, 1  ;;  %v1820_v46 = vld [vmem:[#allocation6 + $0x57] ss:$8 sm:$0x3] }
 0x30a   : > { %2096 = vrot.lane.b32.xlu0 %v3666_v21, %s3321_s25 }
 0x30c   : > { %3038 = vset.pattern.permute.xlu2 %v3349_v5  ;;  %v1761_v18 = vpop.permute.xlu0 %1760 }
 0x30d   : > { %1934 = vperm.xlu2 %3038, %v4294_v16   ;;  %v1695_v45 = vpop.permute.xlu2 %1694  ;;  %v4523_v25 = vpop.permute.xlu1 %1830 }
 0x30e   : > { %v1697_v12 = vmul.f32 %v1695_v45, %v1691_v29  ;;  %v1698_v52 = vmul.f32 %v1695_v45, %v1692_v59  ;;  %v1764_v29 = vsel %vm1762_vm15, %v1761_v18, %v4494_v31 }
 0x310   : > { %v1706_v37 = vmul.f32 %v1702_v6, %v1697_v12  ;;  %v1707_v28 = vmul.f32 %v1703_v22, %v1698_v52  ;;  %v3352_v6 = vmov 55   ;;  %v1763_v22 = vsel %vm1762_vm15, %v4494_v31, %v1761_v18 }
 0x311   : > { %v1798_v31 = vperm.slane %v1796_v17, 0  ;;  %v1799_v18 = vperm.slane %v1796_v17, 1  ;;  %v1868_v17 = vld [vmem:[#allocation6 + $0x61] ss:$8 sm:$0x3]  ;;  %vm2146_vm15 = vcmp.lt.s32.totalorder %v3922_v41, 93 }
 0x312   : > { %v1708_v55 = vadd.f32 %v1706_v37, %v1684_v9  ;;  %v1709_v47 = vadd.f32 %v1707_v28, %v1685_v44  ;;  %2120 = vrot.lane.b32.xlu0 %v3666_v21, %s3322_s11  ;;  %s2652_s11 = scalar_lea.sflag [#allocation5], %s3551_s24 }
 0x314   : > { %v4516_v63 = vpop.permute.xlu0 %1784 }
 0x315   : > { %3039 = vset.pattern.permute.xlu2 %v3350_v48  ;;  %v4534_v5 = vpop.permute.xlu1 %1854 }
 0x316   : > { %1958 = vperm.xlu2 %3039, %v4294_v16   ;;  %v1719_v10 = vpop.permute.xlu2 %1718 }
 0x317   : > { %v1721_v51 = vmul.f32 %v1719_v10, %v1715_v3  ;;  %v1722_v15 = vmul.f32 %v1719_v10, %v1716_v35  ;;  %v1788_v3 = vsel %vm1786_vm0, %v4516_v63, %v4503_v42 }
 0x319   : > { %v1730_v20 = vmul.f32 %v1726_v2, %v1721_v51  ;;  %v1731_v8 = vmul.f32 %v1727_v50, %v1722_v15  ;;  %v3353_v2 = vmov 56   ;;  %v1787_v50 = vsel %vm1786_vm0, %v4503_v42, %v4516_v63 }
 0x31a   : > { %2144 = vrot.lane.b32.xlu0 %v3666_v21, %s3324_s10  ;;  %v1823_v42 = vperm.slane %v1820_v46, 1  ;;  %vm2170_vm0 = vcmp.lt.s32.totalorder %v3922_v41, 92 }
 0x31b   : > { %v1732_v34 = vadd.f32 %v1730_v20, %v1708_v55  ;;  %v1733_v27 = vadd.f32 %v1731_v8, %v1709_v47 }
 0x31c   : > { %v4526_v11 = vpop.permute.xlu0 %1808 }
 0x31d   : > { %v4542_v48 = vpop.permute.xlu1 %1878 }
 0x31e   : > { %3040 = vset.pattern.permute.xlu2 %v3351_v0  ;;  %v3354_v0 = vmov 57  }
 0x31f   : > { %1982 = vperm.xlu2 %3040, %v4294_v16   ;;  %v1743_v38 = vpop.permute.xlu2 %1742 }
 0x320   : > { %v1745_v36 = vmul.f32 %v1743_v38, %v1739_v4  ;;  %v1746_v7 = vmul.f32 %v1743_v38, %v1740_v56  ;;  %v1812_v4 = vsel %vm1810_vm1, %v4526_v11, %v4511_v60 }
 0x322   : > { %v1754_v19 = vmul.f32 %v1750_v13, %v1745_v36  ;;  %v1755_v23 = vmul.f32 %v1751_v58, %v1746_v7  ;;  %2168 = vrot.lane.b32.xlu0 %v3666_v21, %s3325_s21  ;;  %v1822_v13 = vperm.slane %v1820_v46, 0  ;;  %v1811_v58 = vsel %vm1810_vm1, %v4511_v60, %v4526_v11  ;;  %v1892_v46 = vld [vmem:[#allocation6 + $0x62] ss:$8 sm:$0x3] }
 0x323   : > { %v1847_v60 = vperm.slane %v1844_v26, 1 }
 0x324   : > { %v1756_v9 = vadd.f32 %v1754_v19, %v1732_v34  ;;  %v1757_v44 = vadd.f32 %v1755_v23, %v1733_v27  ;;  %v1833_v59 = vpop.permute.xlu0 %1832 }
 0x325   : > { %v4552_v63 = vpop.permute.xlu1 %1902  ;;  %v1836_v11 = vsel %vm1834_vm2, %v1833_v59, %v4523_v25 }
 0x327   : > { %3041 = vset.pattern.permute.xlu2 %v3352_v6  ;;  %v3355_v6 = vmov 58  }
 0x328   : > { %2006 = vperm.xlu2 %3041, %v4294_v16   ;;  %v1767_v45 = vpop.permute.xlu2 %1766 }
 0x329   : > { %v1769_v12 = vmul.f32 %v1767_v45, %v1763_v22  ;;  %v1770_v52 = vmul.f32 %v1767_v45, %v1764_v29 }
 0x32a   : > { %2192 = vrot.lane.b32.xlu0 %v3666_v21, %s3326_s30 }
 0x32b   : > { %v1778_v37 = vmul.f32 %v1774_v14, %v1769_v12  ;;  %v1779_v28 = vmul.f32 %v1775_v32, %v1770_v52  ;;  %v1846_v14 = vperm.slane %v1844_v26, 0  ;;  %v4569_v32 = vld [vmem:[%s4802_s9] sm:$0xff] }
 0x32c   : > { %v1857_v10 = vpop.permute.xlu0 %1856 }
 0x32d   : > { %v1780_v55 = vadd.f32 %v1778_v37, %v1756_v9  ;;  %v1781_v47 = vadd.f32 %v1779_v28, %v1757_v44  ;;  %v4572_v29 = vpop.permute.xlu1 %1926 }
 0x330   : > { %3042 = vset.pattern.permute.xlu2 %v3353_v2  ;;  %v1871_v2 = vperm.slane %v1868_v17, 1 }
 0x331   : > { %2030 = vperm.xlu2 %3042, %v4294_v16   ;;  %v1791_v35 = vpop.permute.xlu2 %1790 }
 0x332   : > { %v1793_v51 = vmul.f32 %v1791_v35, %v1787_v50  ;;  %v1794_v15 = vmul.f32 %v1791_v35, %v1788_v3  ;;  %2216 = vrot.lane.b32.xlu0 %v3666_v21, %s3327_s15 }
 0x334   : > { %v1802_v20 = vmul.f32 %v1798_v31, %v1793_v51  ;;  %v1803_v8 = vmul.f32 %v1799_v18, %v1794_v15  ;;  %v1881_v7 = vpop.permute.xlu0 %1880  ;;  %v1859_v31 = vsel %vm1858_vm3, %v4534_v5, %v1857_v10  ;;  %v1860_v18 = vsel %vm1858_vm3, %v1857_v10, %v4534_v5 }
 0x335   : > { %v4580_v51 = vpop.permute.xlu1 %1950  ;;  %v3358_v5 = vmov 60   ;;  %v1894_v10 = vperm.slane %v1892_v46, 0 }
 0x336   : > { %v1804_v34 = vadd.f32 %v1802_v20, %v1780_v55  ;;  %v1805_v27 = vadd.f32 %v1803_v8, %v1781_v47  ;;  %v3356_v55 = vmov 59   ;;  %v1870_v47 = vperm.slane %v1868_v17, 0  ;;  %v1940_v17 = vld [vmem:[#allocation6 + $0x64] ss:$8 sm:$0x3] }
 0x339   : > { %3043 = vset.pattern.permute.xlu2 %v3354_v0  ;;  %v3357_v0 = vmov 73  }
 0x33a   : > { %2054 = vperm.xlu2 %3043, %v4294_v16   ;;  %v1815_v56 = vpop.permute.xlu2 %1814  ;;  %2240 = vrot.lane.b32.xlu0 %v3666_v21, %s3328_s19  ;;  %v1835_v16 = vsel %vm1834_vm2, %v4523_v25, %v1833_v59  ;;  %s3166_s19 = scalar_lea.hbm %s4955_s27, 32 }
 0x33b   : > { %v1817_v38 = vmul.f32 %v1815_v56, %v1811_v58  ;;  %v1818_v36 = vmul.f32 %v1815_v56, %v1812_v4  ;;  %3059 = vset.pattern.permute.xlu0 %v3357_v0  ;;  %v1884_v58 = vsel %vm1882_vm4, %v1881_v7, %v4542_v48 }
 0x33c   : > { %v1905_v52 = vpop.permute.xlu0 %1904 }
 0x33d   : > { %v1826_v19 = vmul.f32 %v1822_v13, %v1817_v38  ;;  %v1827_v23 = vmul.f32 %v1823_v42, %v1818_v36  ;;  %v1895_v13 = vperm.slane %v1892_v46, 1  ;;  %v1883_v42 = vsel %vm1882_vm4, %v4542_v48, %v1881_v7  ;;  %v4588_v36 = vpop.permute.xlu1 %1974  ;;  %v1964_v46 = vld [vmem:[#allocation6 + $0x65] ss:$8 sm:$0x3] }
 0x33f   : > { %v1828_v9 = vadd.f32 %v1826_v19, %v1804_v34  ;;  %v1829_v44 = vadd.f32 %v1827_v23, %v1805_v27 }
 0x342   : > { %3044 = vset.pattern.permute.xlu2 %v3355_v6  ;;  %2264 = vrot.lane.b32.xlu0 %v3666_v21, %s3330_s17 }
 0x343   : > { %2078 = vperm.xlu2 %3044, %v4569_v32   ;;  %v1839_v22 = vpop.permute.xlu2 %1838 }
 0x344   : > { %v1841_v45 = vmul.f32 %v1839_v22, %v1835_v16  ;;  %v1842_v12 = vmul.f32 %v1839_v22, %v1836_v11  ;;  %v1929_v8 = vpop.permute.xlu0 %1928  ;;  %v1908_v16 = vsel %vm1906_vm5, %v1905_v52, %v4552_v63 }
 0x346   : > { %v1850_v37 = vmul.f32 %v1846_v14, %v1841_v45  ;;  %v1851_v28 = vmul.f32 %v1847_v60, %v1842_v12  ;;  %v3359_v14 = vmov 61   ;;  %v1907_v60 = vsel %vm1906_vm5, %v4552_v63, %v1905_v52 }
 0x347   : > { %v1942_v63 = vperm.slane %v1940_v17, 0  ;;  %v1943_v52 = vperm.slane %v1940_v17, 1  ;;  %vm2194_vm5 = vcmp.lt.s32.totalorder %v3922_v41, 84 }
 0x348   : > { %v1852_v25 = vadd.f32 %v1850_v37, %v1828_v9  ;;  %v1853_v59 = vadd.f32 %v1851_v28, %v1829_v44  ;;  %v1916_v9 = vld [vmem:[#allocation6 + $0x63] ss:$8 sm:$0x3]  ;;  %v4596_v28 = vpop.permute.xlu1 %1998 }
 0x349   : > { %v1918_v48 = vperm.slane %v1916_v9, 0  ;;  %v1919_v7 = vperm.slane %v1916_v9, 1 }
 0x34a   : > { %2288 = vrot.lane.b32.xlu0 %v3666_v21, %s3331_s20  ;;  %s4947_s20 = sld [smem:[#allocation51_spill]] }
 0x34b   : > { %3045 = vset.pattern.permute.xlu2 %v3356_v55 }
 0x34c   : > { %2102 = vperm.xlu2 %3045, %v4569_v32   ;;  %v1863_v50 = vpop.permute.xlu2 %1862  ;;  %v1953_v26 = vpop.permute.xlu0 %1952 }
 0x34d   : > { %v1865_v3 = vmul.f32 %v1863_v50, %v1859_v31  ;;  %v1866_v35 = vmul.f32 %v1863_v50, %v1860_v18  ;;  %v1932_v31 = vsel %vm1930_vm6, %v1929_v8, %v4572_v29 }
 0x34f   : > { %v1874_v15 = vmul.f32 %v1870_v47, %v1865_v3  ;;  %v1875_v20 = vmul.f32 %v1871_v2, %v1866_v35  ;;  %v3360_v47 = vmov 62   ;;  %v1931_v2 = vsel %vm1930_vm6, %v4572_v29, %v1929_v8 }
 0x350   : > { %v1966_v29 = vperm.slane %v1964_v46, 0  ;;  %v1967_v8 = vperm.slane %v1964_v46, 1  ;;  %vm2218_vm6 = vcmp.lt.s32.totalorder %v3922_v41, 83 }
 0x351   : > { %v1876_v34 = vadd.f32 %v1874_v15, %v1852_v25  ;;  %v1877_v27 = vadd.f32 %v1875_v20, %v1853_v59  ;;  %v4606_v20 = vpop.permute.xlu1 %2022 }
 0x352   : > { %2312 = vrot.lane.b32.xlu0 %v3666_v21, %s3334_s23  ;;  %s2755_s23 = sshll.u32 %s3551_s24, 4 }
 0x354   : > { %3046 = vset.pattern.permute.xlu2 %v3358_v5  ;;  %v1977_v55 = vpop.permute.xlu0 %1976  ;;  %v3361_v5 = vmov 63  }
 0x355   : > { %2126 = vperm.xlu2 %3046, %v4569_v32   ;;  %v1887_v4 = vpop.permute.xlu2 %1886 }
 0x356   : > { %v1889_v56 = vmul.f32 %v1887_v4, %v1883_v42  ;;  %v1890_v38 = vmul.f32 %v1887_v4, %v1884_v58 }
 0x358   : > { %v1898_v19 = vmul.f32 %v1894_v10, %v1889_v56  ;;  %v1899_v23 = vmul.f32 %v1895_v13, %v1890_v38  ;;  %v1955_v10 = vsel %vm1954_vm7, %v4580_v51, %v1953_v26  ;;  %v1956_v13 = vsel %vm1954_vm7, %v1953_v26, %v4580_v51  ;;  %v1988_v38 = vld [vmem:[#allocation6 + $0x66] ss:$8 sm:$0x3] }
 0x359   : > { %v1990_v51 = vperm.slane %v1988_v38, 0  ;;  %v1991_v26 = vperm.slane %v1988_v38, 1  ;;  %vm2242_vm7 = vcmp.lt.s32.totalorder %v3922_v41, 82 }
 0x35a   : > { %v1900_v44 = vadd.f32 %v1898_v19, %v1876_v34  ;;  %2336 = vrot.lane.b32.xlu0 %v3666_v21, %s3336_s14  ;;  %v1901_v6 = vadd.f32 %v1899_v23, %v1877_v27  ;;  %v4613_v23 = vpop.permute.xlu1 %2046  ;;  %s2768_s14 = sshll.u32 %s3473_s13, 4  ;;  %s506_s13 = scalar_lea.vmem [#allocation8], %s2755_s23 }
 0x35b   : > { %s2663_s18 = scalar_lea.hbm %s4955_s27, %s2768_s14  ;;  %s2665_s22 = sshll.u32 %s506_s13, 4  ;;  %s2666_s22 = int_to_ptr.vmem [resolvable:$true] %s2665_s22 }
 0x35c   : > { %v2001_v0 = vpop.permute.xlu0 %2000  ;;  %s2667_s25 = sshll.u32 %s2663_s18, 4  ;;  %s2668_s25 = int_to_ptr.hbm [resolvable:$true] %s2667_s25 }
 0x35d   : > { %3047 = vset.pattern.permute.xlu2 %v3359_v14  ;;  %v1979_v14 = vsel %vm1978_vm8, %v4588_v36, %v1977_v55  ;;  %s3160_s10 = sshra.s32 %s2668_s25, 4  ;;  %s3161_s10 = int_to_ptr.hbm [resolvable:$true] %s3160_s10 }
 0x35e   : > { %2150 = vperm.xlu2 %3047, %v4569_v32   ;;  %v1911_v11 = vpop.permute.xlu2 %1910  ;;  %s3162_s21 = scalar_lea.hbm %s3161_s10, 16  ;;  %p3167_p11 = scmp.lt.s32.totalorder %s3161_s10, %s4955_s27 }
 0x35f   : > { %v1913_v22 = vmul.f32 %v1911_v11, %v1907_v60  ;;  %v1914_v45 = vmul.f32 %v1911_v11, %v1908_v16  ;;  %v3363_v11 = vmov 78   ;;  %p3163_p1 = scmp.ne.s32.totalorder %s3161_s10, %s3162_s21  ;;  %p3168_p9 = scmp.lt.s32.totalorder %s3166_s19, %s3162_s21 }
 0x361   : > { %v1922_v12 = vmul.f32 %v1918_v48, %v1913_v22  ;;  %v1923_v37 = vmul.f32 %v1919_v7, %v1914_v45  ;;  %v1980_v48 = vsel %vm1978_vm8, %v1977_v55, %v4588_v36  ;;  %vm2266_vm8 = vcmp.lt.s32.totalorder %v3922_v41, 81  ;;  %p3164_p4 = pnand %p3163_p1, %p3522_p7  ;;  %p3169_p2 = por %p3168_p9, %p3167_p11 }
 0x362   : > { %2360 = vrot.lane.b32.xlu0 %v3666_v21, %s3338_s28 }
 0x363   : > { %v1924_v25 = vadd.f32 %v1922_v12, %v1900_v44  ;;  %v1925_v59 = vadd.f32 %v1923_v37, %v1901_v6  ;;  %v3362_v6 = vmov 64   ;;  %v2012_v12 = vld [vmem:[#allocation6 + $0x67] ss:$8 sm:$0x3]  ;;  %p3165_p8 = pneg %p3164_p4 }
 0x364   : > { %v2025_v44 = vpop.permute.xlu0 %2024  ;;  %v2014_v36 = vperm.slane %v2012_v12, 0  ;;  %v2015_v55 = vperm.slane %v2012_v12, 1  ;;  %v3367_v12 = vmov 68  }
 0x365   : > { %p3170_p10 = pnand %p3169_p2, %p3165_p8 }
 0x366   : > { %3048 = vset.pattern.permute.xlu2 %v3360_v47  ;;  %v2003_v47 = vsel %vm2002_vm9, %v4596_v28, %v2001_v0 }
 0x367   : > { %2174 = vperm.xlu2 %3048, %v4569_v32   ;;  %v1935_v18 = vpop.permute.xlu2 %1934 }
 0x368   : > { %v1937_v50 = vmul.f32 %v1935_v18, %v1931_v2  ;;  %v1938_v3 = vmul.f32 %v1935_v18, %v1932_v31 }
 0x36a   : > { %v1946_v35 = vmul.f32 %v1942_v63, %v1937_v50  ;;  %v1947_v15 = vmul.f32 %v1943_v52, %v1938_v3  ;;  %2384 = vrot.lane.b32.xlu0 %v3666_v21, %s3340_s29  ;;  %v2004_v63 = vsel %vm2002_vm9, %v2001_v0, %v4596_v28  ;;  %v2027_v0 = vsel %vm2026_vm10, %v4606_v20, %v2025_v44 }
 0x36b   : > { %vm2290_vm9 = vcmp.lt.s32.totalorder %v3922_v41, 80 }
 0x36c   : > { %v1948_v34 = vadd.f32 %v1946_v35, %v1924_v25  ;;  %v1949_v27 = vadd.f32 %v1947_v15, %v1925_v59  ;;  %v2071_v25 = vpop.permute.xlu1 %2070  ;;  %v3364_v59 = vmov 65   ;;  %v2049_v52 = vpop.permute.xlu0 %2048  ;;  %v2036_v35 = vld [vmem:[#allocation6 + $0x70] ss:$8 sm:$0x3] }
 0x36d   : > { %v2039_v28 = vperm.slane %v2036_v35, 1 }
 0x36f   : > { %3049 = vset.pattern.permute.xlu2 %v3361_v5  ;;  %v2038_v5 = vperm.slane %v2036_v35, 0  ;;  %v3368_v35 = vmov 69  }
 0x370   : > { %2198 = vperm.xlu2 %3049, %v4569_v32   ;;  %v1959_v42 = vpop.permute.xlu2 %1958 }
 0x371   : > { %v1961_v21 = vmul.f32 %v1959_v42, %v1955_v10  ;;  %v1962_v58 = vmul.f32 %v1959_v42, %v1956_v13 }
 0x372   : > { %2424 = vperm.xlu0 %3059, %v4569_v32  }
 0x373   : > { %v1970_v4 = vmul.f32 %v1966_v29, %v1961_v21  ;;  %v1971_v56 = vmul.f32 %v1967_v8, %v1962_v58  ;;  %v2028_v29 = vsel %vm2026_vm10, %v2025_v44, %v4606_v20  ;;  %v2051_v20 = vsel %vm2050_vm11, %v4613_v23, %v2049_v52 }
 0x374   : > { %v2073_v10 = vpop.permute.xlu0 %2072  ;;  %v2052_v44 = vsel %vm2050_vm11, %v2049_v52, %v4613_v23  ;;  %vm2314_vm10 = vcmp.lt.s32.totalorder %v3922_v41, 79  ;;  %vm2338_vm11 = vcmp.lt.s32.totalorder %v3922_v41, 78 }
 0x375   : > { %v1972_v19 = vadd.f32 %v1970_v4, %v1948_v34  ;;  %v1973_v9 = vadd.f32 %v1971_v56, %v1949_v27  ;;  %v2095_v34 = vpop.permute.xlu1 %2094  ;;  %v3365_v27 = vmov 66   ;;  %v2060_v4 = vld [vmem:[#allocation6 + $0x71] ss:$8 sm:$0x3] }
 0x378   : > { %3050 = vset.pattern.permute.xlu2 %v3362_v6  ;;  %v2063_v6 = vperm.slane %v2060_v4, 1 }
 0x379   : > { %2222 = vperm.xlu2 %3050, %v4569_v32   ;;  %v1983_v7 = vpop.permute.xlu2 %1982 }
 0x37a   : > { %v1985_v60 = vmul.f32 %v1983_v7, %v1979_v14  ;;  %v1986_v16 = vmul.f32 %v1983_v7, %v1980_v48  ;;  %3064 = vset.pattern.permute.xlu0 %v3363_v11  ;;  %v2084_v11 = vld [vmem:[#allocation6 + $0x72] ss:$8 sm:$0x3] }
 0x37b   : > { %2509 = vperm.xlu0 %3064, %v4569_v32  }
 0x37c   : > { %v1994_v22 = vmul.f32 %v1990_v51, %v1985_v60  ;;  %v1995_v45 = vmul.f32 %v1991_v26, %v1986_v16  ;;  %v2097_v7 = vpop.permute.xlu0 %2096 }
 0x37d   : > { %v2119_v51 = vpop.permute.xlu1 %2118 }
 0x37e   : > { %v1996_v37 = vadd.f32 %v1994_v22, %v1972_v19  ;;  %v1997_v17 = vadd.f32 %v1995_v45, %v1973_v9  ;;  %v3366_v19 = vmov 67   ;;  %v2062_v9 = vperm.slane %v2060_v4, 0 }
 0x381   : > { %3051 = vset.pattern.permute.xlu2 %v3364_v59  ;;  %v2075_v59 = vsel %vm2074_vm12, %v2071_v25, %v2073_v10 }
 0x382   : > { %2246 = vperm.xlu2 %3051, %v4569_v32   ;;  %v2007_v2 = vpop.permute.xlu2 %2006 }
 0x383   : > { %v2009_v31 = vmul.f32 %v2007_v2, %v2003_v47  ;;  %v2010_v18 = vmul.f32 %v2007_v2, %v2004_v63  ;;  %3069 = vset.pattern.permute.xlu0 %v4946_v40 }
 0x384   : > { %v2121_v52 = vpop.permute.xlu0 %2120 }
 0x385   : > { %v2018_v50 = vmul.f32 %v2014_v36, %v2009_v31  ;;  %v2019_v3 = vmul.f32 %v2015_v55, %v2010_v18  ;;  %v2076_v36 = vsel %vm2074_vm12, %v2073_v10, %v2071_v25  ;;  %v2143_v55 = vpop.permute.xlu1 %2142  ;;  %v2108_v18 = vld [vmem:[#allocation6 + $0x73] ss:$8 sm:$0x3]  ;;  %v2100_v25 = vsel %vm2098_vm13, %v2097_v7, %v2095_v34 }
 0x386   : > { %vm2362_vm12 = vcmp.lt.s32.totalorder %v3922_v41, 77 }
 0x387   : > { %v2020_v15 = vadd.f32 %v2018_v50, %v1996_v37  ;;  %v2021_v46 = vadd.f32 %v2019_v3, %v1997_v17  ;;  %v2086_v37 = vperm.slane %v2084_v11, 0  ;;  %v2087_v17 = vperm.slane %v2084_v11, 1 }
 0x38a   : > { %3052 = vset.pattern.permute.xlu2 %v3365_v27  ;;  %v2099_v27 = vsel %vm2098_vm13, %v2095_v34, %v2097_v7  ;;  %vm2386_vm13 = vcmp.lt.s32.totalorder %v3922_v41, 76 }
 0x38b   : > { %2270 = vperm.xlu2 %3052, %v4569_v32   ;;  %v2031_v8 = vpop.permute.xlu2 %2030 }
 0x38c   : > { %v2033_v13 = vmul.f32 %v2031_v8, %v2027_v0  ;;  %v2034_v42 = vmul.f32 %v2031_v8, %v2028_v29 }
 0x38d   : > { %v2167_v8 = vpop.permute.xlu1 %2166 }
 0x38e   : > { %v2042_v21 = vmul.f32 %v2038_v5, %v2033_v13  ;;  %v2043_v58 = vmul.f32 %v2039_v28, %v2034_v42  ;;  %v2569_v28 = vld [vmem:[%s4805_s12] sm:$0xff]  ;;  %v2145_v42 = vpop.permute.xlu0 %2144 }
 0x38f   : > { %2572 = vperm.xlu1 %3068, %v2569_v28  }
 0x390   : > { %v2044_v56 = vadd.f32 %v2042_v21, %v2020_v15  ;;  %v2045_v38 = vadd.f32 %v2043_v58, %v2021_v46  ;;  %v2110_v15 = vperm.slane %v2108_v18, 0  ;;  %v2111_v46 = vperm.slane %v2108_v18, 1  ;;  %v608_v21 = vld [vmem:[%s4799_s6] sm:$0xff]  ;;  %v2132_v58 = vld [vmem:[#allocation6 + $0x74] ss:$8 sm:$0x3] }
 0x393   : > { %3053 = vset.pattern.permute.xlu2 %v3366_v19  ;;  %v2134_v19 = vperm.slane %v2132_v58, 0 }
 0x394   : > { %2294 = vperm.xlu2 %3053, %v4569_v32   ;;  %v2055_v26 = vpop.permute.xlu2 %2054 }
 0x395   : > { %v2057_v14 = vmul.f32 %v2055_v26, %v2051_v20  ;;  %v2058_v48 = vmul.f32 %v2055_v26, %v2052_v44  ;;  %v2124_v20 = vsel %vm2122_vm14, %v2121_v52, %v2119_v51  ;;  %v4646_v7 = vpop.permute.xlu1 %2190 }
 0x396   : > { %v2169_v11 = vpop.permute.xlu0 %2168 }
 0x397   : > { %v2066_v60 = vmul.f32 %v2062_v9, %v2057_v14  ;;  %v2067_v16 = vmul.f32 %v2063_v6, %v2058_v48  ;;  %v2135_v9 = vperm.slane %v2132_v58, 1  ;;  %v2123_v6 = vsel %vm2122_vm14, %v2119_v51, %v2121_v52 }
 0x398   : > { %v3370_v51 = vmov 71   ;;  %v2172_v28 = vsel %vm2170_vm0, %v2169_v11, %v2167_v8 }
 0x399   : > { %v2068_v22 = vadd.f32 %v2066_v60, %v2044_v56  ;;  %v2069_v45 = vadd.f32 %v2067_v16, %v2045_v38  ;;  %v609_v56 = vadd.f32 %v608_v21, %v4363_v53  ;;  %v3369_v38 = vmov 70  }
 0x39b   : > { %v610_v48 = vmax.f32 %v609_v56, 0.0 }
 0x39c   : > { %3054 = vset.pattern.permute.xlu2 %v3367_v12 }
 0x39d   : > { %2318 = vperm.xlu2 %3054, %v4569_v32   ;;  %v2079_v23 = vpop.permute.xlu2 %2078  ;;  %v4650_v18 = vpop.permute.xlu1 %2214 }
 0x39e   : > { %v2081_v47 = vmul.f32 %v2079_v23, %v2075_v59  ;;  %v2082_v63 = vmul.f32 %v2079_v23, %v2076_v36  ;;  %v2147_v36 = vsel %vm2146_vm15, %v2143_v55, %v2145_v42  ;;  %v2148_v23 = vsel %vm2146_vm15, %v2145_v42, %v2143_v55 }
 0x3a0   : > { %v2090_v2 = vmul.f32 %v2086_v37, %v2081_v47  ;;  %v2091_v31 = vmul.f32 %v2087_v17, %v2082_v63  ;;  %v2758_v37 = vmul.f32 -1.442695, %v610_v48 }
 0x3a2   : > { %v2092_v50 = vadd.f32 %v2090_v2, %v2068_v22  ;;  %v2093_v3 = vadd.f32 %v2091_v31, %v2069_v45  ;;  %v2156_v22 = vld [vmem:[#allocation6 + $0x75] ss:$8 sm:$0x3]  ;;  %v2589_v45 = vld [vmem:[#allocation2] sm:$0x1]  ;;  %3072 = vpow2.f32 %v2758_v37 }
 0x3a3   : > { %2592 = vperm.xlu0 %3069, %v2589_v45   ;;  %v2158_v17 = vperm.slane %v2156_v22, 0  ;;  %v2159_v59 = vperm.slane %v2156_v22, 1 }
 0x3a5   : > { %3055 = vset.pattern.permute.xlu2 %v3368_v35  ;;  %v4653_v35 = vpop.permute.xlu0 %2192  ;;  %v4656_v58 = vpop.permute.xlu1 %2238 }
 0x3a6   : > { %2342 = vperm.xlu2 %3055, %v4569_v32   ;;  %v2103_v5 = vpop.permute.xlu2 %2102 }
 0x3a7   : > { %v2105_v0 = vmul.f32 %v2103_v5, %v2099_v27  ;;  %v2106_v29 = vmul.f32 %v2103_v5, %v2100_v25  ;;  %v3371_v27 = vmov 74   ;;  %v2171_v5 = vsel %vm2170_vm0, %v2167_v8, %v2169_v11 }
 0x3a9   : > { %v2114_v10 = vmul.f32 %v2110_v15, %v2105_v0  ;;  %v2115_v13 = vmul.f32 %v2111_v46, %v2106_v29  ;;  %v3073_v46 = vpop.eup %3072 }
 0x3ab   : > { %v2116_v34 = vadd.f32 %v2114_v10, %v2092_v50  ;;  %v2117_v4 = vadd.f32 %v2115_v13, %v2093_v3  ;;  %v2180_v50 = vld [vmem:[#allocation6 + $0x76] ss:$8 sm:$0x3]  ;;  %v614_v13 = vadd.f32 1.0, %v3073_v46 }
 0x3ac   : > { %v2182_v55 = vperm.slane %v2180_v50, 0  ;;  %v2183_v25 = vperm.slane %v2180_v50, 1  ;;  %v2195_v50 = vsel %vm2194_vm5, %v4646_v7, %v4653_v35 }
 0x3ad   : > { %3074 = vrcp.f32 %v614_v13  ;;  %v2217_v56 = vpop.permute.xlu0 %2216  ;;  %vm620_vm2 = vweird.f32 %v614_v13 }
 0x3ae   : > { %3056 = vset.pattern.permute.xlu2 %v3369_v38  ;;  %v3372_v38 = vmov 76  }
 0x3af   : > { %2366 = vperm.xlu2 %3056, %v4569_v32   ;;  %v2127_v44 = vpop.permute.xlu2 %2126 }
 0x3b0   : > { %v2129_v26 = vmul.f32 %v2127_v44, %v2123_v6  ;;  %v2130_v14 = vmul.f32 %v2127_v44, %v2124_v20  ;;  %v3373_v44 = vmov 79  }
 0x3b2   : > { %v2138_v60 = vmul.f32 %v2134_v19, %v2129_v26  ;;  %v2139_v16 = vmul.f32 %v2135_v9, %v2130_v14  ;;  %v4663_v9 = vpop.permute.xlu1 %2262 }
 0x3b3   : > { %v3075_v19 = vpop.eup %3074 }
 0x3b4   : > { %v2140_v53 = vadd.f32 %v2138_v60, %v2116_v34  ;;  %v2141_v12 = vadd.f32 %v2139_v16, %v2117_v4  ;;  %v616_v6 = vmul.f32 %v3075_v19, %v614_v13  ;;  %v2559_v60 = vld [vmem:[%s4947_s20] sm:$0xff]  ;;  %vm621_vm1 = vweird.f32 %v3075_v19 }
 0x3b5   : > { %v2241_v20 = vpop.permute.xlu0 %2240  ;;  %vm622_vm3 = vmor %vm620_vm2, %vm621_vm1 }
 0x3b6   : > { %v617_v14 = vsub.f32 1.0, %v616_v6 }
 0x3b7   : > { %3057 = vset.pattern.permute.xlu2 %v3370_v51 }
 0x3b8   : > { %2390 = vperm.xlu2 %3057, %v4569_v32   ;;  %v2151_v47 = vpop.permute.xlu2 %2150  ;;  %v618_v48 = vmul.f32 %v3075_v19, %v617_v14 }
 0x3b9   : > { %v2153_v63 = vmul.f32 %v2151_v47, %v2147_v36  ;;  %v2154_v52 = vmul.f32 %v2151_v47, %v2148_v23 }
 0x3ba   : > { %v2287_v16 = vpop.permute.xlu1 %2286  ;;  %v619_v45 = vadd.f32 %v3075_v19, %v618_v48 }
 0x3bb   : > { %v2162_v2 = vmul.f32 %v2158_v17, %v2153_v63  ;;  %v2163_v31 = vmul.f32 %v2159_v59, %v2154_v52 }
 0x3bd   : > { %v2164_v3 = vadd.f32 %v2162_v2, %v2140_v53  ;;  %v2165_v15 = vadd.f32 %v2163_v31, %v2141_v12  ;;  %v2265_v11 = vpop.permute.xlu0 %2264  ;;  %v626_v53 = vand.u32 2147483648, %v614_v13  ;;  %v624_v12 = vand.u32 2147483647, %v614_v13  ;;  %v2204_v31 = vld [vmem:[#allocation6 + $0x77] ss:$8 sm:$0x3] }
 0x3be   : > { %v2206_v46 = vperm.slane %v2204_v31, 0 }
 0x3bf   : > { %v627_v37 = vor.u32 1.1754944e-38, %v626_v53  ;;  %vm625_vm4 = vcmp.eq.f32.partialorder %v624_v12, 8.507059e+37 }
 0x3c0   : > { %3060 = vset.pattern.permute.xlu2 %v3371_v27  ;;  %v2207_v27 = vperm.slane %v2204_v31, 1 }
 0x3c1   : > { %2441 = vperm.xlu2 %3060, %v4569_v32   ;;  %v2175_v0 = vpop.permute.xlu2 %2174 }
 0x3c2   : > { %v2177_v29 = vmul.f32 %v2175_v0, %v2171_v5  ;;  %v2178_v10 = vmul.f32 %v2175_v0, %v2172_v28  ;;  %v2311_v17 = vpop.permute.xlu1 %2310  ;;  %v2219_v5 = vsel %vm2218_vm6, %v4650_v18, %v2217_v56  ;;  %v2220_v28 = vsel %vm2218_vm6, %v2217_v56, %v4650_v18 }
 0x3c3   : > { %v2243_v0 = vsel %vm2242_vm7, %v4656_v58, %v2241_v20  ;;  %v2267_v18 = vsel %vm2266_vm8, %v4663_v9, %v2265_v11  ;;  %v2268_v56 = vsel %vm2266_vm8, %v2265_v11, %v4663_v9 }
 0x3c4   : > { %v2186_v42 = vmul.f32 %v2182_v55, %v2177_v29  ;;  %v2187_v21 = vmul.f32 %v2183_v25, %v2178_v10 }
 0x3c5   : > { %v2289_v36 = vpop.permute.xlu0 %2288 }
 0x3c6   : > { %v4658_v34 = vadd.f32 %v2186_v42, %v2164_v3  ;;  %v4660_v4 = vadd.f32 %v2187_v21, %v2165_v15  ;;  %v2196_v3 = vsel %vm2194_vm5, %v4653_v35, %v4646_v7  ;;  %v2228_v15 = vld [vmem:[#allocation6 + $0x80] ss:$8 sm:$0x3]  ;;  %v2252_v7 = vld [vmem:[#allocation6 + $0x81] ss:$8 sm:$0x3]  ;;  %v2291_v14 = vsel %vm2290_vm9, %v2287_v16, %v2289_v36 }
 0x3c7   : > { %v2230_v29 = vperm.slane %v2228_v15, 0  ;;  %v2231_v10 = vperm.slane %v2228_v15, 1  ;;  %v2254_v6 = vperm.slane %v2252_v7, 0 }
 0x3c9   : > { %3062 = vset.pattern.permute.xlu2 %v3372_v38  ;;  %v2244_v38 = vsel %vm2242_vm7, %v2241_v20, %v4656_v58  ;;  %v2292_v58 = vsel %vm2290_vm9, %v2289_v36, %v2287_v16 }
 0x3ca   : > { %2475 = vperm.xlu2 %3062, %v4569_v32   ;;  %v2199_v8 = vpop.permute.xlu2 %2198  ;;  %v4670_v23 = vpop.permute.xlu1 %2334 }
 0x3cb   : > { %v2201_v55 = vmul.f32 %v2199_v8, %v2195_v50  ;;  %v2202_v25 = vmul.f32 %v2199_v8, %v2196_v3  ;;  %v2324_v50 = vld [vmem:[#allocation6 + $0x84] ss:$8 sm:$0x3] }
 0x3cd   : > { %v2313_v47 = vpop.permute.xlu0 %2312  ;;  %v2210_v8 = vmul.f32 %v2206_v46, %v2201_v55 }
 0x3ce   : > { %v2315_v9 = vsel %vm2314_vm10, %v2311_v17, %v2313_v47  ;;  %v2316_v11 = vsel %vm2314_vm10, %v2313_v47, %v2311_v17  ;;  %v2326_v17 = vperm.slane %v2324_v50, 0  ;;  %v2327_v47 = vperm.slane %v2324_v50, 1 }
 0x3d2   : > { %3065 = vset.pattern.permute.xlu2 %v3373_v44  ;;  %v4674_v52 = vpop.permute.xlu1 %2358  ;;  %v2255_v44 = vperm.slane %v2252_v7, 1 }
 0x3d3   : > { %2526 = vperm.xlu2 %3065, %v4569_v32   ;;  %v2223_v26 = vpop.permute.xlu2 %2222  ;;  %v623_v32 = vsel %vm622_vm3, %v3075_v19, %v619_v45  ;;  %v2211_v19 = vmul.f32 %v2207_v27, %v2202_v25  ;;  %v2300_v45 = vld [vmem:[#allocation6 + $0x83] ss:$8 sm:$0x3] }
 0x3d4   : > { %v628_v51 = vsel %vm625_vm4, %v627_v37, %v623_v32  ;;  %v2225_v13 = vmul.f32 %v2223_v26, %v2219_v5  ;;  %v2226_v42 = vmul.f32 %v2223_v26, %v2220_v28  ;;  %v2276_v26 = vld [vmem:[#allocation6 + $0x82] ss:$8 sm:$0x3]  ;;  %v2302_v16 = vperm.slane %v2300_v45, 0 }
 0x3d5   : > { %v4676_v2 = vpop.permute.xlu0 %2336  ;;  %v2278_v32 = vperm.slane %v2276_v26, 0  ;;  %v2279_v37 = vperm.slane %v2276_v26, 1  ;;  %v2303_v36 = vperm.slane %v2300_v45, 1  ;;  %v2213_v3 = vadd.f32 %v2211_v19, %v4660_v4 }
 0x3d6   : > { %v2234_v53 = vmul.f32 %v2230_v29, %v2225_v13  ;;  %v2235_v12 = vmul.f32 %v2231_v10, %v2226_v42  ;;  %v2348_v10 = vld [vmem:[#allocation6 + $0x85] ss:$8 sm:$0x3]  ;;  %v2340_v4 = vsel %vm2338_vm11, %v4676_v2, %v4670_v23 }
 0x3d7   : > { %v2350_v19 = vperm.slane %v2348_v10, 0 }
 0x3d8   : > { %v2237_v28 = vadd.f32 %v2235_v12, %v2213_v3 }
 0x3da   : > { %v4694_v21 = vpop.permute.xlu1 %2382 }
 0x3db   : > { %3067 = vset.pattern.permute.xlu2 %v4946_v40 }
 0x3dc   : > { %2562 = vperm.xlu2 %3067, %v2559_v60   ;;  %v2247_v22 = vpop.permute.xlu2 %2246 }
 0x3dd   : > { %v2361_v20 = vpop.permute.xlu0 %2360  ;;  %v2249_v48 = vmul.f32 %v2247_v22, %v2243_v0  ;;  %v2250_v60 = vmul.f32 %v2247_v22, %v2244_v38  ;;  %v2212_v22 = vadd.f32 %v2210_v8, %v4658_v34  ;;  %v2339_v34 = vsel %vm2338_vm11, %v4670_v23, %v4676_v2 }
 0x3de   : > { %v2364_v13 = vsel %vm2362_vm12, %v2361_v20, %v4674_v52 }
 0x3df   : > { %v2258_v15 = vmul.f32 %v2254_v6, %v2249_v48  ;;  %v2259_v46 = vmul.f32 %v2255_v44, %v2250_v60  ;;  %v2236_v5 = vadd.f32 %v2234_v53, %v2212_v22  ;;  %v2351_v6 = vperm.slane %v2348_v10, 1  ;;  %v2413_v22 = vld [vmem:[#allocation6 + $0x90] ss:$8 sm:$0x3] }
 0x3e1   : > { %v2261_v8 = vadd.f32 %v2259_v46, %v2237_v28  ;;  %v2416_v28 = vperm.slane %v2413_v22, 1 }
 0x3e4   : > { %2640 = vperm.xlu2 %3067, %v628_v51  }
 0x3e5   : > { %v2271_v59 = vpop.permute.xlu2 %2270 }
 0x3e6   : > { %v2273_v51 = vmul.f32 %v2271_v59, %v2267_v18  ;;  %v2274_v31 = vmul.f32 %v2271_v59, %v2268_v56  ;;  %v2372_v18 = vld [vmem:[#allocation6 + $0x86] ss:$8 sm:$0x3]  ;;  %v2260_v56 = vadd.f32 %v2258_v15, %v2236_v5  ;;  %v2415_v5 = vperm.slane %v2413_v22, 0 }
 0x3e7   : > { %v2374_v45 = vperm.slane %v2372_v18, 0 }
 0x3e8   : > { %v2282_v0 = vmul.f32 %v2278_v32, %v2273_v51  ;;  %v2283_v59 = vmul.f32 %v2279_v37, %v2274_v31 }
 0x3ea   : > { %v2284_v48 = vadd.f32 %v2282_v0, %v2260_v56  ;;  %v2285_v60 = vadd.f32 %v2283_v59, %v2261_v8  ;;  %v4948_v0 = vld [vmem:[#allocation44_spill] sm:$0xff] }
 0x3ee   : > { %v2295_v40 = vpop.permute.xlu2 %2294 }
 0x3ef   : > { %v2297_v27 = vmul.f32 %v2295_v40, %v2291_v14  ;;  %v2298_v55 = vmul.f32 %v2295_v40, %v2292_v58  ;;  %v2363_v40 = vsel %vm2362_vm12, %v4674_v52, %v2361_v20  ;;  %v2385_v14 = vpop.permute.xlu0 %2384  ;;  %v2396_v58 = vld [vmem:[#allocation6 + $0x87] ss:$8 sm:$0x3] }
 0x3f0   : > { %v2398_v37 = vperm.slane %v2396_v58, 0  ;;  %v2399_v51 = vperm.slane %v2396_v58, 1  ;;  %v2388_v31 = vsel %vm2386_vm13, %v2385_v14, %v4694_v21  ;;  %v4952_v58 = vld [vmem:[#allocation47_spill] sm:$0xff] }
 0x3f1   : > { %v2306_v42 = vmul.f32 %v2302_v16, %v2297_v27  ;;  %v2307_v38 = vmul.f32 %v2303_v36, %v2298_v55 }
 0x3f3   : > { %v2308_v20 = vadd.f32 %v2306_v42, %v2284_v48  ;;  %v2309_v53 = vadd.f32 %v2307_v38, %v2285_v60  ;;  %v2464_v60 = vld [vmem:[#allocation6 + $0x93] ss:$8 sm:$0x3] }
 0x3f7   : > { %v4672_v63 = vpop.permute.xlu2 %2318 }
 0x3f8   : > { %v2321_v7 = vmul.f32 %v4672_v63, %v2315_v9  ;;  %v2322_v29 = vmul.f32 %v4672_v63, %v2316_v11  ;;  %v2408_v63 = vpop.permute.xlu1 %2407  ;;  %v2375_v9 = vperm.slane %v2372_v18, 1 }
 0x3f9   : > { %v2410_v59 = vmul.f32 %v2408_v63, %v4948_v0 }
 0x3fa   : > { %v2330_v23 = vmul.f32 %v2326_v17, %v2321_v7  ;;  %v2331_v2 = vmul.f32 %v2327_v47, %v2322_v29  ;;  %v4949_v7 = vld [vmem:[#allocation45_spill] sm:$0xff] }
 0x3fb   : > { %v2411_v29 = vmul.f32 %v2408_v63, %v4949_v7  ;;  %v2419_v38 = vmul.f32 %v2415_v5, %v2410_v59 }
 0x3fc   : > { %v2332_v16 = vadd.f32 %v2330_v23, %v2308_v20  ;;  %v2333_v36 = vadd.f32 %v2331_v2, %v2309_v53 }
 0x3fd   : > { %v2420_v18 = vmul.f32 %v2416_v28, %v2411_v29  ;;  %v2515_v29 = vld [vmem:[#allocation6 + $0x96] ss:$8 sm:$0x3] }
 0x400   : > { %v2343_v35 = vpop.permute.xlu2 %2342  ;;  %v2459_v41 = vpop.permute.xlu1 %2458 }
 0x401   : > { %v2345_v44 = vmul.f32 %v2343_v35, %v2339_v34  ;;  %v2346_v26 = vmul.f32 %v2343_v35, %v2340_v4  ;;  %v2387_v35 = vsel %vm2386_vm13, %v4694_v21, %v2385_v14  ;;  %v2430_v21 = vld [vmem:[#allocation6 + $0x91] ss:$8 sm:$0x3]  ;;  %v2425_v4 = vpop.permute.xlu0 %2424 }
 0x402   : > { %v2432_v56 = vperm.slane %v2430_v21, 0  ;;  %v2433_v8 = vperm.slane %v2430_v21, 1 }
 0x403   : > { %v2354_v12 = vmul.f32 %v2350_v19, %v2345_v44  ;;  %v2355_v32 = vmul.f32 %v2351_v6, %v2346_v26  ;;  %v4950_v19 = vld [vmem:[#allocation42_spill] sm:$0xff]  ;;  %v4951_v44 = vld [vmem:[#allocation43_spill] sm:$0xff] }
 0x404   : > { %v2427_v6 = vmul.f32 %v2425_v4, %v4950_v19  ;;  %v2428_v26 = vmul.f32 %v2425_v4, %v4951_v44  ;;  %v2518_v19 = vperm.slane %v2515_v29, 1 }
 0x405   : > { %v2356_v47 = vadd.f32 %v2354_v12, %v2332_v16  ;;  %v2466_v12 = vperm.slane %v2464_v60, 0  ;;  %v2481_v16 = vld [vmem:[#allocation6 + $0x94] ss:$8 sm:$0x3] }
 0x409   : > { %v2367_v25 = vpop.permute.xlu2 %2366 }
 0x40a   : > { %v2369_v11 = vmul.f32 %v2367_v25, %v2363_v40  ;;  %v2370_v52 = vmul.f32 %v2367_v25, %v2364_v13  ;;  %v2357_v25 = vadd.f32 %v2355_v32, %v2333_v36  ;;  %v2447_v40 = vld [vmem:[#allocation6 + $0x92] ss:$8 sm:$0x3]  ;;  %v2467_v32 = vperm.slane %v2464_v60, 1 }
 0x40b   : > { %v2449_v14 = vperm.slane %v2447_v40, 0  ;;  %v2450_v23 = vperm.slane %v2447_v40, 1  ;;  %v2498_v36 = vld [vmem:[#allocation6 + $0x95] ss:$8 sm:$0x3] }
 0x40c   : > { %v2378_v3 = vmul.f32 %v2374_v45, %v2369_v11  ;;  %v2379_v15 = vmul.f32 %v2375_v9, %v2370_v52  ;;  %v2436_v11 = vmul.f32 %v2432_v56, %v2427_v6  ;;  %v2437_v52 = vmul.f32 %v2433_v8, %v2428_v26  ;;  %v2549_v56 = vld [vmem:[#allocation6 + $0xa0] ss:$8 sm:$0x3] }
 0x40e   : > { %v2380_v10 = vadd.f32 %v2378_v3, %v2356_v47  ;;  %v2381_v34 = vadd.f32 %v2379_v15, %v2357_v25  ;;  %v2483_v3 = vperm.slane %v2481_v16, 0  ;;  %v2484_v15 = vperm.slane %v2481_v16, 1 }
 0x40f   : > { %v2500_v47 = vperm.slane %v2498_v36, 0  ;;  %v2501_v25 = vperm.slane %v2498_v36, 1 }
 0x412   : > { %v2391_v50 = vpop.permute.xlu2 %2390 }
 0x413   : > { %v2393_v46 = vmul.f32 %v2391_v50, %v2387_v35  ;;  %v2394_v27 = vmul.f32 %v2391_v50, %v2388_v31  ;;  %v4954_v35 = vld [vmem:[#allocation50_spill] sm:$0xff]  ;;  %v2493_v50 = vpop.permute.xlu1 %2492 }
 0x414   : > { %v2462_v31 = vmul.f32 %v2459_v41, %v4954_v35  ;;  %v2495_v28 = vmul.f32 %v2493_v50, %v4013_v24  ;;  %v2496_v0 = vmul.f32 %v2493_v50, %v4019_v61  ;;  %v2517_v24 = vperm.slane %v2515_v29, 0 }
 0x415   : > { %v2402_v55 = vmul.f32 %v2398_v37, %v2393_v46  ;;  %v2403_v17 = vmul.f32 %v2399_v51, %v2394_v27  ;;  %v4953_v37 = vld [vmem:[#allocation49_spill] sm:$0xff] }
 0x416   : > { %v2461_v51 = vmul.f32 %v2459_v41, %v4953_v37  ;;  %v2510_v41 = vpop.permute.xlu0 %2509  ;;  %v2504_v40 = vmul.f32 %v2500_v47, %v2495_v28 }
 0x417   : > { %v2404_v13 = vadd.f32 %v2402_v55, %v2380_v10  ;;  %v2405_v42 = vadd.f32 %v2403_v17, %v2381_v34  ;;  %v2471_v17 = vmul.f32 %v2467_v32, %v2462_v31  ;;  %v2512_v61 = vmul.f32 %v2510_v41, %v4034_v57 }
 0x418   : > { %v2470_v55 = vmul.f32 %v2466_v12, %v2461_v51 }
 0x419   : > { %v2421_v45 = vadd.f32 %v2419_v38, %v2404_v13  ;;  %v2422_v9 = vadd.f32 %v2420_v18, %v2405_v42  ;;  %v2505_v13 = vmul.f32 %v2501_v25, %v2496_v0  ;;  %v2532_v42 = vld [vmem:[#allocation6 + $0x97] ss:$8 sm:$0x3] }
 0x41a   : > { %v2535_v6 = vperm.slane %v2532_v42, 1 }
 0x41b   : > { %v2442_v2 = vpop.permute.xlu2 %2441  ;;  %v2438_v22 = vadd.f32 %v2436_v11, %v2421_v45  ;;  %v2544_v8 = vpop.permute.xlu1 %2543 }
 0x41c   : > { %v2444_v63 = vmul.f32 %v2442_v2, %v3956_v33  ;;  %v2445_v48 = vmul.f32 %v2442_v2, %v4952_v58  ;;  %v2439_v33 = vadd.f32 %v2437_v52, %v2422_v9  ;;  %v2546_v2 = vmul.f32 %v2544_v8, %v4080_v30 }
 0x41e   : > { %v2453_v20 = vmul.f32 %v2449_v14, %v2444_v63  ;;  %v2454_v53 = vmul.f32 %v2450_v23, %v2445_v48  ;;  %v2551_v14 = vperm.slane %v2549_v56, 0  ;;  %v2552_v23 = vperm.slane %v2549_v56, 1 }
 0x41f   : > { %v2547_v63 = vmul.f32 %v2544_v8, %v4073_v62  ;;  %v2521_v48 = vmul.f32 %v2517_v24, %v2512_v61 }
 0x420   : > { %v2455_v46 = vadd.f32 %v2453_v20, %v2438_v22  ;;  %v2456_v27 = vadd.f32 %v2454_v53, %v2439_v33  ;;  %v2555_v20 = vmul.f32 %v2551_v14, %v2546_v2 }
 0x421   : > { %v2556_v53 = vmul.f32 %v2552_v23, %v2547_v63 }
 0x422   : > { %v2472_v34 = vadd.f32 %v2470_v55, %v2455_v46  ;;  %v2473_v4 = vadd.f32 %v2471_v17, %v2456_v27  ;;  %v2593_v27 = vpop.permute.xlu0 %2592 }
 0x423   : > { %v2573_v31 = vpop.permute.xlu1 %2572 }
 0x424   : > { %v2476_v5 = vpop.permute.xlu2 %2475 }
 0x425   : > { %v2478_v59 = vmul.f32 %v2476_v5, %v3993_v43  ;;  %v2479_v7 = vmul.f32 %v2476_v5, %v3998_v54  ;;  %v2513_v43 = vmul.f32 %v2510_v41, %v4040_v39  ;;  %v2534_v54 = vperm.slane %v2532_v42, 0 }
 0x426   : > { %v2595_v5 = vperm.slane %v2593_v27, 0 }
 0x427   : > { %v2487_v21 = vmul.f32 %v2483_v3, %v2478_v59  ;;  %v2488_v10 = vmul.f32 %v2484_v15, %v2479_v7  ;;  %v2522_v60 = vmul.f32 %v2518_v19, %v2513_v43 }
 0x429   : > { %v2489_v38 = vadd.f32 %v2487_v21, %v2472_v34  ;;  %v2490_v18 = vadd.f32 %v2488_v10, %v2473_v4 }
 0x42b   : > { %v2506_v44 = vadd.f32 %v2504_v40, %v2489_v38  ;;  %v2507_v26 = vadd.f32 %v2505_v13, %v2490_v18 }
 0x42d   : > { %v2527_v58 = vpop.permute.xlu2 %2526  ;;  %v2523_v39 = vadd.f32 %v2521_v48, %v2506_v44  ;;  %v2524_v52 = vadd.f32 %v2522_v60, %v2507_v26 }
 0x42e   : > { %v2529_v45 = vmul.f32 %v2527_v58, %v4059_v49  ;;  %v2530_v9 = vmul.f32 %v2527_v58, %v4065_v1 }
 0x430   : > { %v2538_v57 = vmul.f32 %v2534_v54, %v2529_v45  ;;  %v2539_v11 = vmul.f32 %v2535_v6, %v2530_v9 }
 0x432   : > { %v2540_v12 = vadd.f32 %v2538_v57, %v2523_v39  ;;  %v2541_v32 = vadd.f32 %v2539_v11, %v2524_v52  ;;  %v4956_v52 = vld [vmem:[#allocation18_spill] sm:$0xff] }
 0x434   : > { %v2557_v37 = vadd.f32 %v2555_v20, %v2540_v12  ;;  %v2558_v51 = vadd.f32 %v2556_v53, %v2541_v32  ;;  %v4957_v53 = vld [vmem:[#allocation19_spill] sm:$0xff] }
 0x436   : > { %v2563_v30 = vpop.permute.xlu2 %2562 }
 0x437   : > { %v2565_v35 = vadd.f32 %v2563_v30, %v2557_v37  ;;  %v2566_v62 = vadd.f32 %v2563_v30, %v2558_v51 }
 0x439   : > { %v2567_v50 = vmax.f32 %v2565_v35, 0.0  ;;  %v2568_v16 = vmax.f32 %v2566_v62, 0.0 }
 0x43b   : > { %v2575_v36 = vmul.f32 %v2573_v31, %v2567_v50  ;;  %v2576_v49 = vmul.f32 %v2573_v31, %v2568_v16 }
 0x43d   : > { %v2577_v22 = vrot.slane %v2575_v36, 4  ;;  %v2583_v1 = vrot.slane %v2576_v49, 4 }
 0x43e   : > { %v2641_v58 = vpop.permute.xlu2 %2640 }
 0x43f   : > { %v2578_v33 = vadd.f32 %v2577_v22, %v2575_v36  ;;  %v2584_v3 = vadd.f32 %v2583_v1, %v2576_v49 }
 0x441   : > { %v2579_v15 = vrot.slane %v2578_v33, 2  ;;  %v2585_v46 = vrot.slane %v2584_v3, 2 }
 0x443   : > { %v2580_v55 = vadd.f32 %v2579_v15, %v2578_v33  ;;  %v2586_v17 = vadd.f32 %v2585_v46, %v2584_v3 }
 0x445   : > { %v2581_v47 = vrot.slane %v2580_v55, 1  ;;  %v2587_v25 = vrot.slane %v2586_v17, 1 }
 0x447   : > { %v2582_v28 = vadd.f32 %v2581_v47, %v2580_v55  ;;  %v2588_v0 = vadd.f32 %v2587_v25, %v2586_v17 }
 0x449   : > { %v2596_v59 = vadd.f32 %v2595_v5, %v2582_v28  ;;  %v2597_v7 = vadd.f32 %v2595_v5, %v2588_v0 }
 0x44b   : > { %v2598_v29 = vmax.f32 %v2596_v59, 0.0  ;;  %v2599_v41 = vmax.f32 %v2597_v7, 0.0 }
 0x44d   : > { %v2761_v21 = vmul.f32 -1.442695, %v2598_v29  ;;  %v2762_v10 = vmul.f32 -1.442695, %v2599_v41 }
 0x44f   : > { %3076 = vpow2.f32 %v2761_v21 }
 0x450   : > { %3078 = vpow2.f32 %v2762_v10 }
 0x455   : > { %v3077_v34 = vpop.eup %3076 }
 0x456   : > { %v3079_v4 = vpop.eup %3078  ;;  %v2606_v40 = vadd.f32 1.0, %v3077_v34 }
 0x457   : > { %v2607_v13 = vadd.f32 1.0, %v3079_v4 }
 0x458   : > { %3080 = vrcp.f32 %v2606_v40  ;;  %v2619_v24 = vand.u32 2147483648, %v2606_v40  ;;  %v2617_v43 = vand.u32 2147483647, %v2606_v40  ;;  %vm2613_vm0 = vweird.f32 %v2606_v40 }
 0x459   : > { %3082 = vrcp.f32 %v2607_v13  ;;  %v2634_v54 = vand.u32 2147483648, %v2607_v13  ;;  %v2632_v44 = vand.u32 2147483647, %v2607_v13  ;;  %vm2628_vm2 = vweird.f32 %v2607_v13 }
 0x45a   : > { %v2620_v14 = vor.u32 1.1754944e-38, %v2619_v24  ;;  %vm2618_vm3 = vcmp.eq.f32.partialorder %v2617_v43, 8.507059e+37 }
 0x45b   : > { %v2635_v2 = vor.u32 1.1754944e-38, %v2634_v54  ;;  %vm2633_vm5 = vcmp.eq.f32.partialorder %v2632_v44, 8.507059e+37 }
 0x45e   : > { %v3081_v42 = vpop.eup %3080 }
 0x45f   : > { %v3083_v38 = vpop.eup %3082  ;;  %v2609_v18 = vmul.f32 %v3081_v42, %v2606_v40  ;;  %vm2614_vm14 = vweird.f32 %v3081_v42 }
 0x460   : > { %v2624_v56 = vmul.f32 %v3083_v38, %v2607_v13  ;;  %vm2629_vm15 = vweird.f32 %v3083_v38  ;;  %vm2615_vm1 = vmor %vm2613_vm0, %vm2614_vm14 }
 0x461   : > { %v2610_v8 = vsub.f32 1.0, %v2609_v18  ;;  %vm2630_vm4 = vmor %vm2628_vm2, %vm2629_vm15 }
 0x462   : > { %v2625_v19 = vsub.f32 1.0, %v2624_v56 }
 0x463   : > { %v2611_v61 = vmul.f32 %v3081_v42, %v2610_v8 }
 0x464   : > { %v2626_v6 = vmul.f32 %v3083_v38, %v2625_v19 }
 0x465   : > { %v2612_v26 = vadd.f32 %v3081_v42, %v2611_v61 }
 0x466   : > { %v2627_v23 = vadd.f32 %v3083_v38, %v2626_v6 }
 0x467   : > { %v2616_v63 = vsel %vm2615_vm1, %v3081_v42, %v2612_v26 }
 0x468   : > { %v2621_v48 = vsel %vm2618_vm3, %v2620_v14, %v2616_v63  ;;  %v2631_v60 = vsel %vm2630_vm4, %v3083_v38, %v2627_v23 }
 0x469   : > { %v2636_v45 = vsel %vm2633_vm5, %v2635_v2, %v2631_v60  ;;  %v2643_v9 = vmul.f32 %v2641_v58, %v2621_v48 }
 0x46a   : > { %v2644_v57 = vmul.f32 %v2641_v58, %v2636_v45 }
 0x46b   : > { %v2645_v11 = vadd.f32 1.0, %v2643_v9 }
 0x46c   : > { %v2646_v39 = vadd.f32 1.0, %v2644_v57 }
 0x46d   : > { %v2647_v20 = vmul.f32 %v2645_v11, %v4956_v52 }
 0x46e   : > { %v2648_v12 = vmul.f32 %v2646_v39, %v4957_v53 }
 0x46f   : > { %2649 = vst [vmem:[%s506_s13] sm:$0xff] %v2647_v20 }
 0x470   : > { %2650 = vst [vmem:[%s506_s13 + $0x8] sm:$0xff] %v2648_v12 }
 0x471   : > { %3173 = shalt.err (!%p3170_p10)
}
 0x472   : > { %2778 = dma.vmem_to_hbm [thread:$0]  (%p3522_p7), %s2666_s22, 256, %s2668_s25, %s2652_s11  }
 0x473 PF: > { %s4958_s24 = sld [smem:[#allocation12_spill]] }
 0x474   : > { %s4960_s14 = sld [smem:[#allocation14_spill]] }
 0x479   : > { %s2679_s28 = sand.u32 1, %s4958_s24  }
 0x47a   : > { %p4961_p12 = scmp.ge.s32.totalorder %s4960_s14, 2  ;;  %s2680_s29 = scalar_lea.sflag [#allocation5], %s2679_s28 }
 0x47c   : > { %p2789_p13 = pnand %p4961_p12, %p3487_p6 }
 0x47e   : > { %p2790_p0 = pneg %p2789_p13 }
 0x480   : > { %3199 = dma.done.wait (%p2790_p0), %s2680_s29, 256  }
 0x481   : > { %3201 = vsyncadd (%p2790_p0), %s2680_s29, 4294967040  ;;  %s4962_s18 = sld [smem:[#allocation16_spill]]  ;;  %s4965_s15 = smov %s3208_s16 }
 0x482   : > { %s4963_s13 = sld [smem:[#allocation13_spill]] }
 0x483   : > { %s4964_s17 = sld [smem:[#allocation17_spill]] }
 0x487   : > { %p30_p3 = scmp.ge.s32.totalorder %s4962_s18, 4  }
 0x488   : > { %s4966_s16 = smov %s4963_s13 }
 0x489   :  { %32 = sbr.rel (!%p30_p3) target bundleno = 10 (0xa), region = 205 }
 0x48e   :  { %2686 = vsyncpa [#allocation4], 1 }
 0x48f   :  { %2688 = vsyncpa [#allocation4 + $0x1], 1 }
 0x490   :  { %2689 = vsyncpa [#allocation7], 1 }
 0x491   :  { %2690 = vsyncpa [#allocation5], 1 }
 0x492   :  { %2692 = vsyncpa [#allocation5 + $0x1], 1 }

</bundles_post_ra>
